<compile_context>
chip_gen: v7x
topology: tpu7x:2x2x1
jax: 0.10.0
libtpu: 0.0.40
codegen_flags: <defaults>
</compile_context>

<pallas_src>
import math
import functools

import jax
import jax.numpy as jnp
from jax import lax
from jax.experimental import pallas as pl
from jax.experimental.pallas import tpu as pltpu


PARAM_ORDER = (
    "sWq", "sbq", "sWk", "sbk", "sWv", "sbv", "sWo", "sbo",   # self-attention
    "g1", "b1",                                               # layer_norm 1
    "cWq", "cbq", "cWk", "cbk", "cWv", "cbv", "cWo", "cbo",   # context attention
    "g2", "b2",                                               # layer_norm 2
    "g3", "b3", "fW1", "fb1", "fW2", "fb2",                   # feed-forward
)

# weights cast to bf16 for the MXU; biases / LN params stay f32
_MATMUL_WEIGHTS = frozenset(
    {"sWq", "sWk", "sWv", "sWo", "cWq", "cWk", "cWv", "cWo", "fW1", "fW2"})


def prepare_params(params, *, d_k):
    """One-time parameter preparation (do this at load time, NOT per forward call):
      * fold 1/sqrt(d_k) into the Q projections (weight and bias) of both attentions,
      * cast the matmul weights to bf16 (MXU-native, half the HBM/VMEM footprint).
    """
    scale = jnp.float32(1.0 / math.sqrt(d_k))
    prepped = dict(params)
    for w, b in (("sWq", "sbq"), ("cWq", "cbq")):
        prepped[w] = params[w] * scale
        prepped[b] = params[b] * scale
    for name in _MATMUL_WEIGHTS:
        prepped[name] = prepped[name].astype(jnp.bfloat16)
    return prepped


def _default_vmem_limit():
    """~85% of per-core VMEM: ~54 MiB on v7x (64 MiB/TC), ~108 MiB on v5e/v6e (128 MiB)."""
    cap = None
    try:
        info = pltpu.get_tpu_info()
        cap = getattr(info, "vmem_capacity_bytes", None)
    except Exception:
        cap = None
    if not cap:
        cap = 64 * 1024 * 1024          # conservative: assume the smallest (v7x)
    return min(int(cap * 0.85), 112 * 1024 * 1024)


def _layer_norm(y, g, b, eps=1e-6):
    d = y.shape[-1]
    mean = jnp.mean(y, axis=-1, keepdims=True)
    diff = y - mean
    # torch.Tensor.std is unbiased (ddof=1); eps added to std (c2nl LayerNorm)
    std = jnp.sqrt(jnp.sum(diff * diff, axis=-1, keepdims=True) / (d - 1))
    inv = pl.reciprocal(std + eps, approx=True)        # EUP, frees VPU divide slots
    return g * diff * inv + b


def _project_heads(x_f32, W_bf, b_f32, heads, d_h):
    """(S, D) f32 @ (D, H*d_h) bf16 -> head-major (H, S, d_h) bf16."""
    p = jnp.dot(x_f32.astype(jnp.bfloat16), W_bf,
                preferred_element_type=jnp.float32) + b_f32
    s = p.shape[0]
    # reshape + transpose replaces the old per-head slice/stack relayout churn
    return jnp.transpose(p.reshape(s, heads, d_h), (1, 0, 2)).astype(jnp.bfloat16)


def _attend(q_slab, kh_bf, vh_bf, neg_bias, Wo, bo, *, heads, d_k, d_v, exp_in_bf16):
    """q_slab: (t, H*d_k) f32 (scale already folded into the Q weights);
    kh_bf: (H, S, d_k) bf16; vh_bf: (H, S, d_v) bf16;
    neg_bias: additive mask bias broadcastable to (t, S) (0.0 keep / -1e18 masked).
    Returns (attention output (t, D) f32, head-0 attention (t, S) f32)."""
    bf = jnp.bfloat16
    t = q_slab.shape[0]
    qh = jnp.transpose(q_slab.reshape(t, heads, d_k), (1, 0, 2)).astype(bf)

    # Batched score matmul over all heads at once (MXU stays pipelined).
    scores = jnp.einsum("htd,hsd->hts", qh, kh_bf,
                        preferred_element_type=jnp.float32)        # (H, t, S) f32
    scores = scores + neg_bias[None, :, :]

    # Softmax (f32 reductions; optional bf16 exp for v6e/v7x's bf16 EUP).
    m = jnp.max(scores, axis=-1, keepdims=True)
    x = scores - m
    if exp_in_bf16:
        e = jnp.exp(x.astype(bf)).astype(jnp.float32)
    else:
        e = jnp.exp(x)
    attn = e * pl.reciprocal(jnp.sum(e, axis=-1, keepdims=True), approx=True)

    # Batched context matmul + single full-depth output projection.
    ctx = jnp.einsum("hts,hsv->htv", attn.astype(bf), vh_bf,
                     preferred_element_type=jnp.float32)           # (H, t, d_v) f32
    ctx_slab = jnp.transpose(ctx, (1, 0, 2)).reshape(t, heads * d_v)
    out = jnp.dot(ctx_slab.astype(bf), Wo, preferred_element_type=jnp.float32) + bo
    return out, attn[0]          # head-0 attention (top_attn)


def _decoder_layer_kernel(
    in_ref, mem_ref, tgt_mask_ref, src_mask_ref,
    sWq, sbq, sWk, sbk, sWv, sbv, sWo, sbo,
    g1, b1,
    cWq, cbq, cWk, cbk, cWv, cbv, cWo, cbo,
    g2, b2,
    g3, b3, fW1, fb1, fW2, fb2,
    out_ref, attn_ref,
    skh, svh, ckh, cvh,
    *ffn_scratch,
    heads, d_k, d_v, t_tile, ff_tile, exp_in_bf16,
):
    bf = jnp.bfloat16
    T = in_ref.shape[1]
    S = mem_ref.shape[1]
    D = in_ref.shape[2]

    # ---- per-batch-row K/V projection cache: computed once at t == 0, reused for
    #      every query tile of this batch row (t grid axis is "arbitrary"). ----------
    @pl.when(pl.program_id(1) == 0)
    def _():
        xkv = in_ref[0]              # (T, D) full target sequence
        mem = mem_ref[0]             # (S, D) memory bank
        skh[...] = _project_heads(xkv, sWk[...], sbk[...], heads, d_k)
        svh[...] = _project_heads(xkv, sWv[...], sbv[...], heads, d_v)
        ckh[...] = _project_heads(mem, cWk[...], cbk[...], heads, d_k)
        cvh[...] = _project_heads(mem, cWv[...], cbv[...], heads, d_v)

    # ---- query rows of this tile, sliced from the already-resident full block ----
    t0 = pl.multiple_of(pl.program_id(1) * t_tile, t_tile)
    xq = in_ref[0, pl.ds(t0, t_tile), :]            # (t_tile, D)

    tgt_pad = tgt_mask_ref[0]        # (1, T)  1.0 = padded target position
    src_pad = src_mask_ref[0]        # (1, S)  1.0 = padded source position
    NEG = jnp.float32(-1e18)
    ZERO = jnp.float32(0.0)

    # Build causal + pad mask in-kernel (no (B, T, T) HBM tensor).
    row = lax.broadcasted_iota(jnp.int32, (t_tile, T), 0) + pl.program_id(1) * t_tile
    col = lax.broadcasted_iota(jnp.int32, (t_tile, T), 1)
    dec_neg = jnp.where((col > row) | (tgt_pad > 0.5), NEG, ZERO)   # (t_tile, T)
    src_neg = jnp.where(src_pad > 0.5, NEG, ZERO)                   # (1, S)

    attend = functools.partial(_attend, heads=heads, d_k=d_k, d_v=d_v,
                               exp_in_bf16=exp_in_bf16)

    # ---- masked self-attention + residual + LayerNorm1 (dropout == identity) -----
    # TODO(synk): exploit causality (restrict keys to [0, t0+t_tile) with a
    #             flash-style inner key-tile loop) to halve self-attn MXU/exp work.
    q_self = jnp.dot(xq.astype(bf), sWq[...],
                     preferred_element_type=jnp.float32) + sbq[...]
    self_out, _ = attend(q_self, skh[...], svh[...], dec_neg, sWo[...], sbo[...])
    query_norm = _layer_norm(self_out + xq, g1[...], b1[...])

    # ---- context attention (kv = memory_bank, q = query_norm) + residual + LN2 ----
    q_ctx = jnp.dot(query_norm.astype(bf), cWq[...],
                    preferred_element_type=jnp.float32) + cbq[...]
    mid, top_attn = attend(q_ctx, ckh[...], cvh[...], src_neg, cWo[...], cbo[...])
    mid_norm = _layer_norm(mid + query_norm, g2[...], b2[...])

    # ---- PositionwiseFeedForward: x + W2 @ relu(W1 @ LN(x)) -----------------------
    ffn_in = _layer_norm(mid_norm, g3[...], b3[...]).astype(bf)
    if ff_tile is None:
        # FFN weights fully VMEM-resident (v5e/v6e, or small d_ff).
        inter = jnp.maximum(
            jnp.dot(ffn_in, fW1[...], preferred_element_type=jnp.float32)
            + fb1[...], 0.0)
        ffn_out = jnp.dot(inter.astype(bf), fW2[...],
                          preferred_element_type=jnp.float32) + fb2[...]
        out_ref[0] = ffn_out + mid_norm
    else:
        # v7x / large-d_ff path: fW1, fb1, fW2 live in HBM (pl.ANY); stream
        # (D, ff_tile)/(ff_tile, D) slabs through a nested pipeline so only
        # ~2 * D * ff_tile weight bytes are VMEM-resident at a time.
        acc = ffn_scratch[0]                         # (t_tile, D) f32 VMEM scratch
        acc[...] = mid_norm + fb2[...]               # residual + final bias
        d_ff = fb1.shape[-1]

        def ffn_step(w1_ref, b1_ref, w2_ref):
            inter = jnp.maximum(
                jnp.dot(ffn_in, w1_ref[...], preferred_element_type=jnp.float32)
                + b1_ref[...], 0.0)
            acc[...] += jnp.dot(inter.astype(bf), w2_ref[...],
                                preferred_element_type=jnp.float32)

        pltpu.emit_pipeline(
            ffn_step,
            grid=(d_ff // ff_tile,),
            in_specs=[pl.BlockSpec((D, ff_tile), lambda l: (0, l)),
                      pl.BlockSpec((1, ff_tile), lambda l: (0, l)),
                      pl.BlockSpec((ff_tile, D), lambda l: (l, 0))],
        )(fW1, fb1, fW2)
        out_ref[0] = acc[...]

    attn_ref[0] = top_attn.astype(attn_ref.dtype)


def transformer_decoder_layer(inputs, memory_bank, src_pad_mask, tgt_pad_mask,
                              params, *, heads, d_k, d_v, t_tile=None,
                              ff_tile=None, attn_dtype=jnp.float32,
                              exp_in_bf16=False, vmem_limit_bytes=None):
    """inputs: (B, T, D); memory_bank: (B, S, D);
    src_pad_mask: (B, 1, S); tgt_pad_mask: (B, 1, T)   (1.0 = padded).
    `params` must come from prepare_params() (bf16 weights, folded q-scale).

    ff_tile:      None -> FFN weights fully VMEM-resident (v5e/v6e).
                  int (multiple of 128) -> stream FFN weights from HBM in d_ff
                  slabs (recommended on v7x for large d_ff).
    attn_dtype:   jnp.bfloat16 halves the (B, T, S) attention writeback.
    exp_in_bf16:  enable on v6e/v7x only (bf16 EUP); keep False on v5e.
    """
    B, T, D = inputs.shape
    S = memory_bank.shape[1]
    d_ff = params["fW1"].shape[-1]

    if t_tile is None:
        t_tile = T if T <= 128 else 128
    assert T % t_tile == 0, "T must be divisible by the query tile size"
    n_t = T // t_tile
    if ff_tile is not None:
        assert d_ff % ff_tile == 0 and ff_tile % 128 == 0, \
            "ff_tile must divide d_ff and be a multiple of 128"

    src_mask = src_pad_mask.astype(jnp.float32)     # (B, 1, S)
    tgt_mask = tgt_pad_mask.astype(jnp.float32)     # (B, 1, T)

    param_list = [params[name] for name in PARAM_ORDER]

    in_specs = [
        pl.BlockSpec((1, T, D), lambda b, t: (b, 0, 0)),   # inputs (query tile sliced in-kernel)
        pl.BlockSpec((1, S, D), lambda b, t: (b, 0, 0)),   # memory_bank
        pl.BlockSpec((1, 1, T), lambda b, t: (b, 0, 0)),   # tgt pad mask
        pl.BlockSpec((1, 1, S), lambda b, t: (b, 0, 0)),   # src pad mask
    ]
    # Params: constant block index -> fetched once, revisited (not re-DMA'd) across
    # the grid.  TODO(synk): single-buffer them via pipeline_mode=pl.Buffered(1) once
    # that is uniformly available to halve their VMEM residency.
    for name, p in zip(PARAM_ORDER, param_list):
        if ff_tile is not None and name in ("fW1", "fb1", "fW2"):
            in_specs.append(pl.BlockSpec(memory_space=pl.ANY))   # stay in HBM, streamed
        else:
            in_specs.append(pl.BlockSpec(p.shape, lambda b, t, _n=p.ndim: (0,) * _n))

    out_specs = [
        pl.BlockSpec((1, t_tile, D), lambda b, t: (b, t, 0)),
        pl.BlockSpec((1, t_tile, S), lambda b, t: (b, t, 0)),
    ]
    out_shape = (jax.ShapeDtypeStruct((B, T, D), jnp.float32),
                 jax.ShapeDtypeStruct((B, T, S), attn_dtype))

    # bf16 head-major K/V caches (persist across the t axis for each batch row).
    scratch_shapes = [
        pltpu.VMEM((heads, T, d_k), jnp.bfloat16),   # self-attn K
        pltpu.VMEM((heads, T, d_v), jnp.bfloat16),   # self-attn V
        pltpu.VMEM((heads, S, d_k), jnp.bfloat16),   # context K
        pltpu.VMEM((heads, S, d_v), jnp.bfloat16),   # context V
    ]
    if ff_tile is not None:
        scratch_shapes.append(pltpu.VMEM((t_tile, D), jnp.float32))  # FFN accumulator

    if vmem_limit_bytes is None:
        vmem_limit_bytes = _default_vmem_limit()

    kernel = functools.partial(
        _decoder_layer_kernel, heads=heads, d_k=d_k, d_v=d_v, t_tile=t_tile,
        ff_tile=ff_tile, exp_in_bf16=exp_in_bf16)

    out, attn = pl.pallas_call(
        kernel,
        out_shape=out_shape,
        grid_spec=pltpu.PrefetchScalarGridSpec(
            num_scalar_prefetch=0,
            grid=(B, n_t),
            in_specs=in_specs,
            out_specs=out_specs,
            scratch_shapes=scratch_shapes,
        ),
        # B is "parallel" (megacore); t must be "arbitrary" because the K/V caches
        # are carried across the t axis.  NOTE(v7x): at B == 1 consider splitting the
        # query-tile range (or heads) explicitly across the two TensorCores instead.
        compiler_params=pltpu.CompilerParams(
            dimension_semantics=("parallel", "arbitrary"),
            vmem_limit_bytes=vmem_limit_bytes),
    )(inputs, memory_bank, tgt_mask, src_mask, *param_list)
    # coverage path not active (coverage_attn=False) -> coverage is None
    return out, attn, None


def init_params(key, d_model, heads, d_k, d_v, d_ff):
    def linear(k, fan_in, fan_out):
        kw, kb = jax.random.split(k)
        w = 0.02 * jax.random.normal(kw, (fan_in, fan_out), jnp.float32)
        b = 0.02 * jax.random.normal(kb, (1, fan_out), jnp.float32)
        return w, b

    def lnorm(k, d):
        kg, kb = jax.random.split(k)
        g = 1.0 + 0.1 * jax.random.normal(kg, (1, d), jnp.float32)
        b = 0.1 * jax.random.normal(kb, (1, d), jnp.float32)
        return g, b

    keys = jax.random.split(key, 13)
    p = {}
    p["sWq"], p["sbq"] = linear(keys[0], d_model, heads * d_k)
    p["sWk"], p["sbk"] = linear(keys[1], d_model, heads * d_k)
    p["sWv"], p["sbv"] = linear(keys[2], d_model, heads * d_v)
    p["sWo"], p["sbo"] = linear(keys[3], heads * d_v, d_model)
    p["g1"], p["b1"] = lnorm(keys[4], d_model)
    p["cWq"], p["cbq"] = linear(keys[5], d_model, heads * d_k)
    p["cWk"], p["cbk"] = linear(keys[6], d_model, heads * d_k)
    p["cWv"], p["cbv"] = linear(keys[7], d_model, heads * d_v)
    p["cWo"], p["cbo"] = linear(keys[8], heads * d_v, d_model)
    p["g2"], p["b2"] = lnorm(keys[9], d_model)
    p["g3"], p["b3"] = lnorm(keys[10], d_model)
    p["fW1"], p["fb1"] = linear(keys[11], d_model, d_ff)
    p["fW2"], p["fb2"] = linear(keys[12], d_ff, d_model)
    return p


def reference_forward(inputs, memory_bank, src_pad_mask, tgt_pad_mask, params,
                      *, heads, d_k, d_v):
    """Plain-JAX reference (high-precision f32 matmuls, un-prepared f32 params)."""
    hp = dict(precision=lax.Precision.HIGHEST)

    def ln(x, g, b, eps=1e-6):
        d = x.shape[-1]
        mean = jnp.mean(x, -1, keepdims=True)
        diff = x - mean
        std = jnp.sqrt(jnp.sum(diff * diff, -1, keepdims=True) / (d - 1))
        return g * diff / (std + eps) + b

    def mha(q_in, k_in, v_in, mask, pfx):
        B, T, D = q_in.shape
        S = k_in.shape[1]
        q = jnp.einsum("btd,df->btf", q_in, params[pfx + "Wq"], **hp) + params[pfx + "bq"]
        k = jnp.einsum("bsd,df->bsf", k_in, params[pfx + "Wk"], **hp) + params[pfx + "bk"]
        v = jnp.einsum("bsd,df->bsf", v_in, params[pfx + "Wv"], **hp) + params[pfx + "bv"]
        q = q.reshape(B, T, heads, d_k).transpose(0, 2, 1, 3) / math.sqrt(d_k)
        k = k.reshape(B, S, heads, d_k).transpose(0, 2, 1, 3)
        v = v.reshape(B, S, heads, d_v).transpose(0, 2, 1, 3)
        scores = jnp.einsum("bhtk,bhsk->bhts", q, k, **hp)
        scores = jnp.where(mask[:, None] > 0.5, jnp.float32(-1e18), scores)
        attn = jax.nn.softmax(scores, axis=-1)
        ctx = jnp.einsum("bhts,bhsv->bhtv", attn, v, **hp)
        ctx = ctx.transpose(0, 2, 1, 3).reshape(B, T, heads * d_v)
        out = jnp.einsum("btv,vd->btd", ctx, params[pfx + "Wo"], **hp) + params[pfx + "bo"]
        return out, attn[:, 0]

    T = inputs.shape[1]
    future = jnp.triu(jnp.ones((T, T), jnp.float32), 1)
    dec_mask = ((tgt_pad_mask + future[None]) > 0).astype(jnp.float32)
    self_out, _ = mha(inputs, inputs, inputs, dec_mask, "s")
    query_norm = ln(self_out + inputs, params["g1"], params["b1"])
    mid, top_attn = mha(query_norm, memory_bank, memory_bank, src_pad_mask, "c")
    mid_norm = ln(mid + query_norm, params["g2"], params["b2"])
    ffn_in = ln(mid_norm, params["g3"], params["b3"])
    inter = jnp.maximum(jnp.einsum("btd,df->btf", ffn_in, params["fW1"], **hp)
                        + params["fb1"], 0.0)
    ffn_out = jnp.einsum("btf,fd->btd", inter, params["fW2"], **hp) + params["fb2"]
    return ffn_out + mid_norm, top_attn


if __name__ == "__main__":
    # Small but lane-friendly shapes: D = 128 (one full lane width), T != S to
    # exercise the distinct self/context sequence lengths, t_tile = 8 so the
    # K/V-cache reuse across query tiles (n_t = 2) is actually exercised.
    B, T, S = 2, 16, 24
    d_model, heads, d_k, d_v, d_ff = 128, 4, 32, 32, 256

    key = jax.random.PRNGKey(0)
    k_in, k_mem, k_param = jax.random.split(key, 3)

    inputs = jax.random.normal(k_in, (B, T, d_model), jnp.float32)
    memory_bank = jax.random.normal(k_mem, (B, S, d_model), jnp.float32)
    # pad masks: 1.0 = padded position
    src_pad_mask = jnp.zeros((B, 1, S), jnp.float32).at[1, 0, S - 4:].set(1.0)
    tgt_pad_mask = jnp.zeros((B, 1, T), jnp.float32).at[1, 0, T - 2:].set(1.0)

    params = init_params(k_param, d_model, heads, d_k, d_v, d_ff)
    prepped = prepare_params(params, d_k=d_k)      # one-time: bf16 weights + q-scale fold

    out, attn, coverage = transformer_decoder_layer(
        inputs, memory_bank, src_pad_mask, tgt_pad_mask, prepped,
        heads=heads, d_k=d_k, d_v=d_v, t_tile=8)
    jax.block_until_ready((out, attn))

    ref_out, ref_attn = reference_forward(
        inputs, memory_bank, src_pad_mask, tgt_pad_mask, params,
        heads=heads, d_k=d_k, d_v=d_v)

    assert out.shape == (B, T, d_model) and attn.shape == (B, T, S)
    assert coverage is None
    assert jnp.allclose(out, ref_out, atol=1e-2, rtol=1e-2)
    assert jnp.allclose(attn, ref_attn, atol=1e-2, rtol=1e-2)
    print("KERNEL_OK")
</pallas_src>

<mosaic_0001>
module attributes {stable_mosaic.version = 11 : i64} {
  func.func @_decoder_layer_kernel(%arg0: i32, %arg1: i32, %arg2: memref<1x16x128xf32, #tpu.memory_space<vmem>>, %arg3: memref<1x24x128xf32, #tpu.memory_space<vmem>>, %arg4: memref<1x1x16xf32, #tpu.memory_space<vmem>>, %arg5: memref<1x1x24xf32, #tpu.memory_space<vmem>>, %arg6: memref<128x128xbf16, #tpu.memory_space<vmem>>, %arg7: memref<1x128xf32, #tpu.memory_space<vmem>>, %arg8: memref<128x128xbf16, #tpu.memory_space<vmem>>, %arg9: memref<1x128xf32, #tpu.memory_space<vmem>>, %arg10: memref<128x128xbf16, #tpu.memory_space<vmem>>, %arg11: memref<1x128xf32, #tpu.memory_space<vmem>>, %arg12: memref<128x128xbf16, #tpu.memory_space<vmem>>, %arg13: memref<1x128xf32, #tpu.memory_space<vmem>>, %arg14: memref<1x128xf32, #tpu.memory_space<vmem>>, %arg15: memref<1x128xf32, #tpu.memory_space<vmem>>, %arg16: memref<128x128xbf16, #tpu.memory_space<vmem>>, %arg17: memref<1x128xf32, #tpu.memory_space<vmem>>, %arg18: memref<128x128xbf16, #tpu.memory_space<vmem>>, %arg19: memref<1x128xf32, #tpu.memory_space<vmem>>, %arg20: memref<128x128xbf16, #tpu.memory_space<vmem>>, %arg21: memref<1x128xf32, #tpu.memory_space<vmem>>, %arg22: memref<128x128xbf16, #tpu.memory_space<vmem>>, %arg23: memref<1x128xf32, #tpu.memory_space<vmem>>, %arg24: memref<1x128xf32, #tpu.memory_space<vmem>>, %arg25: memref<1x128xf32, #tpu.memory_space<vmem>>, %arg26: memref<1x128xf32, #tpu.memory_space<vmem>>, %arg27: memref<1x128xf32, #tpu.memory_space<vmem>>, %arg28: memref<128x256xbf16, #tpu.memory_space<vmem>>, %arg29: memref<1x256xf32, #tpu.memory_space<vmem>>, %arg30: memref<256x128xbf16, #tpu.memory_space<vmem>>, %arg31: memref<1x128xf32, #tpu.memory_space<vmem>>, %arg32: memref<1x8x128xf32, #tpu.memory_space<vmem>>, %arg33: memref<1x8x24xf32, #tpu.memory_space<vmem>>, %arg34: memref<4x16x32xbf16, #tpu.memory_space<vmem>>, %arg35: memref<4x16x32xbf16, #tpu.memory_space<vmem>>, %arg36: memref<4x24x32xbf16, #tpu.memory_space<vmem>>, %arg37: memref<4x24x32xbf16, #tpu.memory_space<vmem>>) attributes {dimension_semantics = [#tpu.dimension_semantics<parallel>, #tpu.dimension_semantics<arbitrary>], iteration_bounds = array<i64: 2, 2>, scalar_prefetch = 0 : i64, scratch_operands = 4 : i64, tpu.core_type = #tpu.core_type<tc>, window_params = [{transform_indices = @transform_0, window_bounds = array<i64: 1, 16, 128>}, {transform_indices = @transform_1, window_bounds = array<i64: 1, 24, 128>}, {transform_indices = @transform_2, window_bounds = array<i64: 1, 1, 16>}, {transform_indices = @transform_3, window_bounds = array<i64: 1, 1, 24>}, {pipeline_mode = #tpu.pipeline_mode<synchronous>, transform_indices = @transform_4, window_bounds = array<i64: 128, 128>}, {pipeline_mode = #tpu.pipeline_mode<synchronous>, transform_indices = @transform_5, window_bounds = array<i64: 1, 128>}, {pipeline_mode = #tpu.pipeline_mode<synchronous>, transform_indices = @transform_6, window_bounds = array<i64: 128, 128>}, {pipeline_mode = #tpu.pipeline_mode<synchronous>, transform_indices = @transform_7, window_bounds = array<i64: 1, 128>}, {pipeline_mode = #tpu.pipeline_mode<synchronous>, transform_indices = @transform_8, window_bounds = array<i64: 128, 128>}, {pipeline_mode = #tpu.pipeline_mode<synchronous>, transform_indices = @transform_9, window_bounds = array<i64: 1, 128>}, {pipeline_mode = #tpu.pipeline_mode<synchronous>, transform_indices = @transform_10, window_bounds = array<i64: 128, 128>}, {pipeline_mode = #tpu.pipeline_mode<synchronous>, transform_indices = @transform_11, window_bounds = array<i64: 1, 128>}, {pipeline_mode = #tpu.pipeline_mode<synchronous>, transform_indices = @transform_12, window_bounds = array<i64: 1, 128>}, {pipeline_mode = #tpu.pipeline_mode<synchronous>, transform_indices = @transform_13, window_bounds = array<i64: 1, 128>}, {pipeline_mode = #tpu.pipeline_mode<synchronous>, transform_indices = @transform_14, window_bounds = array<i64: 128, 128>}, {pipeline_mode = #tpu.pipeline_mode<synchronous>, transform_indices = @transform_15, window_bounds = array<i64: 1, 128>}, {pipeline_mode = #tpu.pipeline_mode<synchronous>, transform_indices = @transform_16, window_bounds = array<i64: 128, 128>}, {pipeline_mode = #tpu.pipeline_mode<synchronous>, transform_indices = @transform_17, window_bounds = array<i64: 1, 128>}, {pipeline_mode = #tpu.pipeline_mode<synchronous>, transform_indices = @transform_18, window_bounds = array<i64: 128, 128>}, {pipeline_mode = #tpu.pipeline_mode<synchronous>, transform_indices = @transform_19, window_bounds = array<i64: 1, 128>}, {pipeline_mode = #tpu.pipeline_mode<synchronous>, transform_indices = @transform_20, window_bounds = array<i64: 128, 128>}, {pipeline_mode = #tpu.pipeline_mode<synchronous>, transform_indices = @transform_21, window_bounds = array<i64: 1, 128>}, {pipeline_mode = #tpu.pipeline_mode<synchronous>, transform_indices = @transform_22, window_bounds = array<i64: 1, 128>}, {pipeline_mode = #tpu.pipeline_mode<synchronous>, transform_indices = @transform_23, window_bounds = array<i64: 1, 128>}, {pipeline_mode = #tpu.pipeline_mode<synchronous>, transform_indices = @transform_24, window_bounds = array<i64: 1, 128>}, {pipeline_mode = #tpu.pipeline_mode<synchronous>, transform_indices = @transform_25, window_bounds = array<i64: 1, 128>}, {pipeline_mode = #tpu.pipeline_mode<synchronous>, transform_indices = @transform_26, window_bounds = array<i64: 128, 256>}, {pipeline_mode = #tpu.pipeline_mode<synchronous>, transform_indices = @transform_27, window_bounds = array<i64: 1, 256>}, {pipeline_mode = #tpu.pipeline_mode<synchronous>, transform_indices = @transform_28, window_bounds = array<i64: 256, 128>}, {pipeline_mode = #tpu.pipeline_mode<synchronous>, transform_indices = @transform_29, window_bounds = array<i64: 1, 128>}, {transform_indices = @transform_30, window_bounds = array<i64: 1, 8, 128>}, {transform_indices = @transform_31, window_bounds = array<i64: 1, 8, 24>}]} {
    %c0_i32 = arith.constant 0 : i32
    %0 = arith.cmpi eq, %arg1, %c0_i32 : i32
    %1 = arith.extui %0 : i1 to i32
    %c0_i32_0 = arith.constant 0 : i32
    %2 = arith.cmpi ne, %1, %c0_i32_0 : i32
    scf.if %2 {
      %c0_98 = arith.constant 0 : index
      %c0_99 = arith.constant 0 : index
      %c0_100 = arith.constant 0 : index
      %194 = vector.load %arg2[%c0_98, %c0_99, %c0_100] : memref<1x16x128xf32, #tpu.memory_space<vmem>>, vector<1x16x128xf32>
      %195 = vector.shape_cast %194 : vector<1x16x128xf32> to vector<16x128xf32>
      %c0_101 = arith.constant 0 : index
      %c0_102 = arith.constant 0 : index
      %c0_103 = arith.constant 0 : index
      %196 = vector.load %arg3[%c0_101, %c0_102, %c0_103] : memref<1x24x128xf32, #tpu.memory_space<vmem>>, vector<1x24x128xf32>
      %197 = vector.shape_cast %196 : vector<1x24x128xf32> to vector<24x128xf32>
      %c0_104 = arith.constant 0 : index
      %c0_105 = arith.constant 0 : index
      %198 = vector.load %arg8[%c0_104, %c0_105] : memref<128x128xbf16, #tpu.memory_space<vmem>>, vector<128x128xbf16>
      %c0_106 = arith.constant 0 : index
      %c0_107 = arith.constant 0 : index
      %199 = vector.load %arg9[%c0_106, %c0_107] : memref<1x128xf32, #tpu.memory_space<vmem>>, vector<1x128xf32>
      %200 = arith.truncf %195 : vector<16x128xf32> to vector<16x128xbf16>
      %cst_108 = arith.constant dense<0.000000e+00> : vector<16x128xf32>
      %201 = tpu.matmul %200, %198, %cst_108 {dimension_numbers = #tpu.dot_dimension_numbers<[1], [0], [0], [1], [0, 0, 1, 1], [], []>} : vector<16x128xbf16>, vector<128x128xbf16>, vector<16x128xf32> -> vector<16x128xf32>
      %202 = vector.broadcast %199 : vector<1x128xf32> to vector<16x128xf32>
      %203 = arith.addf %201, %202 : vector<16x128xf32>
      %204 = vector.shape_cast %203 : vector<16x128xf32> to vector<16x4x32xf32>
      %205 = tpu.transpose %204, [1, 0, 2] : vector<16x4x32xf32> -> vector<4x16x32xf32>
      %206 = arith.truncf %205 : vector<4x16x32xf32> to vector<4x16x32xbf16>
      %c0_109 = arith.constant 0 : index
      %c0_110 = arith.constant 0 : index
      %c0_111 = arith.constant 0 : index
      %207 = vector.load %arg34[%c0_109, %c0_110, %c0_111] : memref<4x16x32xbf16, #tpu.memory_space<vmem>>, vector<4x16x32xbf16>
      tpu.vector_store %arg34[%c0_109, %c0_110, %c0_111], %206 {strides = array<i32>} : memref<4x16x32xbf16, #tpu.memory_space<vmem>>, vector<4x16x32xbf16>,
      %c0_112 = arith.constant 0 : index
      %c0_113 = arith.constant 0 : index
      %208 = vector.load %arg10[%c0_112, %c0_113] : memref<128x128xbf16, #tpu.memory_space<vmem>>, vector<128x128xbf16>
      %c0_114 = arith.constant 0 : index
      %c0_115 = arith.constant 0 : index
      %209 = vector.load %arg11[%c0_114, %c0_115] : memref<1x128xf32, #tpu.memory_space<vmem>>, vector<1x128xf32>
      %210 = arith.truncf %195 : vector<16x128xf32> to vector<16x128xbf16>
      %cst_116 = arith.constant dense<0.000000e+00> : vector<16x128xf32>
      %211 = tpu.matmul %210, %208, %cst_116 {dimension_numbers = #tpu.dot_dimension_numbers<[1], [0], [0], [1], [0, 0, 1, 1], [], []>} : vector<16x128xbf16>, vector<128x128xbf16>, vector<16x128xf32> -> vector<16x128xf32>
      %212 = vector.broadcast %209 : vector<1x128xf32> to vector<16x128xf32>
      %213 = arith.addf %211, %212 : vector<16x128xf32>
      %214 = vector.shape_cast %213 : vector<16x128xf32> to vector<16x4x32xf32>
      %215 = tpu.transpose %214, [1, 0, 2] : vector<16x4x32xf32> -> vector<4x16x32xf32>
      %216 = arith.truncf %215 : vector<4x16x32xf32> to vector<4x16x32xbf16>
      %c0_117 = arith.constant 0 : index
      %c0_118 = arith.constant 0 : index
      %c0_119 = arith.constant 0 : index
      %217 = vector.load %arg35[%c0_117, %c0_118, %c0_119] : memref<4x16x32xbf16, #tpu.memory_space<vmem>>, vector<4x16x32xbf16>
      tpu.vector_store %arg35[%c0_117, %c0_118, %c0_119], %216 {strides = array<i32>} : memref<4x16x32xbf16, #tpu.memory_space<vmem>>, vector<4x16x32xbf16>,
      %c0_120 = arith.constant 0 : index
      %c0_121 = arith.constant 0 : index
      %218 = vector.load %arg18[%c0_120, %c0_121] : memref<128x128xbf16, #tpu.memory_space<vmem>>, vector<128x128xbf16>
      %c0_122 = arith.constant 0 : index
      %c0_123 = arith.constant 0 : index
      %219 = vector.load %arg19[%c0_122, %c0_123] : memref<1x128xf32, #tpu.memory_space<vmem>>, vector<1x128xf32>
      %220 = arith.truncf %197 : vector<24x128xf32> to vector<24x128xbf16>
      %cst_124 = arith.constant dense<0.000000e+00> : vector<24x128xf32>
      %221 = tpu.matmul %220, %218, %cst_124 {dimension_numbers = #tpu.dot_dimension_numbers<[1], [0], [0], [1], [0, 0, 1, 1], [], []>} : vector<24x128xbf16>, vector<128x128xbf16>, vector<24x128xf32> -> vector<24x128xf32>
      %222 = vector.broadcast %219 : vector<1x128xf32> to vector<24x128xf32>
      %223 = arith.addf %221, %222 : vector<24x128xf32>
      %224 = vector.shape_cast %223 : vector<24x128xf32> to vector<24x4x32xf32>
      %225 = tpu.transpose %224, [1, 0, 2] : vector<24x4x32xf32> -> vector<4x24x32xf32>
      %226 = arith.truncf %225 : vector<4x24x32xf32> to vector<4x24x32xbf16>
      %c0_125 = arith.constant 0 : index
      %c0_126 = arith.constant 0 : index
      %c0_127 = arith.constant 0 : index
      %227 = vector.load %arg36[%c0_125, %c0_126, %c0_127] : memref<4x24x32xbf16, #tpu.memory_space<vmem>>, vector<4x24x32xbf16>
      tpu.vector_store %arg36[%c0_125, %c0_126, %c0_127], %226 {strides = array<i32>} : memref<4x24x32xbf16, #tpu.memory_space<vmem>>, vector<4x24x32xbf16>,
      %c0_128 = arith.constant 0 : index
      %c0_129 = arith.constant 0 : index
      %228 = vector.load %arg20[%c0_128, %c0_129] : memref<128x128xbf16, #tpu.memory_space<vmem>>, vector<128x128xbf16>
      %c0_130 = arith.constant 0 : index
      %c0_131 = arith.constant 0 : index
      %229 = vector.load %arg21[%c0_130, %c0_131] : memref<1x128xf32, #tpu.memory_space<vmem>>, vector<1x128xf32>
      %230 = arith.truncf %197 : vector<24x128xf32> to vector<24x128xbf16>
      %cst_132 = arith.constant dense<0.000000e+00> : vector<24x128xf32>
      %231 = tpu.matmul %230, %228, %cst_132 {dimension_numbers = #tpu.dot_dimension_numbers<[1], [0], [0], [1], [0, 0, 1, 1], [], []>} : vector<24x128xbf16>, vector<128x128xbf16>, vector<24x128xf32> -> vector<24x128xf32>
      %232 = vector.broadcast %229 : vector<1x128xf32> to vector<24x128xf32>
      %233 = arith.addf %231, %232 : vector<24x128xf32>
      %234 = vector.shape_cast %233 : vector<24x128xf32> to vector<24x4x32xf32>
      %235 = tpu.transpose %234, [1, 0, 2] : vector<24x4x32xf32> -> vector<4x24x32xf32>
      %236 = arith.truncf %235 : vector<4x24x32xf32> to vector<4x24x32xbf16>
      %c0_133 = arith.constant 0 : index
      %c0_134 = arith.constant 0 : index
      %c0_135 = arith.constant 0 : index
      %237 = vector.load %arg37[%c0_133, %c0_134, %c0_135] : memref<4x24x32xbf16, #tpu.memory_space<vmem>>, vector<4x24x32xbf16>
      tpu.vector_store %arg37[%c0_133, %c0_134, %c0_135], %236 {strides = array<i32>} : memref<4x24x32xbf16, #tpu.memory_space<vmem>>, vector<4x24x32xbf16>,
    } else {
    }
    %c8_i32 = arith.constant 8 : i32
    %3 = arith.muli %arg1, %c8_i32 : i32
    %4 = tpu.assume_multiple %3, 8 : i32
    %c0 = arith.constant 0 : index
    %5 = arith.index_cast %4 : i32 to index
    %c0_1 = arith.constant 0 : index
    %6 = vector.load %arg2[%c0, %5, %c0_1] : memref<1x16x128xf32, #tpu.memory_space<vmem>>, vector<1x8x128xf32>
    %7 = vector.shape_cast %6 : vector<1x8x128xf32> to vector<8x128xf32>
    %c0_2 = arith.constant 0 : index
    %c0_3 = arith.constant 0 : index
    %c0_4 = arith.constant 0 : index
    %8 = vector.load %arg4[%c0_2, %c0_3, %c0_4] : memref<1x1x16xf32, #tpu.memory_space<vmem>>, vector<1x1x16xf32>
    %9 = vector.shape_cast %8 : vector<1x1x16xf32> to vector<1x16xf32>
    %c0_5 = arith.constant 0 : index
    %c0_6 = arith.constant 0 : index
    %c0_7 = arith.constant 0 : index
    %10 = vector.load %arg5[%c0_5, %c0_6, %c0_7] : memref<1x1x24xf32, #tpu.memory_space<vmem>>, vector<1x1x24xf32>
    %11 = vector.shape_cast %10 : vector<1x1x24xf32> to vector<1x24xf32>
    %12 = tpu.iota {dimensions = array<i32: 0>} : vector<8x16xi32>
    %c8_i32_8 = arith.constant 8 : i32
    %13 = arith.muli %arg1, %c8_i32_8 : i32
    %14 = vector.broadcast %13 : i32 to vector<8x16xi32>
    %15 = arith.addi %12, %14 : vector<8x16xi32>
    %16 = tpu.iota {dimensions = array<i32: 1>} : vector<8x16xi32>
    %17 = arith.cmpi sgt, %16, %15 : vector<8x16xi32>
    %cst = arith.constant 5.000000e-01 : f32
    %18 = vector.broadcast %cst : f32 to vector<1x16xf32>
    %19 = arith.cmpf ogt, %9, %18 : vector<1x16xf32>
    %20 = vector.broadcast %19 : vector<1x16xi1> to vector<8x16xi1>
    %21 = arith.ori %17, %20 : vector<8x16xi1>
    %cst_9 = arith.constant -9.99999984E+17 : f32
    %cst_10 = arith.constant 0.000000e+00 : f32
    %22 = vector.broadcast %cst_9 : f32 to vector<8x16xf32>
    %23 = vector.broadcast %cst_10 : f32 to vector<8x16xf32>
    %24 = arith.select %21, %22, %23 : vector<8x16xi1>, vector<8x16xf32>
    %cst_11 = arith.constant 5.000000e-01 : f32
    %25 = vector.broadcast %cst_11 : f32 to vector<1x24xf32>
    %26 = arith.cmpf ogt, %11, %25 : vector<1x24xf32>
    %cst_12 = arith.constant -9.99999984E+17 : f32
    %cst_13 = arith.constant 0.000000e+00 : f32
    %27 = vector.broadcast %cst_12 : f32 to vector<1x24xf32>
    %28 = vector.broadcast %cst_13 : f32 to vector<1x24xf32>
    %29 = arith.select %26, %27, %28 : vector<1x24xi1>, vector<1x24xf32>
    %30 = arith.truncf %7 : vector<8x128xf32> to vector<8x128xbf16>
    %c0_14 = arith.constant 0 : index
    %c0_15 = arith.constant 0 : index
    %31 = vector.load %arg6[%c0_14, %c0_15] : memref<128x128xbf16, #tpu.memory_space<vmem>>, vector<128x128xbf16>
    %cst_16 = arith.constant dense<0.000000e+00> : vector<8x128xf32>
    %32 = tpu.matmul %30, %31, %cst_16 {dimension_numbers = #tpu.dot_dimension_numbers<[1], [0], [0], [1], [0, 0, 1, 1], [], []>} : vector<8x128xbf16>, vector<128x128xbf16>, vector<8x128xf32> -> vector<8x128xf32>
    %c0_17 = arith.constant 0 : index
    %c0_18 = arith.constant 0 : index
    %33 = vector.load %arg7[%c0_17, %c0_18] : memref<1x128xf32, #tpu.memory_space<vmem>>, vector<1x128xf32>
    %34 = vector.broadcast %33 : vector<1x128xf32> to vector<8x128xf32>
    %35 = arith.addf %32, %34 : vector<8x128xf32>
    %c0_19 = arith.constant 0 : index
    %c0_20 = arith.constant 0 : index
    %c0_21 = arith.constant 0 : index
    %36 = vector.load %arg34[%c0_19, %c0_20, %c0_21] : memref<4x16x32xbf16, #tpu.memory_space<vmem>>, vector<4x16x32xbf16>
    %c0_22 = arith.constant 0 : index
    %c0_23 = arith.constant 0 : index
    %c0_24 = arith.constant 0 : index
    %37 = vector.load %arg35[%c0_22, %c0_23, %c0_24] : memref<4x16x32xbf16, #tpu.memory_space<vmem>>, vector<4x16x32xbf16>
    %c0_25 = arith.constant 0 : index
    %c0_26 = arith.constant 0 : index
    %38 = vector.load %arg12[%c0_25, %c0_26] : memref<128x128xbf16, #tpu.memory_space<vmem>>, vector<128x128xbf16>
    %c0_27 = arith.constant 0 : index
    %c0_28 = arith.constant 0 : index
    %39 = vector.load %arg13[%c0_27, %c0_28] : memref<1x128xf32, #tpu.memory_space<vmem>>, vector<1x128xf32>
    %40 = vector.shape_cast %35 : vector<8x128xf32> to vector<8x4x32xf32>
    %41 = tpu.transpose %40, [1, 0, 2] : vector<8x4x32xf32> -> vector<4x8x32xf32>
    %42 = arith.truncf %41 : vector<4x8x32xf32> to vector<4x8x32xbf16>
    "tpu.trace_start"() <{level = 10 : i32, message = "htd,hsd->hts"}> : () -> ()
    %cst_29 = arith.constant dense<0.000000e+00> : vector<4x8x16xf32>
    %43 = tpu.matmul %42, %36, %cst_29 {dimension_numbers = #tpu.dot_dimension_numbers<[2], [2], [1], [1], [0, 0, 0, 1, 1, 1], [0], [0]>} : vector<4x8x32xbf16>, vector<4x16x32xbf16>, vector<4x8x16xf32> -> vector<4x8x16xf32>
    "tpu.trace_stop"() : () -> ()
    %44 = vector.shape_cast %24 : vector<8x16xf32> to vector<1x8x16xf32>
    %45 = vector.broadcast %44 : vector<1x8x16xf32> to vector<4x8x16xf32>
    %46 = arith.addf %43, %45 : vector<4x8x16xf32>
    %cst_30 = arith.constant dense<0xFF800000> : vector<4x8xf32>
    %47 = vector.multi_reduction <maximumf>, %46, %cst_30 [2] : vector<4x8x16xf32> to vector<4x8xf32>
    %48 = vector.shape_cast %47 : vector<4x8xf32> to vector<4x8x1xf32>
    %49 = vector.broadcast %48 : vector<4x8x1xf32> to vector<4x8x16xf32>
    %50 = arith.subf %46, %49 : vector<4x8x16xf32>
    %51 = math.exp %50 : vector<4x8x16xf32>
    %cst_31 = arith.constant dense<0.000000e+00> : vector<4x8xf32>
    %52 = vector.multi_reduction <add>, %51, %cst_31 [2] : vector<4x8x16xf32> to vector<4x8xf32>
    %53 = vector.shape_cast %52 : vector<4x8xf32> to vector<4x8x1xf32>
    %54 = tpu.reciprocal %53 {approx = true} : vector<4x8x1xf32> -> vector<4x8x1xf32>
    %55 = vector.broadcast %54 : vector<4x8x1xf32> to vector<4x8x16xf32>
    %56 = arith.mulf %51, %55 : vector<4x8x16xf32>
    %57 = arith.truncf %56 : vector<4x8x16xf32> to vector<4x8x16xbf16>
    "tpu.trace_start"() <{level = 10 : i32, message = "hts,hsv->htv"}> : () -> ()
    %cst_32 = arith.constant dense<0.000000e+00> : vector<4x8x32xf32>
    %58 = tpu.matmul %57, %37, %cst_32 {dimension_numbers = #tpu.dot_dimension_numbers<[2], [1], [1], [2], [0, 0, 0, 1, 1, 2], [0], [0]>} : vector<4x8x16xbf16>, vector<4x16x32xbf16>, vector<4x8x32xf32> -> vector<4x8x32xf32>
    "tpu.trace_stop"() : () -> ()
    %59 = tpu.transpose %58, [1, 0, 2] : vector<4x8x32xf32> -> vector<8x4x32xf32>
    %60 = vector.shape_cast %59 : vector<8x4x32xf32> to vector<8x128xf32>
    %61 = arith.truncf %60 : vector<8x128xf32> to vector<8x128xbf16>
    %cst_33 = arith.constant dense<0.000000e+00> : vector<8x128xf32>
    %62 = tpu.matmul %61, %38, %cst_33 {dimension_numbers = #tpu.dot_dimension_numbers<[1], [0], [0], [1], [0, 0, 1, 1], [], []>} : vector<8x128xbf16>, vector<128x128xbf16>, vector<8x128xf32> -> vector<8x128xf32>
    %63 = vector.broadcast %39 : vector<1x128xf32> to vector<8x128xf32>
    %64 = arith.addf %62, %63 : vector<8x128xf32>
    %65 = arith.addf %64, %7 : vector<8x128xf32>
    %c0_34 = arith.constant 0 : index
    %c0_35 = arith.constant 0 : index
    %66 = vector.load %arg14[%c0_34, %c0_35] : memref<1x128xf32, #tpu.memory_space<vmem>>, vector<1x128xf32>
    %c0_36 = arith.constant 0 : index
    %c0_37 = arith.constant 0 : index
    %67 = vector.load %arg15[%c0_36, %c0_37] : memref<1x128xf32, #tpu.memory_space<vmem>>, vector<1x128xf32>
    %cst_38 = arith.constant dense<0.000000e+00> : vector<8xf32>
    %68 = vector.multi_reduction <add>, %65, %cst_38 [1] : vector<8x128xf32> to vector<8xf32>
    %69 = vector.shape_cast %68 : vector<8xf32> to vector<8x1xf32>
    %cst_39 = arith.constant 1.280000e+02 : f32
    %70 = vector.broadcast %cst_39 : f32 to vector<8x1xf32>
    %71 = arith.divf %69, %70 : vector<8x1xf32>
    %72 = vector.broadcast %71 : vector<8x1xf32> to vector<8x128xf32>
    %73 = arith.subf %65, %72 : vector<8x128xf32>
    %74 = arith.mulf %73, %73 : vector<8x128xf32>
    %cst_40 = arith.constant dense<0.000000e+00> : vector<8xf32>
    %75 = vector.multi_reduction <add>, %74, %cst_40 [1] : vector<8x128xf32> to vector<8xf32>
    %76 = vector.shape_cast %75 : vector<8xf32> to vector<8x1xf32>
    %cst_41 = arith.constant 1.270000e+02 : f32
    %77 = vector.broadcast %cst_41 : f32 to vector<8x1xf32>
    %78 = arith.divf %76, %77 : vector<8x1xf32>
    %79 = math.sqrt %78 : vector<8x1xf32>
    %cst_42 = arith.constant 9.99999997E-7 : f32
    %80 = vector.broadcast %cst_42 : f32 to vector<8x1xf32>
    %81 = arith.addf %79, %80 : vector<8x1xf32>
    %82 = tpu.reciprocal %81 {approx = true} : vector<8x1xf32> -> vector<8x1xf32>
    %83 = vector.broadcast %66 : vector<1x128xf32> to vector<8x128xf32>
    %84 = arith.mulf %83, %73 : vector<8x128xf32>
    %85 = vector.broadcast %82 : vector<8x1xf32> to vector<8x128xf32>
    %86 = arith.mulf %84, %85 : vector<8x128xf32>
    %87 = vector.broadcast %67 : vector<1x128xf32> to vector<8x128xf32>
    %88 = arith.addf %86, %87 : vector<8x128xf32>
    %89 = arith.truncf %88 : vector<8x128xf32> to vector<8x128xbf16>
    %c0_43 = arith.constant 0 : index
    %c0_44 = arith.constant 0 : index
    %90 = vector.load %arg16[%c0_43, %c0_44] : memref<128x128xbf16, #tpu.memory_space<vmem>>, vector<128x128xbf16>
    %cst_45 = arith.constant dense<0.000000e+00> : vector<8x128xf32>
    %91 = tpu.matmul %89, %90, %cst_45 {dimension_numbers = #tpu.dot_dimension_numbers<[1], [0], [0], [1], [0, 0, 1, 1], [], []>} : vector<8x128xbf16>, vector<128x128xbf16>, vector<8x128xf32> -> vector<8x128xf32>
    %c0_46 = arith.constant 0 : index
    %c0_47 = arith.constant 0 : index
    %92 = vector.load %arg17[%c0_46, %c0_47] : memref<1x128xf32, #tpu.memory_space<vmem>>, vector<1x128xf32>
    %93 = vector.broadcast %92 : vector<1x128xf32> to vector<8x128xf32>
    %94 = arith.addf %91, %93 : vector<8x128xf32>
    %c0_48 = arith.constant 0 : index
    %c0_49 = arith.constant 0 : index
    %c0_50 = arith.constant 0 : index
    %95 = vector.load %arg36[%c0_48, %c0_49, %c0_50] : memref<4x24x32xbf16, #tpu.memory_space<vmem>>, vector<4x24x32xbf16>
    %c0_51 = arith.constant 0 : index
    %c0_52 = arith.constant 0 : index
    %c0_53 = arith.constant 0 : index
    %96 = vector.load %arg37[%c0_51, %c0_52, %c0_53] : memref<4x24x32xbf16, #tpu.memory_space<vmem>>, vector<4x24x32xbf16>
    %c0_54 = arith.constant 0 : index
    %c0_55 = arith.constant 0 : index
    %97 = vector.load %arg22[%c0_54, %c0_55] : memref<128x128xbf16, #tpu.memory_space<vmem>>, vector<128x128xbf16>
    %c0_56 = arith.constant 0 : index
    %c0_57 = arith.constant 0 : index
    %98 = vector.load %arg23[%c0_56, %c0_57] : memref<1x128xf32, #tpu.memory_space<vmem>>, vector<1x128xf32>
    %99 = vector.shape_cast %94 : vector<8x128xf32> to vector<8x4x32xf32>
    %100 = tpu.transpose %99, [1, 0, 2] : vector<8x4x32xf32> -> vector<4x8x32xf32>
    %101 = arith.truncf %100 : vector<4x8x32xf32> to vector<4x8x32xbf16>
    "tpu.trace_start"() <{level = 10 : i32, message = "htd,hsd->hts"}> : () -> ()
    %cst_58 = arith.constant dense<0.000000e+00> : vector<4x8x24xf32>
    %102 = tpu.matmul %101, %95, %cst_58 {dimension_numbers = #tpu.dot_dimension_numbers<[2], [2], [1], [1], [0, 0, 0, 1, 1, 1], [0], [0]>} : vector<4x8x32xbf16>, vector<4x24x32xbf16>, vector<4x8x24xf32> -> vector<4x8x24xf32>
    "tpu.trace_stop"() : () -> ()
    %103 = vector.shape_cast %29 : vector<1x24xf32> to vector<1x1x24xf32>
    %104 = vector.broadcast %103 : vector<1x1x24xf32> to vector<4x8x24xf32>
    %105 = arith.addf %102, %104 : vector<4x8x24xf32>
    %cst_59 = arith.constant dense<0xFF800000> : vector<4x8xf32>
    %106 = vector.multi_reduction <maximumf>, %105, %cst_59 [2] : vector<4x8x24xf32> to vector<4x8xf32>
    %107 = vector.shape_cast %106 : vector<4x8xf32> to vector<4x8x1xf32>
    %108 = vector.broadcast %107 : vector<4x8x1xf32> to vector<4x8x24xf32>
    %109 = arith.subf %105, %108 : vector<4x8x24xf32>
    %110 = math.exp %109 : vector<4x8x24xf32>
    %cst_60 = arith.constant dense<0.000000e+00> : vector<4x8xf32>
    %111 = vector.multi_reduction <add>, %110, %cst_60 [2] : vector<4x8x24xf32> to vector<4x8xf32>
    %112 = vector.shape_cast %111 : vector<4x8xf32> to vector<4x8x1xf32>
    %113 = tpu.reciprocal %112 {approx = true} : vector<4x8x1xf32> -> vector<4x8x1xf32>
    %114 = vector.broadcast %113 : vector<4x8x1xf32> to vector<4x8x24xf32>
    %115 = arith.mulf %110, %114 : vector<4x8x24xf32>
    %116 = arith.truncf %115 : vector<4x8x24xf32> to vector<4x8x24xbf16>
    "tpu.trace_start"() <{level = 10 : i32, message = "hts,hsv->htv"}> : () -> ()
    %cst_61 = arith.constant dense<0.000000e+00> : vector<4x8x32xf32>
    %117 = tpu.matmul %116, %96, %cst_61 {dimension_numbers = #tpu.dot_dimension_numbers<[2], [1], [1], [2], [0, 0, 0, 1, 1, 2], [0], [0]>} : vector<4x8x24xbf16>, vector<4x24x32xbf16>, vector<4x8x32xf32> -> vector<4x8x32xf32>
    "tpu.trace_stop"() : () -> ()
    %118 = tpu.transpose %117, [1, 0, 2] : vector<4x8x32xf32> -> vector<8x4x32xf32>
    %119 = vector.shape_cast %118 : vector<8x4x32xf32> to vector<8x128xf32>
    %120 = arith.truncf %119 : vector<8x128xf32> to vector<8x128xbf16>
    %cst_62 = arith.constant dense<0.000000e+00> : vector<8x128xf32>
    %121 = tpu.matmul %120, %97, %cst_62 {dimension_numbers = #tpu.dot_dimension_numbers<[1], [0], [0], [1], [0, 0, 1, 1], [], []>} : vector<8x128xbf16>, vector<128x128xbf16>, vector<8x128xf32> -> vector<8x128xf32>
    %122 = vector.broadcast %98 : vector<1x128xf32> to vector<8x128xf32>
    %123 = arith.addf %121, %122 : vector<8x128xf32>
    %124 = vector.extract_strided_slice %115 {offsets = [0, 0, 0], sizes = [1, 8, 24], strides = [1, 1, 1]} : vector<4x8x24xf32> to vector<1x8x24xf32>
    %125 = vector.shape_cast %124 : vector<1x8x24xf32> to vector<8x24xf32>
    %126 = arith.addf %123, %88 : vector<8x128xf32>
    %c0_63 = arith.constant 0 : index
    %c0_64 = arith.constant 0 : index
    %127 = vector.load %arg24[%c0_63, %c0_64] : memref<1x128xf32, #tpu.memory_space<vmem>>, vector<1x128xf32>
    %c0_65 = arith.constant 0 : index
    %c0_66 = arith.constant 0 : index
    %128 = vector.load %arg25[%c0_65, %c0_66] : memref<1x128xf32, #tpu.memory_space<vmem>>, vector<1x128xf32>
    %cst_67 = arith.constant dense<0.000000e+00> : vector<8xf32>
    %129 = vector.multi_reduction <add>, %126, %cst_67 [1] : vector<8x128xf32> to vector<8xf32>
    %130 = vector.shape_cast %129 : vector<8xf32> to vector<8x1xf32>
    %cst_68 = arith.constant 1.280000e+02 : f32
    %131 = vector.broadcast %cst_68 : f32 to vector<8x1xf32>
    %132 = arith.divf %130, %131 : vector<8x1xf32>
    %133 = vector.broadcast %132 : vector<8x1xf32> to vector<8x128xf32>
    %134 = arith.subf %126, %133 : vector<8x128xf32>
    %135 = arith.mulf %134, %134 : vector<8x128xf32>
    %cst_69 = arith.constant dense<0.000000e+00> : vector<8xf32>
    %136 = vector.multi_reduction <add>, %135, %cst_69 [1] : vector<8x128xf32> to vector<8xf32>
    %137 = vector.shape_cast %136 : vector<8xf32> to vector<8x1xf32>
    %cst_70 = arith.constant 1.270000e+02 : f32
    %138 = vector.broadcast %cst_70 : f32 to vector<8x1xf32>
    %139 = arith.divf %137, %138 : vector<8x1xf32>
    %140 = math.sqrt %139 : vector<8x1xf32>
    %cst_71 = arith.constant 9.99999997E-7 : f32
    %141 = vector.broadcast %cst_71 : f32 to vector<8x1xf32>
    %142 = arith.addf %140, %141 : vector<8x1xf32>
    %143 = tpu.reciprocal %142 {approx = true} : vector<8x1xf32> -> vector<8x1xf32>
    %144 = vector.broadcast %127 : vector<1x128xf32> to vector<8x128xf32>
    %145 = arith.mulf %144, %134 : vector<8x128xf32>
    %146 = vector.broadcast %143 : vector<8x1xf32> to vector<8x128xf32>
    %147 = arith.mulf %145, %146 : vector<8x128xf32>
    %148 = vector.broadcast %128 : vector<1x128xf32> to vector<8x128xf32>
    %149 = arith.addf %147, %148 : vector<8x128xf32>
    %c0_72 = arith.constant 0 : index
    %c0_73 = arith.constant 0 : index
    %150 = vector.load %arg26[%c0_72, %c0_73] : memref<1x128xf32, #tpu.memory_space<vmem>>, vector<1x128xf32>
    %c0_74 = arith.constant 0 : index
    %c0_75 = arith.constant 0 : index
    %151 = vector.load %arg27[%c0_74, %c0_75] : memref<1x128xf32, #tpu.memory_space<vmem>>, vector<1x128xf32>
    %cst_76 = arith.constant dense<0.000000e+00> : vector<8xf32>
    %152 = vector.multi_reduction <add>, %149, %cst_76 [1] : vector<8x128xf32> to vector<8xf32>
    %153 = vector.shape_cast %152 : vector<8xf32> to vector<8x1xf32>
    %cst_77 = arith.constant 1.280000e+02 : f32
    %154 = vector.broadcast %cst_77 : f32 to vector<8x1xf32>
    %155 = arith.divf %153, %154 : vector<8x1xf32>
    %156 = vector.broadcast %155 : vector<8x1xf32> to vector<8x128xf32>
    %157 = arith.subf %149, %156 : vector<8x128xf32>
    %158 = arith.mulf %157, %157 : vector<8x128xf32>
    %cst_78 = arith.constant dense<0.000000e+00> : vector<8xf32>
    %159 = vector.multi_reduction <add>, %158, %cst_78 [1] : vector<8x128xf32> to vector<8xf32>
    %160 = vector.shape_cast %159 : vector<8xf32> to vector<8x1xf32>
    %cst_79 = arith.constant 1.270000e+02 : f32
    %161 = vector.broadcast %cst_79 : f32 to vector<8x1xf32>
    %162 = arith.divf %160, %161 : vector<8x1xf32>
    %163 = math.sqrt %162 : vector<8x1xf32>
    %cst_80 = arith.constant 9.99999997E-7 : f32
    %164 = vector.broadcast %cst_80 : f32 to vector<8x1xf32>
    %165 = arith.addf %163, %164 : vector<8x1xf32>
    %166 = tpu.reciprocal %165 {approx = true} : vector<8x1xf32> -> vector<8x1xf32>
    %167 = vector.broadcast %150 : vector<1x128xf32> to vector<8x128xf32>
    %168 = arith.mulf %167, %157 : vector<8x128xf32>
    %169 = vector.broadcast %166 : vector<8x1xf32> to vector<8x128xf32>
    %170 = arith.mulf %168, %169 : vector<8x128xf32>
    %171 = vector.broadcast %151 : vector<1x128xf32> to vector<8x128xf32>
    %172 = arith.addf %170, %171 : vector<8x128xf32>
    %173 = arith.truncf %172 : vector<8x128xf32> to vector<8x128xbf16>
    %c0_81 = arith.constant 0 : index
    %c0_82 = arith.constant 0 : index
    %174 = vector.load %arg28[%c0_81, %c0_82] : memref<128x256xbf16, #tpu.memory_space<vmem>>, vector<128x256xbf16>
    %cst_83 = arith.constant dense<0.000000e+00> : vector<8x256xf32>
    %175 = tpu.matmul %173, %174, %cst_83 {dimension_numbers = #tpu.dot_dimension_numbers<[1], [0], [0], [1], [0, 0, 1, 1], [], []>} : vector<8x128xbf16>, vector<128x256xbf16>, vector<8x256xf32> -> vector<8x256xf32>
    %c0_84 = arith.constant 0 : index
    %c0_85 = arith.constant 0 : index
    %176 = vector.load %arg29[%c0_84, %c0_85] : memref<1x256xf32, #tpu.memory_space<vmem>>, vector<1x256xf32>
    %177 = vector.broadcast %176 : vector<1x256xf32> to vector<8x256xf32>
    %178 = arith.addf %175, %177 : vector<8x256xf32>
    %cst_86 = arith.constant 0.000000e+00 : f32
    %179 = vector.broadcast %cst_86 : f32 to vector<8x256xf32>
    %180 = arith.maximumf %178, %179 : vector<8x256xf32>
    %181 = arith.truncf %180 : vector<8x256xf32> to vector<8x256xbf16>
    %c0_87 = arith.constant 0 : index
    %c0_88 = arith.constant 0 : index
    %182 = vector.load %arg30[%c0_87, %c0_88] : memref<256x128xbf16, #tpu.memory_space<vmem>>, vector<256x128xbf16>
    %cst_89 = arith.constant dense<0.000000e+00> : vector<8x128xf32>
    %183 = tpu.matmul %181, %182, %cst_89 {dimension_numbers = #tpu.dot_dimension_numbers<[1], [0], [0], [1], [0, 0, 1, 1], [], []>} : vector<8x256xbf16>, vector<256x128xbf16>, vector<8x128xf32> -> vector<8x128xf32>
    %c0_90 = arith.constant 0 : index
    %c0_91 = arith.constant 0 : index
    %184 = vector.load %arg31[%c0_90, %c0_91] : memref<1x128xf32, #tpu.memory_space<vmem>>, vector<1x128xf32>
    %185 = vector.broadcast %184 : vector<1x128xf32> to vector<8x128xf32>
    %186 = arith.addf %183, %185 : vector<8x128xf32>
    %187 = arith.addf %186, %149 : vector<8x128xf32>
    %c0_92 = arith.constant 0 : index
    %c0_93 = arith.constant 0 : index
    %c0_94 = arith.constant 0 : index
    %188 = vector.load %arg32[%c0_92, %c0_93, %c0_94] : memref<1x8x128xf32, #tpu.memory_space<vmem>>, vector<1x8x128xf32>
    %189 = vector.shape_cast %188 : vector<1x8x128xf32> to vector<8x128xf32>
    %190 = vector.shape_cast %187 : vector<8x128xf32> to vector<1x8x128xf32>
    tpu.vector_store %arg32[%c0_92, %c0_93, %c0_94], %190 {strides = array<i32>} : memref<1x8x128xf32, #tpu.memory_space<vmem>>, vector<1x8x128xf32>,
    %c0_95 = arith.constant 0 : index
    %c0_96 = arith.constant 0 : index
    %c0_97 = arith.constant 0 : index
    %191 = vector.load %arg33[%c0_95, %c0_96, %c0_97] : memref<1x8x24xf32, #tpu.memory_space<vmem>>, vector<1x8x24xf32>
    %192 = vector.shape_cast %191 : vector<1x8x24xf32> to vector<8x24xf32>
    %193 = vector.shape_cast %125 : vector<8x24xf32> to vector<1x8x24xf32>
    tpu.vector_store %arg33[%c0_95, %c0_96, %c0_97], %193 {strides = array<i32>} : memref<1x8x24xf32, #tpu.memory_space<vmem>>, vector<1x8x24xf32>,
    return
  }
  func.func @transform_0(%arg0: i32, %arg1: i32) -> (i32, i32, i32) {
    %c0_i32 = arith.constant 0 : i32
    %c0_i32_0 = arith.constant 0 : i32
    %c0_i32_1 = arith.constant 0 : i32
    return %arg0, %c0_i32, %c0_i32_0 : i32, i32, i32
  }
  func.func @transform_1(%arg0: i32, %arg1: i32) -> (i32, i32, i32) {
    %c0_i32 = arith.constant 0 : i32
    %c0_i32_0 = arith.constant 0 : i32
    %c0_i32_1 = arith.constant 0 : i32
    return %arg0, %c0_i32, %c0_i32_0 : i32, i32, i32
  }
  func.func @transform_2(%arg0: i32, %arg1: i32) -> (i32, i32, i32) {
    %c0_i32 = arith.constant 0 : i32
    %c0_i32_0 = arith.constant 0 : i32
    %c0_i32_1 = arith.constant 0 : i32
    return %arg0, %c0_i32, %c0_i32_0 : i32, i32, i32
  }
  func.func @transform_3(%arg0: i32, %arg1: i32) -> (i32, i32, i32) {
    %c0_i32 = arith.constant 0 : i32
    %c0_i32_0 = arith.constant 0 : i32
    %c0_i32_1 = arith.constant 0 : i32
    return %arg0, %c0_i32, %c0_i32_0 : i32, i32, i32
  }
  func.func @transform_4(%arg0: i32, %arg1: i32) -> (i32, i32) {
    %c0_i32 = arith.constant 0 : i32
    %c0_i32_0 = arith.constant 0 : i32
    %c0_i32_1 = arith.constant 0 : i32
    return %c0_i32, %c0_i32_0 : i32, i32
  }
  func.func @transform_5(%arg0: i32, %arg1: i32) -> (i32, i32) {
    %c0_i32 = arith.constant 0 : i32
    %c0_i32_0 = arith.constant 0 : i32
    %c0_i32_1 = arith.constant 0 : i32
    return %c0_i32, %c0_i32_0 : i32, i32
  }
  func.func @transform_6(%arg0: i32, %arg1: i32) -> (i32, i32) {
    %c0_i32 = arith.constant 0 : i32
    %c0_i32_0 = arith.constant 0 : i32
    %c0_i32_1 = arith.constant 0 : i32
    return %c0_i32, %c0_i32_0 : i32, i32
  }
  func.func @transform_7(%arg0: i32, %arg1: i32) -> (i32, i32) {
    %c0_i32 = arith.constant 0 : i32
    %c0_i32_0 = arith.constant 0 : i32
    %c0_i32_1 = arith.constant 0 : i32
    return %c0_i32, %c0_i32_0 : i32, i32
  }
  func.func @transform_8(%arg0: i32, %arg1: i32) -> (i32, i32) {
    %c0_i32 = arith.constant 0 : i32
    %c0_i32_0 = arith.constant 0 : i32
    %c0_i32_1 = arith.constant 0 : i32
    return %c0_i32, %c0_i32_0 : i32, i32
  }
  func.func @transform_9(%arg0: i32, %arg1: i32) -> (i32, i32) {
    %c0_i32 = arith.constant 0 : i32
    %c0_i32_0 = arith.constant 0 : i32
    %c0_i32_1 = arith.constant 0 : i32
    return %c0_i32, %c0_i32_0 : i32, i32
  }
  func.func @transform_10(%arg0: i32, %arg1: i32) -> (i32, i32) {
    %c0_i32 = arith.constant 0 : i32
    %c0_i32_0 = arith.constant 0 : i32
    %c0_i32_1 = arith.constant 0 : i32
    return %c0_i32, %c0_i32_0 : i32, i32
  }
  func.func @transform_11(%arg0: i32, %arg1: i32) -> (i32, i32) {
    %c0_i32 = arith.constant 0 : i32
    %c0_i32_0 = arith.constant 0 : i32
    %c0_i32_1 = arith.constant 0 : i32
    return %c0_i32, %c0_i32_0 : i32, i32
  }
  func.func @transform_12(%arg0: i32, %arg1: i32) -> (i32, i32) {
    %c0_i32 = arith.constant 0 : i32
    %c0_i32_0 = arith.constant 0 : i32
    %c0_i32_1 = arith.constant 0 : i32
    return %c0_i32, %c0_i32_0 : i32, i32
  }
  func.func @transform_13(%arg0: i32, %arg1: i32) -> (i32, i32) {
    %c0_i32 = arith.constant 0 : i32
    %c0_i32_0 = arith.constant 0 : i32
    %c0_i32_1 = arith.constant 0 : i32
    return %c0_i32, %c0_i32_0 : i32, i32
  }
  func.func @transform_14(%arg0: i32, %arg1: i32) -> (i32, i32) {
    %c0_i32 = arith.constant 0 : i32
    %c0_i32_0 = arith.constant 0 : i32
    %c0_i32_1 = arith.constant 0 : i32
    return %c0_i32, %c0_i32_0 : i32, i32
  }
  func.func @transform_15(%arg0: i32, %arg1: i32) -> (i32, i32) {
    %c0_i32 = arith.constant 0 : i32
    %c0_i32_0 = arith.constant 0 : i32
    %c0_i32_1 = arith.constant 0 : i32
    return %c0_i32, %c0_i32_0 : i32, i32
  }
  func.func @transform_16(%arg0: i32, %arg1: i32) -> (i32, i32) {
    %c0_i32 = arith.constant 0 : i32
    %c0_i32_0 = arith.constant 0 : i32
    %c0_i32_1 = arith.constant 0 : i32
    return %c0_i32, %c0_i32_0 : i32, i32
  }
  func.func @transform_17(%arg0: i32, %arg1: i32) -> (i32, i32) {
    %c0_i32 = arith.constant 0 : i32
    %c0_i32_0 = arith.constant 0 : i32
    %c0_i32_1 = arith.constant 0 : i32
    return %c0_i32, %c0_i32_0 : i32, i32
  }
  func.func @transform_18(%arg0: i32, %arg1: i32) -> (i32, i32) {
    %c0_i32 = arith.constant 0 : i32
    %c0_i32_0 = arith.constant 0 : i32
    %c0_i32_1 = arith.constant 0 : i32
    return %c0_i32, %c0_i32_0 : i32, i32
  }
  func.func @transform_19(%arg0: i32, %arg1: i32) -> (i32, i32) {
    %c0_i32 = arith.constant 0 : i32
    %c0_i32_0 = arith.constant 0 : i32
    %c0_i32_1 = arith.constant 0 : i32
    return %c0_i32, %c0_i32_0 : i32, i32
  }
  func.func @transform_20(%arg0: i32, %arg1: i32) -> (i32, i32) {
    %c0_i32 = arith.constant 0 : i32
    %c0_i32_0 = arith.constant 0 : i32
    %c0_i32_1 = arith.constant 0 : i32
    return %c0_i32, %c0_i32_0 : i32, i32
  }
  func.func @transform_21(%arg0: i32, %arg1: i32) -> (i32, i32) {
    %c0_i32 = arith.constant 0 : i32
    %c0_i32_0 = arith.constant 0 : i32
    %c0_i32_1 = arith.constant 0 : i32
    return %c0_i32, %c0_i32_0 : i32, i32
  }
  func.func @transform_22(%arg0: i32, %arg1: i32) -> (i32, i32) {
    %c0_i32 = arith.constant 0 : i32
    %c0_i32_0 = arith.constant 0 : i32
    %c0_i32_1 = arith.constant 0 : i32
    return %c0_i32, %c0_i32_0 : i32, i32
  }
  func.func @transform_23(%arg0: i32, %arg1: i32) -> (i32, i32) {
    %c0_i32 = arith.constant 0 : i32
    %c0_i32_0 = arith.constant 0 : i32
    %c0_i32_1 = arith.constant 0 : i32
    return %c0_i32, %c0_i32_0 : i32, i32
  }
  func.func @transform_24(%arg0: i32, %arg1: i32) -> (i32, i32) {
    %c0_i32 = arith.constant 0 : i32
    %c0_i32_0 = arith.constant 0 : i32
    %c0_i32_1 = arith.constant 0 : i32
    return %c0_i32, %c0_i32_0 : i32, i32
  }
  func.func @transform_25(%arg0: i32, %arg1: i32) -> (i32, i32) {
    %c0_i32 = arith.constant 0 : i32
    %c0_i32_0 = arith.constant 0 : i32
    %c0_i32_1 = arith.constant 0 : i32
    return %c0_i32, %c0_i32_0 : i32, i32
  }
  func.func @transform_26(%arg0: i32, %arg1: i32) -> (i32, i32) {
    %c0_i32 = arith.constant 0 : i32
    %c0_i32_0 = arith.constant 0 : i32
    %c0_i32_1 = arith.constant 0 : i32
    return %c0_i32, %c0_i32_0 : i32, i32
  }
  func.func @transform_27(%arg0: i32, %arg1: i32) -> (i32, i32) {
    %c0_i32 = arith.constant 0 : i32
    %c0_i32_0 = arith.constant 0 : i32
    %c0_i32_1 = arith.constant 0 : i32
    return %c0_i32, %c0_i32_0 : i32, i32
  }
  func.func @transform_28(%arg0: i32, %arg1: i32) -> (i32, i32) {
    %c0_i32 = arith.constant 0 : i32
    %c0_i32_0 = arith.constant 0 : i32
    %c0_i32_1 = arith.constant 0 : i32
    return %c0_i32, %c0_i32_0 : i32, i32
  }
  func.func @transform_29(%arg0: i32, %arg1: i32) -> (i32, i32) {
    %c0_i32 = arith.constant 0 : i32
    %c0_i32_0 = arith.constant 0 : i32
    %c0_i32_1 = arith.constant 0 : i32
    return %c0_i32, %c0_i32_0 : i32, i32
  }
  func.func @transform_30(%arg0: i32, %arg1: i32) -> (i32, i32, i32) {
    %c0_i32 = arith.constant 0 : i32
    %c0_i32_0 = arith.constant 0 : i32
    return %arg0, %arg1, %c0_i32 : i32, i32, i32
  }
  func.func @transform_31(%arg0: i32, %arg1: i32) -> (i32, i32, i32) {
    %c0_i32 = arith.constant 0 : i32
    %c0_i32_0 = arith.constant 0 : i32
    return %arg0, %arg1, %c0_i32 : i32, i32, i32
  }
}

</mosaic_0001>

<bundles_post_ra>
// kernel: tpu_custom_call.1
= control target key start
LH: loop header
LB: loop body
LE: loop exit
PB: predicated region body
PF: predicated region fallthrough
CT: control target
= control target key end

     0   :  { %s8142_s6 = smov 1   ;;  %s8143_s10 = smov 2   ;;  %s9636_s0 = inlined_call_operand.smem [shape: u32[32], index: -1, kind: input, shape index: {}] }
   0x1   :  { %s8221_s5 = sld [smem:[%s9636_s0]]   ;;  %s8144_s14 = smov 3  }
   0x2   :  { %s8226_s9 = sld [smem:[%s9636_s0 + %s8142_s6]]   ;;  %s8145_s18 = smov 4  }
   0x3   :  { %s8231_s13 = sld [smem:[%s9636_s0 + %s8143_s10]]   ;;  %s8146_s22 = smov 5  }
   0x4   :  { %s8236_s17 = sld [smem:[%s9636_s0 + %s8144_s14]]   ;;  %s8147_s26 = smov 6  }
   0x5   :  { %s8241_s21 = sld [smem:[%s9636_s0 + %s8145_s18]]   ;;  %s8148_s30 = smov 7  }
   0x6   :  { %s8246_s25 = sld [smem:[%s9636_s0 + %s8146_s22]]   ;;  %s8149_s4 = smov 8  }
   0x7   :  { %9679 = sst [smem:[#allocation52_spill]] %s8221_s5  ;;  %s8150_s10 = smov 9  }
   0x8   :  { %9680 = sst [smem:[#allocation53_spill]] %s8226_s9  ;;  %s8151_s15 = smov 10  }
   0x9   :  { %9681 = sst [smem:[#allocation54_spill]] %s8231_s13  ;;  %s8152_s20 = smov 11  }
   0xa   :  { %9682 = sst [smem:[#allocation55_spill]] %s8236_s17  ;;  %s8154_s1 = smov 13  }
   0xb   :  { %9683 = sst [smem:[#allocation56_spill]] %s8241_s21  ;;  %s8155_s7 = smov 14  }
   0xc   :  { %s8251_s29 = sld [smem:[%s9636_s0 + %s8147_s26]]   ;;  %s8153_s26 = smov 12  }
   0xd   :  { %s8256_s3 = sld [smem:[%s9636_s0 + %s8148_s30]]   ;;  %s8157_s22 = smov 16  }
   0xe   :  { %s8261_s8 = sld [smem:[%s9636_s0 + %s8149_s4]]   ;;  %s8158_s28 = smov 17  }
   0xf   :  { %s8266_s14 = sld [smem:[%s9636_s0 + %s8150_s10]]  }
  0x10   :  { %s8271_s19 = sld [smem:[%s9636_s0 + %s8151_s15]]   ;;  %s8156_s15 = smov 15  }
  0x11   :  { %s8276_s24 = sld [smem:[%s9636_s0 + %s8152_s20]]  }
  0x12   :  { %s8281_s30 = sld [smem:[%s9636_s0 + %s8153_s26]]  }
  0x13   :  { %9684 = sst [smem:[#allocation57_spill]] %s8256_s3 }
  0x14   :  { %9685 = sst [smem:[#allocation58_spill]] %s8261_s8 }
  0x15   :  { %9686 = sst [smem:[#allocation59_spill]] %s8266_s14 }
  0x16   :  { %9687 = sst [smem:[#allocation60_spill]] %s8271_s19 }
  0x17   :  { %9688 = sst [smem:[#allocation61_spill]] %s8276_s24 }
  0x18   :  { %s8286_s6 = sld [smem:[%s9636_s0 + %s8154_s1]]  }
  0x19   :  { %s8291_s12 = sld [smem:[%s9636_s0 + %s8155_s7]]   ;;  %s8159_s7 = smov 18  }
  0x1a   :  { %s8296_s20 = sld [smem:[%s9636_s0 + %s8156_s15]]   ;;  %s8160_s15 = smov 19  }
  0x1b   :  { %s8301_s27 = sld [smem:[%s9636_s0 + %s8157_s22]]   ;;  %s8161_s22 = smov 20  }
  0x1c   :  { %s8306_s4 = sld [smem:[%s9636_s0 + %s8158_s28]]   ;;  %s8162_s28 = smov 21  }
  0x1d   :  { %s8311_s17 = sld [smem:[%s9636_s0 + %s8159_s7]]   ;;  %s8163_s7 = smov 22  }
  0x1e   :  { %9689 = sst [smem:[#allocation62_spill]] %s8286_s6 }
  0x1f   :  { %9690 = sst [smem:[#allocation63_spill]] %s8291_s12 }
  0x20   :  { %9691 = sst [smem:[#allocation64_spill]] %s8296_s20 }
  0x21   :  { %9692 = sst [smem:[#allocation65_spill]] %s8301_s27 }
  0x22   :  { %9693 = sst [smem:[#allocation66_spill]] %s8306_s4 }
  0x23   :  { %9694 = sst [smem:[#allocation67_spill]] %s8311_s17 }
  0x24   :  { %s8316_s13 = sld [smem:[%s9636_s0 + %s8160_s15]]   ;;  %s8164_s15 = smov 23  }
  0x25   :  { %s8321_s9 = sld [smem:[%s9636_s0 + %s8161_s22]]   ;;  %s8165_s22 = smov 24  }
  0x26   :  { %s8326_s5 = sld [smem:[%s9636_s0 + %s8162_s28]]   ;;  %s8166_s28 = smov 25  }
  0x27   :  { %s8331_s17 = sld [smem:[%s9636_s0 + %s8163_s7]]   ;;  %s8167_s7 = smov 26  }
  0x2a   :  { %9695 = sst [smem:[#allocation68_spill]] %s8316_s13 }
  0x2b   :  { %9696 = sst [smem:[#allocation69_spill]] %s8321_s9 }
  0x2c   :  { %9697 = sst [smem:[#allocation70_spill]] %s8326_s5 }
  0x2d   :  { %9698 = sst [smem:[#allocation71_spill]] %s8331_s17 }
  0x2e   :  { %s8336_s13 = sld [smem:[%s9636_s0 + %s8164_s15]]   ;;  %s8168_s15 = smov 27  }
  0x2f   :  { %s8341_s9 = sld [smem:[%s9636_s0 + %s8165_s22]]   ;;  %s8169_s22 = smov 28  }
  0x30   :  { %s8346_s5 = sld [smem:[%s9636_s0 + %s8166_s28]]   ;;  %s8170_s28 = smov 29  }
  0x31   :  { %s8351_s17 = sld [smem:[%s9636_s0 + %s8167_s7]]   ;;  %s8171_s7 = smov 30  }
  0x32   :  { %s8371_s27 = sld [smem:[%s9636_s0 + %s8171_s7]]  }
  0x34   :  { %9699 = sst [smem:[#allocation72_spill]] %s8336_s13 }
  0x35   :  { %9700 = sst [smem:[#allocation73_spill]] %s8341_s9 }
  0x36   :  { %9701 = sst [smem:[#allocation74_spill]] %s8346_s5 }
  0x37   :  { %9702 = sst [smem:[#allocation75_spill]] %s8351_s17 }
  0x38   :  { %s8356_s13 = sld [smem:[%s9636_s0 + %s8168_s15]]   ;;  %s8172_s15 = smov 31  }
  0x39   :  { %s8361_s9 = sld [smem:[%s9636_s0 + %s8169_s22]]  }
  0x3a   :  { %s8366_s5 = sld [smem:[%s9636_s0 + %s8170_s28]]  }
  0x3b   :  { %9706 = sst [smem:[#allocation79_spill]] %s8371_s27 }
  0x3e   :  { %9703 = sst [smem:[#allocation76_spill]] %s8356_s13 }
  0x3f   :  { %9704 = sst [smem:[#allocation77_spill]] %s8361_s9 }
  0x40   :  { %9705 = sst [smem:[#allocation78_spill]] %s8366_s5 }
  0x41   :  { %s8376_s13 = sld [smem:[%s9636_s0 + %s8172_s15]]  }
  0x47   :  { %9707 = sst [smem:[#allocation80_spill]] %s8376_s13 }
  0x48   :  { %69 = vsyncpa [#allocation7], 0 }
  0x49   :  { %71 = vsyncpa [#allocation7 + $0x1], 0 }
  0x4a   :  { %72 = vsyncpa [#allocation10], 0 }
  0x4b   :  { %74 = vsyncpa [#allocation10 + $0x1], 0 }
  0x4c   :  { %75 = vsyncpa [#allocation13], 0 }
  0x4d   :  { %76 = vsyncpa [#allocation16], 0 }
  0x4e   :  { %77 = vsyncpa [#allocation19], 0 }
  0x4f   :  { %78 = vsyncpa [#allocation22], 0 }
  0x50   :  { %79 = vsyncpa [#allocation25], 0 }
  0x51   :  { %80 = vsyncpa [#allocation28], 0 }
  0x52   :  { %81 = vsyncpa [#allocation31], 0 }
  0x53   :  { %82 = vsyncpa [#allocation34], 0 }
  0x54   :  { %83 = vsyncpa [#allocation8], 0 }
  0x55   :  { %85 = vsyncpa [#allocation8 + $0x1], 0 }
  0x56   :  { %86 = vsyncpa [#allocation38], 0 }
  0x57   :  { %88 = vsyncpa [#allocation38 + $0x1], 0  ;;  %s8378_s22 = smov 0   ;;  %s8380_s0 = smov 0  }
  0x58   :  { %s8382_s23 = smov 0   ;;  %s8384_s26 = smov 0  }
  0x59   :  { %s8386_s28 = smov 0   ;;  %s8388_s1 = smov 0  }
  0x5a   :  { %s8390_s2 = smov 0   ;;  %s8392_s7 = smov 0  }
  0x5b   :  { %s8394_s10 = smov 0   ;;  %s8396_s11 = smov 0  }
  0x5c   :  { %s8398_s15 = smov 0  }
  0x5d LB: > { %s9708_s24 = sld [smem:[#allocation61_spill]]  ;;  %s9709_s21 = sld [smem:[#allocation56_spill]]  ;;  %s8100_s22 = sphi %s8378_s22, %s9799_s22   ;;  %s8140_s15 = sphi %s8398_s15, %s94_s15   ;;  %s8136_s11 = sphi %s8396_s11, %s9808_s11   ;;  %s8132_s10 = sphi %s8394_s10, %s9807_s10   ;;  %s8128_s7 = sphi %s8392_s7, %s9806_s7   ;;  %s8124_s2 = sphi %s8390_s2, %s9805_s2   ;;  %s8120_s1 = sphi %s8388_s1, %s9804_s1   ;;  %s8116_s28 = sphi %s8386_s28, %s9803_s28   ;;  %s8112_s26 = sphi %s8384_s26, %s9802_s26   ;;  %s8108_s23 = sphi %s8382_s23, %s9801_s23   ;;  %s8104_s0 = sphi %s8380_s0, %s9800_s0  }
  0x5e   : > { %s9710_s20 = sld [smem:[#allocation64_spill]]  ;;  %s9711_s19 = sld [smem:[#allocation60_spill]] }
  0x5f   : > { %s9712_s17 = sld [smem:[#allocation75_spill]]  ;;  %s9714_s12 = sld [smem:[#allocation63_spill]] }
  0x60   : > { %s9713_s14 = sld [smem:[#allocation59_spill]]  ;;  %s9715_s9 = sld [smem:[#allocation77_spill]] }
  0x61   : > { %s9716_s8 = sld [smem:[#allocation58_spill]]  ;;  %s9717_s6 = sld [smem:[#allocation62_spill]] }
  0x62   : > { %s9718_s4 = sld [smem:[#allocation66_spill]]  ;;  %s9719_s3 = sld [smem:[#allocation57_spill]] }
  0x63   : > { %9720 = sst [smem:[#allocation81_spill]] %s8100_s22  ;;  %s8434_s16 = sadd.s32 4294967295, %s8140_s15  }
  0x64   : > { %9721 = sst [smem:[#allocation82_spill]] %s8104_s0  ;;  %p6228_p0 = scmp.ge.s32.totalorder %s8140_s15, 1 }
  0x65   : > { %9722 = sst [smem:[#allocation83_spill]] %s8108_s23  ;;  %p9648_p1 = scmp.eq.s32.totalorder %s8434_s16, 0 }
  0x66   : > { %9723 = sst [smem:[#allocation84_spill]] %s8124_s2  ;;  %p817_p2 = scmp.lt.s32.totalorder %s8140_s15, 5 }
  0x67   : > { %9724 = sst [smem:[#allocation85_spill]] %s8128_s7  ;;  %s8173_s27 = smov [#allocation11]  }
  0x68   : > { %9725 = sst [smem:[#allocation86_spill]] %s8434_s16  ;;  %p8439_p3 = pnand %p6228_p0, %p817_p2 }
  0x69   : > { %s829_s5 = sshll.u32 %s8173_s27, 4  ;;  %s8174_s2 = smov [#allocation12]   ;;  %s8443_s5 = int_to_ptr.vmem [resolvable:$true] %s829_s5 }
  0x6a   : > { %s9726_s18 = scalar_select %p8439_p3, 1, 0 }
  0x6b   : > { %p6989_p4 = pneg %p8439_p3  ;;  %s843_s7 = sshll.u32 %s8174_s2, 4  ;;  %s8453_s7 = int_to_ptr.vmem [resolvable:$true] %s843_s7 }
  0x6c   : > { %9727 = sst [smem:[#allocation87_spill]] %s9726_s18  ;;  %s8175_s22 = smov [#allocation15]  }
  0x6d   : > { %p8449_p5 = pnand %p6989_p4, %p9648_p1  ;;  %s8455_s0 = sshll.u32 %s8175_s22, 4  ;;  %s868_s0 = int_to_ptr.vmem [resolvable:$true] %s8455_s0 }
  0x6e   : > { %s7410_s23 = scalar_lea.hbm %s9709_s21, 1024 }
  0x6f   : > { %p7411_p6 = scmp.ne.s32.totalorder %s9709_s21, %s7410_s23  ;;  %p8461_p7 = pneg %p8449_p5 }
  0x70   : > { %p7417_p10 = scmp.lt.u32.totalorder %s7410_s23, %s9709_s21 }
  0x71   : > { %p7413_p8 = pnand %p8461_p7, %p7411_p6 }
  0x73   : > { %p7414_p9 = pneg %p7413_p8 }
  0x75   : > { %p7419_p11 = pnand %p7417_p10, %p7414_p9 }
  0x77   : > { %7422 = shalt.err (!%p7419_p11)
}
  0x78   : > { %s7423_s22 = scalar_lea.vmem %s8443_s5, 1024  ;;  %p7431_p2 = scmp.lt.s32.totalorder %s8443_s5, %s8443_s5 }
  0x79   : > { %p7424_p12 = scmp.ne.s32.totalorder %s8443_s5, %s7423_s22  ;;  %p7432_p4 = scmp.lt.s32.totalorder %s7423_s22, %s7423_s22 }
  0x7b   : > { %p7426_p13 = pnand %p7424_p12, %p8461_p7  ;;  %p7433_p1 = por %p7432_p4, %p7431_p2 }
  0x7d   : > { %p7427_p0 = pneg %p7426_p13 }
  0x7f   : > { %p7434_p3 = pnand %p7433_p1, %p7427_p0 }
  0x81   : > { %7437 = shalt.err (!%p7434_p3)
}
  0x82   : > { %s9654_s2 = smov 64   ;;  %s9656_s23 = smov 4  }
  0x83   : > { %6992 = dma.hbm_to_vmem [thread:$0]  (!%p8449_p5), %s9709_s21, 1024, %s8443_s5, [#allocation10], %s9654_s2, %s9654_s2, %s9656_s23  }
  0x84   : > { %s7438_s18 = scalar_lea.hbm %s8246_s25, 16 }
  0x85   : > { %p7439_p6 = scmp.ne.s32.totalorder %s8246_s25, %s7438_s18  ;;  %p7445_p3 = scmp.lt.u32.totalorder %s7438_s18, %s8246_s25 }
  0x87   : > { %p7441_p8 = pnand %p7439_p6, %p8461_p7 }
  0x89   : > { %p7442_p1 = pneg %p7441_p8 }
  0x8b   : > { %p7447_p9 = pnand %p7445_p3, %p7442_p1 }
  0x8d   : > { %7450 = shalt.err (!%p7447_p9)
}
  0x8e   : > { %s7451_s22 = scalar_lea.vmem %s8453_s7, 16  ;;  %s7458_s16 = scalar_lea.vmem %s8453_s7, 32 }
  0x8f   : > { %p7452_p10 = scmp.ne.s32.totalorder %s8453_s7, %s7451_s22  ;;  %p7459_p13 = scmp.lt.s32.totalorder %s8453_s7, %s8453_s7 }
  0x90   : > { %p7460_p0 = scmp.lt.s32.totalorder %s7458_s16, %s7451_s22 }
  0x91   : > { %p7454_p11 = pnand %p7452_p10, %p8461_p7 }
  0x92   : > { %p7461_p2 = por %p7460_p0, %p7459_p13 }
  0x93   : > { %p7455_p12 = pneg %p7454_p11 }
  0x95   : > { %p7462_p4 = pnand %p7461_p2, %p7455_p12 }
  0x97   : > { %7465 = shalt.err (!%p7462_p4)
}
  0x98   : > { %6995 = dma.hbm_to_vmem [thread:$0]  (!%p8449_p5), %s8246_s25, 16, %s8453_s7, [#allocation13]  }
  0x99   : > { %s7466_s5 = scalar_lea.hbm %s9719_s3, 16 }
  0x9a   : > { %p7467_p6 = scmp.ne.s32.totalorder %s9719_s3, %s7466_s5  ;;  %p7473_p3 = scmp.lt.u32.totalorder %s7466_s5, %s9719_s3 }
  0x9c   : > { %p7469_p8 = pnand %p7467_p6, %p8461_p7 }
  0x9e   : > { %p7470_p1 = pneg %p7469_p8 }
  0xa0   : > { %p7475_p9 = pnand %p7473_p3, %p7470_p1 }
  0xa2   : > { %7478 = shalt.err (!%p7475_p9)
}
  0xa3   : > { %s7479_s16 = scalar_lea.vmem %s868_s0, 16  ;;  %s7486_s18 = scalar_lea.vmem %s868_s0, 32 }
  0xa4   : > { %p7480_p10 = scmp.ne.s32.totalorder %s868_s0, %s7479_s16  ;;  %p7487_p13 = scmp.lt.s32.totalorder %s868_s0, %s868_s0 }
  0xa5   : > { %p7488_p0 = scmp.lt.s32.totalorder %s7486_s18, %s7479_s16 }
  0xa6   : > { %p7482_p11 = pnand %p7480_p10, %p8461_p7 }
  0xa7   : > { %p7489_p2 = por %p7488_p0, %p7487_p13 }
  0xa8   : > { %p7483_p12 = pneg %p7482_p11 }
  0xaa   : > { %p7490_p4 = pnand %p7489_p2, %p7483_p12 }
  0xac   : > { %7493 = shalt.err (!%p7490_p4)
}
  0xad   : > { %7001 = dma.hbm_to_vmem [thread:$0]  (!%p8449_p5), %s9719_s3, 16, %s868_s0, [#allocation16]  }
  0xae   : > { %s8178_s7 = smov [#allocation18]   ;;  %s8179_s5 = smov [#allocation21]  }
  0xaf   : > { %s891_s22 = sshll.u32 %s8178_s7, 4  ;;  %s915_s2 = sshll.u32 %s8179_s5, 4  ;;  %s892_s22 = int_to_ptr.vmem [resolvable:$true] %s891_s22  ;;  %s916_s2 = int_to_ptr.vmem [resolvable:$true] %s915_s2 }
  0xb0   : > { %s7494_s23 = scalar_lea.hbm %s9713_s14, 16 }
  0xb1   : > { %p7495_p6 = scmp.ne.s32.totalorder %s9713_s14, %s7494_s23  ;;  %p7501_p3 = scmp.lt.u32.totalorder %s7494_s23, %s9713_s14 }
  0xb3   : > { %p7497_p8 = pnand %p7495_p6, %p8461_p7 }
  0xb5   : > { %p7498_p1 = pneg %p7497_p8 }
  0xb7   : > { %p7503_p9 = pnand %p7501_p3, %p7498_p1 }
  0xb9   : > { %7506 = shalt.err (!%p7503_p9)
}
  0xba   : > { %s7507_s16 = scalar_lea.vmem %s892_s22, 16  ;;  %s7514_s0 = scalar_lea.vmem %s892_s22, 32 }
  0xbb   : > { %p7508_p10 = scmp.ne.s32.totalorder %s892_s22, %s7507_s16  ;;  %p7515_p13 = scmp.lt.s32.totalorder %s892_s22, %s892_s22 }
  0xbc   : > { %p7516_p0 = scmp.lt.s32.totalorder %s7514_s0, %s7507_s16 }
  0xbd   : > { %p7510_p11 = pnand %p7508_p10, %p8461_p7 }
  0xbe   : > { %p7517_p2 = por %p7516_p0, %p7515_p13 }
  0xbf   : > { %p7511_p12 = pneg %p7510_p11 }
  0xc1   : > { %p7518_p4 = pnand %p7517_p2, %p7511_p12 }
  0xc3   : > { %7521 = shalt.err (!%p7518_p4)
}
  0xc4   : > { %7007 = dma.hbm_to_vmem [thread:$0]  (!%p8449_p5), %s9713_s14, 16, %s892_s22, [#allocation19]  }
  0xc5   : > { %s7522_s23 = scalar_lea.hbm %s9708_s24, 16 }
  0xc6   : > { %p7523_p6 = scmp.ne.s32.totalorder %s9708_s24, %s7522_s23  ;;  %p7529_p3 = scmp.lt.u32.totalorder %s7522_s23, %s9708_s24 }
  0xc8   : > { %p7525_p8 = pnand %p7523_p6, %p8461_p7 }
  0xca   : > { %p7526_p1 = pneg %p7525_p8 }
  0xcc   : > { %p7531_p9 = pnand %p7529_p3, %p7526_p1 }
  0xce   : > { %7534 = shalt.err (!%p7531_p9)
}
  0xcf   : > { %s7535_s18 = scalar_lea.vmem %s916_s2, 16  ;;  %s7542_s7 = scalar_lea.vmem %s916_s2, 32 }
  0xd0   : > { %p7536_p10 = scmp.ne.s32.totalorder %s916_s2, %s7535_s18  ;;  %p7543_p13 = scmp.lt.s32.totalorder %s916_s2, %s916_s2 }
  0xd1   : > { %p7544_p0 = scmp.lt.s32.totalorder %s7542_s7, %s7535_s18 }
  0xd2   : > { %p7538_p11 = pnand %p7536_p10, %p8461_p7 }
  0xd3   : > { %p7545_p2 = por %p7544_p0, %p7543_p13 }
  0xd4   : > { %p7539_p12 = pneg %p7538_p11 }
  0xd6   : > { %p7546_p4 = pnand %p7545_p2, %p7539_p12 }
  0xd8   : > { %7549 = shalt.err (!%p7546_p4)
}
  0xd9   : > { %7013 = dma.hbm_to_vmem [thread:$0]  (!%p8449_p5), %s9708_s24, 16, %s916_s2, [#allocation22]  }
  0xda   : > { %s8180_s22 = smov [#allocation24]   ;;  %s8181_s16 = smov [#allocation27]  }
  0xdb   : > { %s937_s5 = sshll.u32 %s8180_s22, 4  ;;  %s961_s0 = sshll.u32 %s8181_s16, 4  ;;  %s938_s5 = int_to_ptr.vmem [resolvable:$true] %s937_s5  ;;  %s962_s0 = int_to_ptr.vmem [resolvable:$true] %s961_s0 }
  0xdc   : > { %s7550_s23 = scalar_lea.hbm %s9717_s6, 16 }
  0xdd   : > { %p7551_p6 = scmp.ne.s32.totalorder %s9717_s6, %s7550_s23  ;;  %p7557_p3 = scmp.lt.u32.totalorder %s7550_s23, %s9717_s6 }
  0xdf   : > { %p7553_p8 = pnand %p7551_p6, %p8461_p7 }
  0xe1   : > { %p7554_p1 = pneg %p7553_p8 }
  0xe3   : > { %p7559_p9 = pnand %p7557_p3, %p7554_p1 }
  0xe5   : > { %7562 = shalt.err (!%p7559_p9)
}
  0xe6   : > { %s7563_s18 = scalar_lea.vmem %s938_s5, 16  ;;  %s7570_s2 = scalar_lea.vmem %s938_s5, 32 }
  0xe7   : > { %p7564_p10 = scmp.ne.s32.totalorder %s938_s5, %s7563_s18  ;;  %p7571_p13 = scmp.lt.s32.totalorder %s938_s5, %s938_s5 }
  0xe8   : > { %p7572_p0 = scmp.lt.s32.totalorder %s7570_s2, %s7563_s18 }
  0xe9   : > { %p7566_p11 = pnand %p7564_p10, %p8461_p7 }
  0xea   : > { %p7573_p2 = por %p7572_p0, %p7571_p13 }
  0xeb   : > { %p7567_p12 = pneg %p7566_p11 }
  0xed   : > { %p7574_p4 = pnand %p7573_p2, %p7567_p12 }
  0xef   : > { %7577 = shalt.err (!%p7574_p4)
}
  0xf0   : > { %7019 = dma.hbm_to_vmem [thread:$0]  (!%p8449_p5), %s9717_s6, 16, %s938_s5, [#allocation25]  }
  0xf1   : > { %s7578_s7 = scalar_lea.hbm %s9710_s20, 16 }
  0xf2   : > { %p7579_p6 = scmp.ne.s32.totalorder %s9710_s20, %s7578_s7  ;;  %p7585_p3 = scmp.lt.u32.totalorder %s7578_s7, %s9710_s20 }
  0xf4   : > { %p7581_p8 = pnand %p7579_p6, %p8461_p7 }
  0xf6   : > { %p7582_p1 = pneg %p7581_p8 }
  0xf8   : > { %p7587_p9 = pnand %p7585_p3, %p7582_p1 }
  0xfa   : > { %7590 = shalt.err (!%p7587_p9)
}
  0xfb   : > { %s7591_s22 = scalar_lea.vmem %s962_s0, 16  ;;  %s7598_s16 = scalar_lea.vmem %s962_s0, 32 }
  0xfc   : > { %p7592_p10 = scmp.ne.s32.totalorder %s962_s0, %s7591_s22  ;;  %p7599_p13 = scmp.lt.s32.totalorder %s962_s0, %s962_s0 }
  0xfd   : > { %p7600_p0 = scmp.lt.s32.totalorder %s7598_s16, %s7591_s22 }
  0xfe   : > { %p7594_p11 = pnand %p7592_p10, %p8461_p7 }
  0xff   : > { %p7601_p2 = por %p7600_p0, %p7599_p13 }
 0x100   : > { %p7595_p12 = pneg %p7594_p11 }
 0x102   : > { %p7602_p4 = pnand %p7601_p2, %p7595_p12 }
 0x104   : > { %7605 = shalt.err (!%p7602_p4)
}
 0x105   : > { %7025 = dma.hbm_to_vmem [thread:$0]  (!%p8449_p5), %s9710_s20, 16, %s962_s0, [#allocation28]  }
 0x106   : > { %s8182_s5 = smov [#allocation30]   ;;  %s8183_s18 = smov [#allocation33]  }
 0x107   : > { %s985_s23 = sshll.u32 %s8182_s5, 4  ;;  %s1029_s2 = sshll.u32 %s8183_s18, 4  ;;  %s986_s23 = int_to_ptr.vmem [resolvable:$true] %s985_s23  ;;  %s1030_s2 = int_to_ptr.vmem [resolvable:$true] %s1029_s2 }
 0x108   : > { %s7606_s7 = scalar_lea.hbm %s9718_s4, 16 }
 0x109   : > { %p7607_p6 = scmp.ne.s32.totalorder %s9718_s4, %s7606_s7  ;;  %p7613_p3 = scmp.lt.u32.totalorder %s7606_s7, %s9718_s4 }
 0x10b   : > { %p7609_p8 = pnand %p7607_p6, %p8461_p7 }
 0x10d   : > { %p7610_p1 = pneg %p7609_p8 }
 0x10f   : > { %p7615_p9 = pnand %p7613_p3, %p7610_p1 }
 0x111   : > { %7618 = shalt.err (!%p7615_p9)
}
 0x112   : > { %s7619_s22 = scalar_lea.vmem %s986_s23, 16  ;;  %s7626_s0 = scalar_lea.vmem %s986_s23, 32 }
 0x113   : > { %p7620_p10 = scmp.ne.s32.totalorder %s986_s23, %s7619_s22  ;;  %p7627_p13 = scmp.lt.s32.totalorder %s986_s23, %s986_s23 }
 0x114   : > { %p7628_p0 = scmp.lt.s32.totalorder %s7626_s0, %s7619_s22 }
 0x115   : > { %p7622_p11 = pnand %p7620_p10, %p8461_p7 }
 0x116   : > { %p7629_p2 = por %p7628_p0, %p7627_p13 }
 0x117   : > { %p7623_p12 = pneg %p7622_p11 }
 0x119   : > { %p7630_p4 = pnand %p7629_p2, %p7623_p12 }
 0x11b   : > { %7633 = shalt.err (!%p7630_p4)
}
 0x11c   : > { %7031 = dma.hbm_to_vmem [thread:$0]  (!%p8449_p5), %s9718_s4, 16, %s986_s23, [#allocation31]  }
 0x11d   : > { %s7634_s16 = scalar_lea.hbm %s9712_s17, 2048 }
 0x11e   : > { %p7635_p6 = scmp.ne.s32.totalorder %s9712_s17, %s7634_s16  ;;  %p7641_p3 = scmp.lt.u32.totalorder %s7634_s16, %s9712_s17 }
 0x120   : > { %p7637_p8 = pnand %p7635_p6, %p8461_p7 }
 0x122   : > { %p7638_p1 = pneg %p7637_p8 }
 0x124   : > { %p7643_p9 = pnand %p7641_p3, %p7638_p1 }
 0x126   : > { %7646 = shalt.err (!%p7643_p9)
}
 0x127   : > { %s7647_s5 = scalar_lea.vmem %s1030_s2, 2048  ;;  %p7655_p13 = scmp.lt.s32.totalorder %s1030_s2, %s1030_s2 }
 0x128   : > { %p7648_p10 = scmp.ne.s32.totalorder %s1030_s2, %s7647_s5  ;;  %p7656_p0 = scmp.lt.s32.totalorder %s7647_s5, %s7647_s5 }
 0x12a   : > { %p7650_p11 = pnand %p7648_p10, %p8461_p7  ;;  %p7657_p2 = por %p7656_p0, %p7655_p13 }
 0x12c   : > { %p7651_p12 = pneg %p7650_p11 }
 0x12e   : > { %p7658_p4 = pnand %p7657_p2, %p7651_p12 }
 0x130   : > { %7661 = shalt.err (!%p7658_p4)
}
 0x131   : > { %s9659_s23 = smov 128   ;;  %s9661_s18 = smov 8  }
 0x132   : > { %7037 = dma.hbm_to_vmem [thread:$0]  (!%p8449_p5), %s9712_s17, 2048, %s1030_s2, [#allocation34], %s9659_s23, %s9659_s23, %s9661_s18  }
 0x133   : > { %s8186_s7 = smov [#allocation14]   ;;  %s8187_s0 = smov [#allocation17]  }
 0x134   : > { %s853_s22 = sshll.u32 %s8186_s7, 4  ;;  %s877_s16 = sshll.u32 %s8187_s0, 4  ;;  %s854_s22 = int_to_ptr.vmem [resolvable:$true] %s853_s22  ;;  %s878_s16 = int_to_ptr.vmem [resolvable:$true] %s877_s16 }
 0x135   : > { %s7662_s5 = scalar_lea.hbm %s8251_s29, 1024 }
 0x136   : > { %p7663_p6 = scmp.ne.s32.totalorder %s8251_s29, %s7662_s5  ;;  %p7669_p3 = scmp.lt.u32.totalorder %s7662_s5, %s8251_s29 }
 0x138   : > { %p7665_p8 = pnand %p7663_p6, %p8461_p7 }
 0x13a   : > { %p7666_p1 = pneg %p7665_p8 }
 0x13c   : > { %p7671_p9 = pnand %p7669_p3, %p7666_p1 }
 0x13e   : > { %7674 = shalt.err (!%p7671_p9)
}
 0x13f   : > { %s7675_s3 = scalar_lea.vmem %s854_s22, 1024  ;;  %p7683_p13 = scmp.lt.s32.totalorder %s854_s22, %s854_s22 }
 0x140   : > { %p7676_p10 = scmp.ne.s32.totalorder %s854_s22, %s7675_s3  ;;  %p7684_p0 = scmp.lt.s32.totalorder %s7675_s3, %s7675_s3 }
 0x142   : > { %p7678_p11 = pnand %p7676_p10, %p8461_p7  ;;  %p7685_p2 = por %p7684_p0, %p7683_p13 }
 0x144   : > { %p7679_p12 = pneg %p7678_p11 }
 0x146   : > { %p7686_p4 = pnand %p7685_p2, %p7679_p12 }
 0x148   : > { %7689 = shalt.err (!%p7686_p4)
}
 0x149   : > { %s9730_s2 = smov 4   ;;  %s9731_s7 = smov 64  }
 0x14a   : > { %6998 = dma.hbm_to_vmem [thread:$0]  (!%p8449_p5), %s8251_s29, 1024, %s854_s22, [#allocation13], %s9731_s7, %s9731_s7, %s9730_s2  }
 0x14b   : > { %s7690_s0 = scalar_lea.hbm %s9716_s8, 1024 }
 0x14c   : > { %p7691_p6 = scmp.ne.s32.totalorder %s9716_s8, %s7690_s0  ;;  %p7697_p3 = scmp.lt.u32.totalorder %s7690_s0, %s9716_s8 }
 0x14e   : > { %p7693_p8 = pnand %p7691_p6, %p8461_p7 }
 0x150   : > { %p7694_p1 = pneg %p7693_p8 }
 0x152   : > { %p7699_p9 = pnand %p7697_p3, %p7694_p1 }
 0x154   : > { %7702 = shalt.err (!%p7699_p9)
}
 0x155   : > { %s7703_s3 = scalar_lea.vmem %s878_s16, 1024  ;;  %p7711_p13 = scmp.lt.s32.totalorder %s878_s16, %s878_s16 }
 0x156   : > { %p7704_p10 = scmp.ne.s32.totalorder %s878_s16, %s7703_s3  ;;  %p7712_p0 = scmp.lt.s32.totalorder %s7703_s3, %s7703_s3 }
 0x158   : > { %p7706_p11 = pnand %p7704_p10, %p8461_p7  ;;  %p7713_p2 = por %p7712_p0, %p7711_p13 }
 0x15a   : > { %p7707_p12 = pneg %p7706_p11 }
 0x15c   : > { %p7714_p4 = pnand %p7713_p2, %p7707_p12 }
 0x15e   : > { %7717 = shalt.err (!%p7714_p4)
}
 0x15f   : > { %7004 = dma.hbm_to_vmem [thread:$0]  (!%p8449_p5), %s9716_s8, 1024, %s878_s16, [#allocation16], %s9731_s7, %s9731_s7, %s9730_s2  }
 0x160   : > { %s8188_s22 = smov [#allocation20]   ;;  %s8189_s0 = smov [#allocation23]  }
 0x161   : > { %s901_s5 = sshll.u32 %s8188_s22, 4  ;;  %s926_s23 = sshll.u32 %s8189_s0, 4  ;;  %s902_s5 = int_to_ptr.vmem [resolvable:$true] %s901_s5  ;;  %s927_s23 = int_to_ptr.vmem [resolvable:$true] %s926_s23 }
 0x162   : > { %s7718_s3 = scalar_lea.hbm %s9711_s19, 1024 }
 0x163   : > { %p7719_p6 = scmp.ne.s32.totalorder %s9711_s19, %s7718_s3  ;;  %p7725_p3 = scmp.lt.u32.totalorder %s7718_s3, %s9711_s19 }
 0x165   : > { %p7721_p8 = pnand %p7719_p6, %p8461_p7 }
 0x167   : > { %p7722_p1 = pneg %p7721_p8 }
 0x169   : > { %p7727_p9 = pnand %p7725_p3, %p7722_p1 }
 0x16b   : > { %7730 = shalt.err (!%p7727_p9)
}
 0x16c   : > { %s7731_s18 = scalar_lea.vmem %s902_s5, 1024  ;;  %p7739_p13 = scmp.lt.s32.totalorder %s902_s5, %s902_s5 }
 0x16d   : > { %p7732_p10 = scmp.ne.s32.totalorder %s902_s5, %s7731_s18  ;;  %p7740_p0 = scmp.lt.s32.totalorder %s7731_s18, %s7731_s18 }
 0x16f   : > { %p7734_p11 = pnand %p7732_p10, %p8461_p7  ;;  %p7741_p2 = por %p7740_p0, %p7739_p13 }
 0x171   : > { %p7735_p12 = pneg %p7734_p11 }
 0x173   : > { %p7742_p4 = pnand %p7741_p2, %p7735_p12 }
 0x175   : > { %7745 = shalt.err (!%p7742_p4)
}
 0x176   : > { %7010 = dma.hbm_to_vmem [thread:$0]  (!%p8449_p5), %s9711_s19, 1024, %s902_s5, [#allocation19], %s9731_s7, %s9731_s7, %s9730_s2  }
 0x177   : > { %s7746_s16 = scalar_lea.hbm %s8281_s30, 16 }
 0x178   : > { %p7747_p6 = scmp.ne.s32.totalorder %s8281_s30, %s7746_s16  ;;  %p7753_p3 = scmp.lt.u32.totalorder %s7746_s16, %s8281_s30 }
 0x17a   : > { %p7749_p8 = pnand %p7747_p6, %p8461_p7 }
 0x17c   : > { %p7750_p1 = pneg %p7749_p8 }
 0x17e   : > { %p7755_p9 = pnand %p7753_p3, %p7750_p1 }
 0x180   : > { %7758 = shalt.err (!%p7755_p9)
}
 0x181   : > { %s7759_s18 = scalar_lea.vmem %s927_s23, 16  ;;  %s7766_s22 = scalar_lea.vmem %s927_s23, 32 }
 0x182   : > { %p7760_p10 = scmp.ne.s32.totalorder %s927_s23, %s7759_s18  ;;  %p7767_p13 = scmp.lt.s32.totalorder %s927_s23, %s927_s23 }
 0x183   : > { %p7768_p0 = scmp.lt.s32.totalorder %s7766_s22, %s7759_s18 }
 0x184   : > { %p7762_p11 = pnand %p7760_p10, %p8461_p7 }
 0x185   : > { %p7769_p2 = por %p7768_p0, %p7767_p13 }
 0x186   : > { %p7763_p12 = pneg %p7762_p11 }
 0x188   : > { %p7770_p4 = pnand %p7769_p2, %p7763_p12 }
 0x18a   : > { %7773 = shalt.err (!%p7770_p4)
}
 0x18b   : > { %7016 = dma.hbm_to_vmem [thread:$0]  (!%p8449_p5), %s8281_s30, 16, %s927_s23, [#allocation22]  }
 0x18c   : > { %s8190_s5 = smov [#allocation26]   ;;  %s8191_s3 = smov [#allocation29]  }
 0x18d   : > { %s947_s0 = sshll.u32 %s8190_s5, 4  ;;  %s971_s16 = sshll.u32 %s8191_s3, 4  ;;  %s948_s0 = int_to_ptr.vmem [resolvable:$true] %s947_s0  ;;  %s972_s16 = int_to_ptr.vmem [resolvable:$true] %s971_s16 }
 0x18e   : > { %s7774_s4 = scalar_lea.hbm %s9714_s12, 1024 }
 0x18f   : > { %p7775_p6 = scmp.ne.s32.totalorder %s9714_s12, %s7774_s4  ;;  %p7781_p3 = scmp.lt.u32.totalorder %s7774_s4, %s9714_s12 }
 0x191   : > { %p7777_p8 = pnand %p7775_p6, %p8461_p7 }
 0x193   : > { %p7778_p1 = pneg %p7777_p8 }
 0x195   : > { %p7783_p9 = pnand %p7781_p3, %p7778_p1 }
 0x197   : > { %7786 = shalt.err (!%p7783_p9)
}
 0x198   : > { %s7787_s18 = scalar_lea.vmem %s948_s0, 1024  ;;  %p7795_p13 = scmp.lt.s32.totalorder %s948_s0, %s948_s0 }
 0x199   : > { %p7788_p10 = scmp.ne.s32.totalorder %s948_s0, %s7787_s18  ;;  %p7796_p0 = scmp.lt.s32.totalorder %s7787_s18, %s7787_s18 }
 0x19b   : > { %p7790_p11 = pnand %p7788_p10, %p8461_p7  ;;  %p7797_p2 = por %p7796_p0, %p7795_p13 }
 0x19d   : > { %p7791_p12 = pneg %p7790_p11 }
 0x19f   : > { %p7798_p4 = pnand %p7797_p2, %p7791_p12 }
 0x1a1   : > { %7801 = shalt.err (!%p7798_p4)
}
 0x1a2   : > { %s9732_s4 = sld [smem:[#allocation65_spill]] }
 0x1a3   : > { %7022 = dma.hbm_to_vmem [thread:$0]  (!%p8449_p5), %s9714_s12, 1024, %s948_s0, [#allocation25], %s9731_s7, %s9731_s7, %s9730_s2  }
 0x1a8   : > { %s7802_s23 = scalar_lea.hbm %s9732_s4, 1024 }
 0x1a9   : > { %p7803_p6 = scmp.ne.s32.totalorder %s9732_s4, %s7802_s23  ;;  %p7809_p3 = scmp.lt.u32.totalorder %s7802_s23, %s9732_s4 }
 0x1ab   : > { %p7805_p8 = pnand %p7803_p6, %p8461_p7 }
 0x1ad   : > { %p7806_p1 = pneg %p7805_p8 }
 0x1af   : > { %p7811_p9 = pnand %p7809_p3, %p7806_p1 }
 0x1b1   : > { %7814 = shalt.err (!%p7811_p9)
}
 0x1b2   : > { %s7815_s22 = scalar_lea.vmem %s972_s16, 1024  ;;  %p7823_p13 = scmp.lt.s32.totalorder %s972_s16, %s972_s16 }
 0x1b3   : > { %p7816_p10 = scmp.ne.s32.totalorder %s972_s16, %s7815_s22  ;;  %p7824_p0 = scmp.lt.s32.totalorder %s7815_s22, %s7815_s22 }
 0x1b5   : > { %p7818_p11 = pnand %p7816_p10, %p8461_p7  ;;  %p7825_p2 = por %p7824_p0, %p7823_p13 }
 0x1b7   : > { %p7819_p12 = pneg %p7818_p11 }
 0x1b9   : > { %p7826_p4 = pnand %p7825_p2, %p7819_p12 }
 0x1bb   : > { %7829 = shalt.err (!%p7826_p4)
}
 0x1bc   : > { %s9733_s5 = sld [smem:[#allocation69_spill]]  ;;  %s8192_s0 = smov [#allocation32]  }
 0x1bd   : > { %7028 = dma.hbm_to_vmem [thread:$0]  (!%p8449_p5), %s9732_s4, 1024, %s972_s16, [#allocation28], %s9731_s7, %s9731_s7, %s9730_s2  }
 0x1be   : > { %s1001_s3 = sshll.u32 %s8192_s0, 4  ;;  %s8193_s18 = smov [#allocation35]   ;;  %s1002_s3 = int_to_ptr.vmem [resolvable:$true] %s1001_s3 }
 0x1bf   : > { %s1045_s23 = sshll.u32 %s8193_s18, 4  ;;  %s1046_s23 = int_to_ptr.vmem [resolvable:$true] %s1045_s23 }
 0x1c2   : > { %s7830_s22 = scalar_lea.hbm %s9733_s5, 1024 }
 0x1c3   : > { %p7831_p6 = scmp.ne.s32.totalorder %s9733_s5, %s7830_s22  ;;  %p7837_p3 = scmp.lt.u32.totalorder %s7830_s22, %s9733_s5 }
 0x1c5   : > { %p7833_p8 = pnand %p7831_p6, %p8461_p7 }
 0x1c7   : > { %p7834_p1 = pneg %p7833_p8 }
 0x1c9   : > { %p7839_p9 = pnand %p7837_p3, %p7834_p1 }
 0x1cb   : > { %7842 = shalt.err (!%p7839_p9)
}
 0x1cc   : > { %s7843_s6 = scalar_lea.vmem %s1002_s3, 1024  ;;  %p7851_p13 = scmp.lt.s32.totalorder %s1002_s3, %s1002_s3 }
 0x1cd   : > { %p7844_p10 = scmp.ne.s32.totalorder %s1002_s3, %s7843_s6  ;;  %p7852_p0 = scmp.lt.s32.totalorder %s7843_s6, %s7843_s6 }
 0x1cf   : > { %p7846_p11 = pnand %p7844_p10, %p8461_p7  ;;  %p7853_p2 = por %p7852_p0, %p7851_p13 }
 0x1d1   : > { %p7847_p12 = pneg %p7846_p11 }
 0x1d3   : > { %p7854_p4 = pnand %p7853_p2, %p7847_p12 }
 0x1d5   : > { %7857 = shalt.err (!%p7854_p4)
}
 0x1d6   : > { %7034 = dma.hbm_to_vmem [thread:$0]  (!%p8449_p5), %s9733_s5, 1024, %s1002_s3, [#allocation31], %s9731_s7, %s9731_s7, %s9730_s2  }
 0x1d7   : > { %s7858_s16 = scalar_lea.hbm %s9715_s9, 2048 }
 0x1d8   : > { %p7859_p6 = scmp.ne.s32.totalorder %s9715_s9, %s7858_s16  ;;  %p7865_p3 = scmp.lt.u32.totalorder %s7858_s16, %s9715_s9 }
 0x1da   : > { %p7861_p8 = pnand %p7859_p6, %p8461_p7 }
 0x1dc   : > { %p7862_p1 = pneg %p7861_p8 }
 0x1de   : > { %p7867_p9 = pnand %p7865_p3, %p7862_p1 }
 0x1e0   : > { %7870 = shalt.err (!%p7867_p9)
}
 0x1e1   : > { %s7871_s6 = scalar_lea.vmem %s1046_s23, 2048  ;;  %p7879_p13 = scmp.lt.s32.totalorder %s1046_s23, %s1046_s23 }
 0x1e2   : > { %p7872_p10 = scmp.ne.s32.totalorder %s1046_s23, %s7871_s6  ;;  %p7880_p0 = scmp.lt.s32.totalorder %s7871_s6, %s7871_s6 }
 0x1e4   : > { %p7874_p11 = pnand %p7872_p10, %p8461_p7  ;;  %p7881_p2 = por %p7880_p0, %p7879_p13 }
 0x1e6   : > { %p7875_p12 = pneg %p7874_p11 }
 0x1e8   : > { %p7882_p4 = pnand %p7881_p2, %p7875_p12 }
 0x1ea   : > { %7885 = shalt.err (!%p7882_p4)
}
 0x1eb   : > { %s9734_s27 = sld [smem:[#allocation86_spill]]  ;;  %s9735_s0 = sld [smem:[#allocation83_spill]] }
 0x1ec   : > { %7040 = dma.hbm_to_vmem [thread:$0]  (!%p8449_p5), %s9715_s9, 2048, %s1046_s23, [#allocation34], %s9731_s7, %s9731_s7, %s9730_s2  }
 0x1ed   : > { %s6227_s3 = sadd.s32 4294967294, %s8140_s15   ;;  %s9736_s13 = sld [smem:[#allocation82_spill]] }
 0x1ee   : > { %s103_s18 = sadd.s32 1, %s8132_s10  ;;  %s106_s22 = sadd.s32 1, %s8136_s11 }
 0x1ef   : > { %p104_p7 = scmp.ge.s32.totalorder %s103_s18, 2  ;;  %s9737_s16 = sld [smem:[#allocation81_spill]] }
 0x1f0   : > { %s113_s6 = sadd.s32 1, %s8120_s1  ;;  %p120_p6 = scmp.ne.s32.totalorder %s8120_s1, %s8116_s28 }
 0x1f1   : > { %p121_p8 = scmp.eq.s32.totalorder %s8140_s15, 0  ;;  %s9810_s18 = smov (%p104_p7, %s103_s18), 0 }
 0x1f2   : > { %s9812_s22 = smov (!%p104_p7, %s106_s22), %s8136_s11  ;;  %p126_p5 = scmp.ne.s32.totalorder %s8116_s28, %s8112_s26 }
 0x1f3   : > { %p8682_p1 = por %p121_p8, %p120_p6  ;;  %p108_p3 = scmp.ge.s32.totalorder %s9812_s22, 2 }
 0x1f4   : > { %s761_s7 = ssub.s32 %s8132_s10, %s9810_s18  ;;  %p9739_p9 = scmp.eq.s32.totalorder %s9734_s27, 0 }
 0x1f5   : > { %s765_s4 = sadd.s32 1, %s9735_s0  ;;  %s9814_s22 = smov (%p108_p3, %s9812_s22), 0 }
 0x1f6   : > { %p8692_p10 = por %p9739_p9, %p126_p5  ;;  %p775_p11 = scmp.ne.s32.totalorder %s9735_s0, %s9736_s13 }
 0x1f7   : > { %s9741_s5 = sld [smem:[#allocation52_spill]]  ;;  %p776_p12 = scmp.eq.s32.totalorder %s9734_s27, 3 }
 0x1f8   : > { %s9740_s23 = scalar_select %p8692_p10, 1, 0 }
 0x1f9   : > { %s110_s8 = ssub.s32 %s8136_s11, %s9814_s22  ;;  %p781_p13 = scmp.ne.s32.totalorder %s9736_s13, %s9737_s16 }
 0x1fa   : > { %p111_p0 = scmp.eq.s32.totalorder %s110_s8, 0  ;;  %s762_s26 = sor.u32 %s761_s7, %s110_s8 }
 0x1fb   : > { %p763_p2 = scmp.eq.s32.totalorder %s762_s26, 0  ;;  %p8706_p4 = por %p776_p12, %p775_p11 }
 0x1fc   : > { %s8711_s12 = scalar_select %p111_p0, %s8120_s1, %s113_s6  }
 0x1fd   : > { %s9742_s9 = scalar_select %p8706_p4, 1, 0 }
 0x1fe   : > { %s9816_s0 = smov (!%p763_p2, %s9735_s0), %s765_s4  ;;  %p782_p7 = scmp.eq.s32.totalorder %s6227_s3, 3 }
 0x1ff   : > { %p7072_p6 = scmp.lt.s32.totalorder %s8140_s15, 4  ;;  %s8718_s14 = sand.u32 1, %s8120_s1  }
 0x200   : > { %s6477_s27 = sshll.u32 %s8136_s11, 8  ;;  %p8721_p8 = por %p782_p7, %p781_p13 }
 0x201   : > { %s6247_s13 = sshll.u32 %s8718_s14, 4  ;;  %s8727_s16 = scalar_lea.hbm %s9741_s5, %s6477_s27 }
 0x202   : > { %s9743_s8 = scalar_select %p8721_p8, 1, 0 }
 0x203   : > { %p8731_p5 = pnand %p7072_p6, %p8682_p1  ;;  %s1066_s3 = scalar_lea.vmem [#allocation6], %s6247_s13 }
 0x204   : > { %s1073_s6 = sshll.u32 %s1066_s3, 4  ;;  %s1063_s26 = scalar_lea.sflag [#allocation7], %s8718_s14  ;;  %s8736_s6 = int_to_ptr.vmem [resolvable:$true] %s1073_s6 }
 0x205   : > { %s7886_s17 = scalar_lea.hbm %s8727_s16, 256  ;;  %p7888_p9 = pneg %p8731_p5 }
 0x206   : > { %p7887_p3 = scmp.ne.s32.totalorder %s8727_s16, %s7886_s17  ;;  %s7891_s2 = scalar_lea.hbm %s9741_s5, 512 }
 0x207   : > { %p7892_p1 = scmp.lt.u32.totalorder %s8727_s16, %s9741_s5  ;;  %p7893_p13 = scmp.lt.u32.totalorder %s7891_s2, %s7886_s17 }
 0x208   : > { %p7889_p11 = pnand %p7888_p9, %p7887_p3  ;;  %p7895_p2 = scmp.lt.u32.totalorder %s7886_s17, %s8727_s16 }
 0x209   : > { %p7894_p0 = por %p7893_p13, %p7892_p1 }
 0x20a   : > { %p7890_p12 = pneg %p7889_p11 }
 0x20b   : > { %p7896_p7 = por %p7895_p2, %p7894_p0 }
 0x20d   : > { %p7897_p6 = pnand %p7896_p7, %p7890_p12 }
 0x20f   : > { %7900 = shalt.err (!%p7897_p6)
}
 0x210   : > { %s7901_s27 = scalar_lea.vmem %s8736_s6, 256  ;;  %s8194_s13 = smov [#allocation6]  }
 0x211   : > { %p7902_p8 = scmp.ne.s32.totalorder %s8736_s6, %s7901_s27  ;;  %s7906_s3 = sshll.u32 %s8194_s13, 4  ;;  %s7907_s3 = int_to_ptr.vmem [resolvable:$false] %s7906_s3 }
 0x212   : > { %s7908_s7 = scalar_lea.vmem %s7907_s3, 512  ;;  %p7909_p3 = scmp.lt.s32.totalorder %s8736_s6, %s7907_s3 }
 0x213   : > { %p7904_p4 = pnand %p7902_p8, %p7888_p9  ;;  %p7910_p11 = scmp.lt.s32.totalorder %s7908_s7, %s7901_s27 }
 0x215   : > { %p7905_p10 = pneg %p7904_p4  ;;  %p7911_p1 = por %p7910_p11, %p7909_p3 }
 0x217   : > { %p7912_p13 = pnand %p7911_p1, %p7905_p10 }
 0x219   : > { %7915 = shalt.err (!%p7912_p13)
}
 0x21a   : > { %s9745_s17 = smov 8   ;;  %s9746_s2 = smov 128  }
 0x21b   : > { %s9747_s5 = sld [smem:[#allocation53_spill]]  ;;  %s6910_s7 = smul.u32 24, %s8718_s14 }
 0x21c   : > { %7044 = dma.hbm_to_vmem [thread:$0]  (!%p8731_p5), %s8727_s16, 256, %s8736_s6, %s1063_s26, %s9746_s2, %s9746_s2, %s9745_s17  }
 0x21d   : > { %s6911_s27 = smul.u32 384, %s8136_s11  ;;  %s1087_s3 = scalar_lea.vmem [#allocation9], %s6910_s7 }
 0x21e   : > { %s1094_s19 = sshll.u32 %s1087_s3, 4  ;;  %s9748_s20 = sand.u32 1, %s8140_s15   ;;  %s8770_s19 = int_to_ptr.vmem [resolvable:$true] %s1094_s19 }
 0x21f   : > { %s8774_s21 = scalar_lea.sflag [#allocation10], %s9748_s20 }
 0x221   : > { %s8768_s13 = scalar_lea.hbm %s9747_s5, %s6911_s27  ;;  %s7921_s14 = scalar_lea.hbm %s9747_s5, 768 }
 0x222   : > { %s7916_s24 = scalar_lea.hbm %s8768_s13, 384  ;;  %p7922_p12 = scmp.lt.u32.totalorder %s8768_s13, %s9747_s5 }
 0x223   : > { %p7917_p10 = scmp.ne.s32.totalorder %s8768_s13, %s7916_s24  ;;  %p7923_p0 = scmp.lt.u32.totalorder %s7921_s14, %s7916_s24 }
 0x224   : > { %p7925_p7 = scmp.lt.u32.totalorder %s7916_s24, %s8768_s13 }
 0x225   : > { %p7919_p4 = pnand %p7917_p10, %p7888_p9  ;;  %p7924_p2 = por %p7923_p0, %p7922_p12 }
 0x227   : > { %p7920_p8 = pneg %p7919_p4  ;;  %p7926_p6 = por %p7925_p7, %p7924_p2 }
 0x229   : > { %p7927_p3 = pnand %p7926_p6, %p7920_p8 }
 0x22b   : > { %7930 = shalt.err (!%p7927_p3)
}
 0x22c   : > { %s7931_s20 = scalar_lea.vmem %s8770_s19, 384  ;;  %s8195_s16 = smov [#allocation9]  }
 0x22d   : > { %p7932_p11 = scmp.ne.s32.totalorder %s8770_s19, %s7931_s20  ;;  %s7936_s6 = sshll.u32 %s8195_s16, 4  ;;  %s7937_s6 = int_to_ptr.vmem [resolvable:$false] %s7936_s6 }
 0x22e   : > { %s7938_s26 = scalar_lea.vmem %s7937_s6, 768  ;;  %p7939_p10 = scmp.lt.s32.totalorder %s8770_s19, %s7937_s6 }
 0x22f   : > { %p7934_p1 = pnand %p7932_p11, %p7888_p9  ;;  %p7940_p4 = scmp.lt.s32.totalorder %s7938_s26, %s7931_s20 }
 0x231   : > { %p7935_p13 = pneg %p7934_p1  ;;  %p7941_p12 = por %p7940_p4, %p7939_p10 }
 0x233   : > { %p7942_p0 = pnand %p7941_p12, %p7935_p13 }
 0x235   : > { %7945 = shalt.err (!%p7942_p0)
}
 0x236   : > { %7047 = dma.hbm_to_vmem [thread:$0]  (!%p8731_p5), %s8768_s13, 384, %s8770_s19, %s8774_s21, %s9746_s2, %s9746_s2, %s9745_s17  }
 0x237   : > { %s9749_s24 = sld [smem:[#allocation87_spill]] }
 0x23d   : > { %p9750_p9 = scmp.ne.s32.totalorder %s9749_s24, 0 }
 0x23e   : > { %s1120_s7 = sand.u32 (!%p9750_p9), 1, %s8116_s28   ;;  %p9751_p8 = scmp.ne.s32.totalorder (!%p9750_p9), %s9740_s23, 0 }
 0x23f   : > { %1118 = sbr.rel (%p9750_p9) target bundleno = 5531 (0x159b), region = 140  ;;  %s6252_s27 = sshll.u32 (!%p9750_p9), %s1120_s7, 4 }
 0x240   : > { %s1121_s3 = scalar_lea.sflag (!%p9750_p9), [#allocation7], %s1120_s7  ;;  %s8802_s14 = scalar_lea.vmem (!%p9750_p9), [#allocation6], %s6252_s27 }
 0x246   : > { %8047 = dma.done.wait (%p9751_p8), %s1121_s3, 256  }
 0x247   : > { %8049 = vsyncadd (%p9751_p8), %s1121_s3, 4294967040  ;;  %s9752_s4 = sld [smem:[#allocation86_spill]]  ;;  %s6912_s16 = smul.u32 24, %s1120_s7 }
 0x249   : > { %s8809_s19 = scalar_lea.vmem [#allocation9], %s6912_s16 }
 0x24d   : > { %s1129_s20 = sand.u32 1, %s9752_s4  }
 0x24e   : > { %s1130_s21 = scalar_lea.sflag [#allocation10], %s1129_s20 }
 0x24f   : > { %8051 = dma.done.wait (%p9751_p8), %s1130_s21, 384  }
 0x250   : > { %8053 = vsyncadd (%p9751_p8), %s1130_s21, 4294966912  ;;  %p9753_p5 = scmp.eq.s32.totalorder %s9752_s4, 0 }
 0x252   : > { %8055 = dma.done.wait (%p9753_p5), [#allocation10], 1024   ;;  %p9754_p2 = pmov %p9753_p5 }
 0x254   : > { %8057 = vsyncadd (%p9754_p2), [#allocation10], 4294966272  ;;  %p9755_p7 = pmov %p9754_p2 }
 0x255   : > { %p9756_p6 = pmov %p9754_p2 }
 0x256   : > { %8059 = dma.done.wait (%p9755_p7), [#allocation13], 1040  }
 0x257   : > { %8061 = vsyncadd (%p9756_p6), [#allocation13], 4294966256  ;;  %p9757_p3 = pmov %p9754_p2 }
 0x258   : > { %p9758_p11 = pmov %p9754_p2 }
 0x259   : > { %8063 = dma.done.wait (%p9757_p3), [#allocation16], 1040  }
 0x25a   : > { %8065 = vsyncadd (%p9758_p11), [#allocation16], 4294966256  ;;  %p9759_p1 = pmov %p9754_p2 }
 0x25c   : > { %8067 = dma.done.wait (%p9759_p1), [#allocation19], 1040   ;;  %p9760_p13 = pmov %p9759_p1 }
 0x25d   : > { %p9761_p10 = pmov %p9759_p1 }
 0x25e   : > { %8069 = vsyncadd (%p9760_p13), [#allocation19], 4294966256 }
 0x25f   : > { %8071 = dma.done.wait (%p9761_p10), [#allocation22], 32   ;;  %p9762_p4 = pmov %p9759_p1 }
 0x260   : > { %p9763_p12 = pmov %p9759_p1 }
 0x261   : > { %8073 = vsyncadd (%p9762_p4), [#allocation22], 4294967264 }
 0x262   : > { %8075 = dma.done.wait (%p9763_p12), [#allocation25], 1040   ;;  %p9764_p0 = pmov %p9759_p1 }
 0x264   : > { %8077 = vsyncadd (%p9764_p0), [#allocation25], 4294966256  ;;  %p9765_p9 = pmov %p9764_p0 }
 0x265   : > { %p9766_p8 = pmov %p9764_p0 }
 0x266   : > { %8079 = dma.done.wait (%p9765_p9), [#allocation28], 1040  }
 0x267   : > { %8081 = vsyncadd (%p9766_p8), [#allocation28], 4294966256  ;;  %p9767_p5 = pmov %p9764_p0 }
 0x268   : > { %p9768_p2 = pmov %p9764_p0 }
 0x269   : > { %8083 = dma.done.wait (%p9767_p5), [#allocation31], 1040  }
 0x26a   : > { %8085 = vsyncadd (%p9768_p2), [#allocation31], 4294966256  ;;  %p9769_p7 = pmov %p9764_p0 }
 0x26b   : > { %p9770_p6 = pmov %p9764_p0 }
 0x26c   : > { %8087 = dma.done.wait (%p9769_p7), [#allocation34], 4096  }
 0x26d   : > { %8089 = vsyncadd (%p9770_p6), [#allocation34], 4294963200  ;;  %s9771_s23 = sld [smem:[#allocation82_spill]]  ;;  %s9772_s17 = sld [smem:[#allocation85_spill]] }
 0x26e   : > { %s9773_s2 = sld [smem:[#allocation54_spill]]  ;;  %s9774_s13 = sld [smem:[#allocation55_spill]] }
 0x26f   : > { %s9775_s4 = sld [smem:[#allocation84_spill]] }
 0x273   : > { %s8852_s6 = sand.u32 1, %s9771_s23   ;;  %p1296_p3 = scmp.lt.s32.totalorder %s9772_s17, 1 }
 0x274   : > { %s6270_s26 = sshll.u32 %s8852_s6, 3 }
 0x275   : > { %s9818_s17 = smov (!%p1296_p3, %s9772_s17), 1  ;;  %s8863_s27 = scalar_lea.vmem [#allocation36], %s6270_s26 }
 0x276   : > { %s1298_s24 = scalar_lea.vmem %s9773_s2, %s9818_s17  ;;  %s1301_s7 = scalar_lea.vmem %s9774_s13, %s9818_s17 }
 0x277   : > { %s8865_s3 = scalar_lea.vmem [#allocation37], %s6270_s26  ;;  %p6272_p11 = scmp.ne.s32.totalorder %s9775_s4, 0 }
 0x278   : > { %v7246_v0 = vld [vmem:[#allocation14] sm:$0xff] (!%p6272_p11)   ;;  %v8196_v1 = vmov (!%p6272_p11), 0.0   ;;  %v7248_v3 = vld [vmem:[#allocation14 + $0x8] sm:$0xff] (!%p6272_p11)   ;;  %vm8197_vm0 = vmmov (!%p6272_p11), 0   ;;  %v7250_v5 = vld [vmem:[#allocation14 + $0x10] sm:$0xff] (!%p6272_p11)   ;;  %s9776_s20 = sld [smem:[#allocation67_spill]] (!%p6272_p11) }
 0x279   : > { %1306 = sbr.rel (%p6272_p11) target bundleno = 1111 (0x457), region = 220  ;;  %6638 = vmatprep.subr.bf16.mxu0 (!%p6272_p11), %v8196_v1  ;;  %6658 = vmatprep.subr.bf16.mxu1 (!%p6272_p11), %v8196_v1  ;;  %v7247_v2 = vld [vmem:[#allocation17] sm:$0xff] (!%p6272_p11)   ;;  %v7249_v4 = vld [vmem:[#allocation17 + $0x8] sm:$0xff] (!%p6272_p11)   ;;  %v7251_v6 = vld [vmem:[#allocation17 + $0x10] sm:$0xff] (!%p6272_p11)   ;;  %s8198_s16 = smov (!%p6272_p11), 64   ;;  %vm1721_vm1 = vcmask (!%p6272_p11), 261120  }
 0x27a   : > { %6639 = vmatpush3.bf16.msra.mxu0 (!%p6272_p11), %v7246_v0  ;;  %6654 = vmatprep.mubr.msk.bf16.mxu0 (!%p6272_p11), %vm8197_vm0, %v8196_v1  ;;  %v7252_v7 = vld [vmem:[#allocation14 + $0x18] sm:$0xff] (!%p6272_p11)   ;;  %v7254_v9 = vld [vmem:[#allocation14 + $0x20] sm:$0xff] (!%p6272_p11)   ;;  %v7256_v11 = vld [vmem:[#allocation14 + $0x28] sm:$0xff] (!%p6272_p11)   ;;  %s8199_s21 = smov (!%p6272_p11), 96   ;;  %s8200_s23 = smov (!%p6272_p11), 32   ;;  %vm2749_vm2 = vcmask (!%p6272_p11), 257024  }
 0x27b   : > { %6659 = vmatpush3.bf16.msra.mxu1 (!%p6272_p11), %v7247_v2  ;;  %6640 = vmatprep.subr.bf16.mxu0 (!%p6272_p11), %v8196_v1  ;;  %v7253_v8 = vld [vmem:[#allocation17 + $0x18] sm:$0xff] (!%p6272_p11)   ;;  %v7255_v10 = vld [vmem:[#allocation17 + $0x20] sm:$0xff] (!%p6272_p11)   ;;  %v7257_v12 = vld [vmem:[#allocation17 + $0x28] sm:$0xff] (!%p6272_p11)  }
 0x27c   : > { %6660 = vmatprep.subr.bf16.mxu1 (!%p6272_p11), %v8196_v1  ;;  %6674 = vmatprep.mubr.msk.bf16.mxu1 (!%p6272_p11), %vm8197_vm0, %v8196_v1  ;;  %v7258_v13 = vld [vmem:[#allocation14 + $0x30] sm:$0xff] (!%p6272_p11)   ;;  %v7260_v15 = vld [vmem:[#allocation14 + $0x38] sm:$0xff] (!%p6272_p11)   ;;  %v7268_v29 = vld [vmem:[#allocation29 + $0x18] sm:$0xff] (!%p6272_p11)  }
 0x27d   : > { %v7259_v14 = vld [vmem:[#allocation17 + $0x30] sm:$0xff] (!%p6272_p11)   ;;  %v7261_v16 = vld [vmem:[#allocation17 + $0x38] sm:$0xff] (!%p6272_p11)   ;;  %v7276_v37 = vld [vmem:[#allocation29 + $0x38] sm:$0xff] (!%p6272_p11)  }
 0x27e   : > { %6641 = vmatpush3.bf16.msra.mxu0 (!%p6272_p11), %v7248_v3  ;;  %v1307_v17 = vld [vmem:[%s8802_s14] sm:$0xff] (!%p6272_p11)  ;;  %v1308_v18 = vld [vmem:[%s8802_s14 + $0x8] sm:$0xff] (!%p6272_p11)  ;;  %v1311_v39 = vld [vmem:[%s8809_s19 + $0x10] sm:$0xff] (!%p6272_p11) }
 0x27f   : > { %6661 = vmatpush3.bf16.msra.mxu1 (!%p6272_p11), %v7249_v4  ;;  %6642 = vmatprep.subr.bf16.mxu0 (!%p6272_p11), %v8196_v1  ;;  %v7262_v19 = vld [vmem:[#allocation29] sm:$0xff] (!%p6272_p11)   ;;  %v1329_v21 = vpack.c.bf16 (!%p6272_p11), %v1308_v18, %v1307_v17  ;;  %v7264_v22 = vld [vmem:[#allocation29 + $0x8] sm:$0xff] (!%p6272_p11)   ;;  %v7266_v27 = vld [vmem:[#allocation29 + $0x10] sm:$0xff] (!%p6272_p11)   ;;  %v2156_v40 = vpack.c.bf16 (!%p6272_p11), %v1311_v39, %v1311_v39 }
 0x280   : > { %6662 = vmatprep.subr.bf16.mxu1 %v8196_v1  ;;  %v7263_v20 = vld [vmem:[%s9776_s20] sm:$0xff]   ;;  %v7265_v23 = vld [vmem:[%s9776_s20 + $0x8] sm:$0xff]   ;;  %v7267_v28 = vld [vmem:[%s9776_s20 + $0x10] sm:$0xff]  }
 0x281   : > { %v1309_v24 = vld [vmem:[%s8809_s19] sm:$0xff]  ;;  %v1310_v25 = vld [vmem:[%s8809_s19 + $0x8] sm:$0xff]  ;;  %v7275_v36 = vld [vmem:[%s9776_s20 + $0x30] sm:$0xff]   ;;  %s9777_s19 = sld [smem:[#allocation68_spill]] }
 0x282   : > { %6643 = vmatpush3.bf16.msra.mxu0 %v7250_v5  ;;  %v2155_v26 = vpack.c.bf16 %v1310_v25, %v1309_v24  ;;  %v7269_v30 = vld [vmem:[%s9776_s20 + $0x18] sm:$0xff]   ;;  %v7271_v32 = vld [vmem:[%s9776_s20 + $0x20] sm:$0xff]   ;;  %v7273_v34 = vld [vmem:[%s9776_s20 + $0x28] sm:$0xff]  }
 0x283   : > { %6663 = vmatpush3.bf16.msra.mxu1 %v7251_v6  ;;  %6644 = vmatprep.subr.bf16.mxu0 %v8196_v1  ;;  %v7270_v31 = vld [vmem:[#allocation29 + $0x20] sm:$0xff]   ;;  %v7272_v33 = vld [vmem:[#allocation29 + $0x28] sm:$0xff]   ;;  %v7274_v35 = vld [vmem:[#allocation29 + $0x30] sm:$0xff]  }
 0x284   : > { %6664 = vmatprep.subr.bf16.mxu1 %v8196_v1  ;;  %v7277_v38 = vld [vmem:[%s9776_s20 + $0x38] sm:$0xff]   ;;  %v6273_v41 = vld [vmem:[#allocation15] ss:$0 sm:$0xff]  ;;  %v6286_v52 = vld [vmem:[#allocation18] ss:$0 sm:$0xff] }
 0x285   : > { %v6299_v55 = vld [vmem:[#allocation30] ss:$0 sm:$0xff] }
 0x286   : > { %6645 = vmatpush3.bf16.msra.mxu0 %v7252_v7  ;;  %v8201_v7 = vmov 1983009808  }
 0x287   : > { %6665 = vmatpush3.bf16.msra.mxu1 %v7253_v8  ;;  %6646 = vmatprep.subr.bf16.mxu0 %v8196_v1  ;;  %v6326_v57 = vld [vmem:[%s9777_s19] ss:$0 sm:$0xff]  ;;  %v1448_v8 = vunpack.c.l.s4 %v8201_v7 }
 0x288   : > { %6666 = vmatprep.subr.bf16.mxu1 %v8196_v1 }
 0x28a   : > { %6647 = vmatpush3.bf16.msra.mxu0 %v7254_v9  ;;  %v1450_v9 = vlaneseq }
 0x28b   : > { %6667 = vmatpush3.bf16.msra.mxu1 %v7255_v10  ;;  %6648 = vmatprep.subr.bf16.mxu0 %v8196_v1  ;;  %v8202_v10 = vmov 1934713408  }
 0x28c   : > { %6668 = vmatprep.subr.bf16.mxu1 %v8196_v1 }
 0x28e   : > { %6649 = vmatpush3.bf16.msra.mxu0 %v7256_v11  ;;  %v1480_v11 = vunpack.c.l.s4 %v8202_v10 }
 0x28f   : > { %6669 = vmatpush3.bf16.msra.mxu1 %v7257_v12  ;;  %6650 = vmatprep.subr.bf16.mxu0 %v8196_v1  ;;  %v1449_v12 = vunpack.c.0.s8 %v1448_v8 }
 0x290   : > { %6670 = vmatprep.subr.bf16.mxu1 %v8196_v1 }
 0x292   : > { %6651 = vmatpush3.bf16.msra.mxu0 %v7258_v13  ;;  %v1451_v13 = vshrl.u32 %v1450_v9, 7 }
 0x293   : > { %6671 = vmatpush3.bf16.msra.mxu1 %v7259_v14  ;;  %6652 = vmatprep.subr.bf16.mxu0 %v8196_v1 }
 0x294   : > { %6672 = vmatprep.subr.bf16.mxu1 %v8196_v1  ;;  %v8962_v17 = vsub.s32 %v1449_v12, %v1451_v13 }
 0x296   : > { %6653 = vmatpush3.bf16.msra.mxu0 %v7260_v15 }
 0x297   : > { %6673 = vmatpush3.bf16.msra.mxu1 %v7261_v16  ;;  %6678 = vmatprep.subr.bf16.mxu0 %v7262_v19  ;;  %v1481_v16 = vunpack.c.0.s8 %v1480_v11 }
 0x298   : > { %6698 = vmatprep.subr.bf16.mxu1 %v7263_v20 }
 0x299   : > { %6655 = vmatmul.mubr.bf16.vlgmr.msra.gmra.mrb[0].mxu0 %v1329_v21  ;;  %v8966_v24 = vsub.s32 %v1481_v16, %v1451_v13 }
 0x29a   : > { %6679 = vmatpush3.bf16.msra.mxu0 %v7262_v19  ;;  %6675 = vmatmul.mubr.bf16.vlgmr.msra.gmra.mrb[0].mxu1 %v1329_v21 }
 0x29b   : > { %6699 = vmatpush3.bf16.msra.mxu1 %v7263_v20  ;;  %6680 = vmatprep.subr.bf16.mxu0 %v7264_v22 }
 0x29c   : > { %6700 = vmatprep.subr.bf16.mxu1 %v7265_v23  ;;  %6694 = vmatprep.mubr.bf16.mxu0 %v2155_v26 }
 0x29d   : > { %6714 = vmatprep.mubr.bf16.mxu1 %v2155_v26 }
 0x29e   : > { %6681 = vmatpush3.bf16.msra.mxu0 %v7264_v22 }
 0x29f   : > { %6701 = vmatpush3.bf16.msra.mxu1 %v7265_v23  ;;  %6682 = vmatprep.subr.bf16.mxu0 %v7266_v27 }
 0x2a0   : > { %6702 = vmatprep.subr.bf16.mxu1 %v7267_v28 }
 0x2a2   : > { %6683 = vmatpush3.bf16.msra.mxu0 %v7266_v27 }
 0x2a3   : > { %6703 = vmatpush3.bf16.msra.mxu1 %v7267_v28  ;;  %6684 = vmatprep.subr.bf16.mxu0 %v7268_v29 }
 0x2a4   : > { %6704 = vmatprep.subr.bf16.mxu1 %v7269_v30 }
 0x2a6   : > { %6685 = vmatpush3.bf16.msra.mxu0 %v7268_v29 }
 0x2a7   : > { %6705 = vmatpush3.bf16.msra.mxu1 %v7269_v30  ;;  %6686 = vmatprep.subr.bf16.mxu0 %v7270_v31 }
 0x2a8   : > { %6706 = vmatprep.subr.bf16.mxu1 %v7271_v32 }
 0x2aa   : > { %6687 = vmatpush3.bf16.msra.mxu0 %v7270_v31 }
 0x2ab   : > { %6707 = vmatpush3.bf16.msra.mxu1 %v7271_v32  ;;  %6688 = vmatprep.subr.bf16.mxu0 %v7272_v33 }
 0x2ac   : > { %6708 = vmatprep.subr.bf16.mxu1 %v7273_v34 }
 0x2ae   : > { %6689 = vmatpush3.bf16.msra.mxu0 %v7272_v33 }
 0x2af   : > { %6709 = vmatpush3.bf16.msra.mxu1 %v7273_v34  ;;  %6690 = vmatprep.subr.bf16.mxu0 %v7274_v35 }
 0x2b0   : > { %6710 = vmatprep.subr.bf16.mxu1 %v7275_v36 }
 0x2b2   : > { %6691 = vmatpush3.bf16.msra.mxu0 %v7274_v35 }
 0x2b3   : > { %6711 = vmatpush3.bf16.msra.mxu1 %v7275_v36  ;;  %6692 = vmatprep.subr.bf16.mxu0 %v7276_v37 }
 0x2b4   : > { %6712 = vmatprep.subr.bf16.mxu1 %v7277_v38 }
 0x2b6   : > { %6693 = vmatpush3.bf16.msra.mxu0 %v7276_v37 }
 0x2b7   : > { %6713 = vmatpush3.bf16.msra.mxu1 %v7277_v38 }
 0x2b9   : > { %6695 = vmatmul.mubr.bf16.vlgmr.msra.gmra.mrb[4].mxu0 %v2156_v40 }
 0x2ba   : > { %6715 = vmatmul.mubr.bf16.vlgmr.msra.gmra.mrb[4].mxu1 %v2156_v40 }
 0x36c   : > { %v1418_v42 = vpop.f32.mrb[0].mxu0 }
 0x36d   : > { %v8881_v43 = vadd.f32 %v6273_v41, %v1418_v42  ;;  %v6656_v44 = vpop.f32.mrb[1].mxu0  ;;  %v1831_v45 = vpop.f32.mrb[0].mxu1 }
 0x36e   : > { %v1421_v46 = vpop.f32.mrb[2].mxu0  ;;  %v6676_v47 = vpop.f32.mrb[1].mxu1  ;;  %v8893_v53 = vadd.f32 %v6286_v52, %v1831_v45 }
 0x36f   : > { %1433 = vrot.lane.b32.xlu1 %v8881_v43, %s8198_s16  ;;  %1427 = vrot.lane.b32.xlu0 %v8881_v43, %s8199_s21  ;;  %v6657_v48 = vpop.f32.mrb[3].mxu0  ;;  %v1834_v49 = vpop.f32.mrb[2].mxu1  ;;  %v8887_v51 = vadd.f32 %v6273_v41, %v1421_v46 }
 0x370   : > { %v6677_v50 = vpop.f32.mrb[3].mxu1  ;;  %v8899_v54 = vadd.f32 %v6286_v52, %v1834_v49 }
 0x373   : > { %1439 = vrot.lane.b32.xlu0 %v8881_v43, %s8200_s23  ;;  %1435 = vrot.lane.b32.xlu1 %v8887_v51, %s8198_s16 }
 0x377   : > { %1840 = vrot.lane.b32.xlu0 %v8893_v53, %s8199_s21  ;;  %1441 = vrot.lane.b32.xlu1 %v8887_v51, %s8200_s23 }
 0x37b   : > { %1846 = vrot.lane.b32.xlu0 %v8893_v53, %s8198_s16  ;;  %1842 = vrot.lane.b32.xlu1 %v8899_v54, %s8199_s21 }
 0x37f   : > { %1852 = vrot.lane.b32.xlu0 %v8893_v53, %s8200_s23  ;;  %1848 = vrot.lane.b32.xlu1 %v8899_v54, %s8198_s16 }
 0x383   : > { %1854 = vrot.lane.b32.xlu1 %v8899_v54, %s8200_s23  ;;  %1429 = vrot.lane.b32.xlu0 %v8887_v51, %s8199_s21 }
 0x38c   : > { %v6696_v56 = vpop.f32.mrb[4].mxu0 }
 0x38d   : > { %v8914_v58 = vadd.f32 %v6696_v56, %v6299_v55  ;;  %v2245_v59 = vpop.f32.mrb[5].mxu0  ;;  %v6716_v60 = vpop.f32.mrb[4].mxu1 }
 0x38e   : > { %v6697_v61 = vpop.f32.mrb[6].mxu0  ;;  %v2867_v62 = vpop.f32.mrb[5].mxu1  ;;  %v8916_v63 = vadd.f32 %v6716_v60, %v6326_v57  ;;  %v8926_v3 = vadd.f32 %v6299_v55, %v2245_v59 }
 0x38f   : > { %v6717_v0 = vpop.f32.mrb[6].mxu1  ;;  %2275 = vrot.lane.b32.xlu1 %v8914_v58, %s8198_s16  ;;  %2266 = vrot.lane.b32.xlu0 %v8914_v58, %s8199_s21  ;;  %v2248_v1 = vpop.f32.mrb[7].mxu0  ;;  %v8932_v4 = vadd.f32 %v6326_v57, %v2867_v62 }
 0x390   : > { %v2870_v2 = vpop.f32.mrb[7].mxu1  ;;  %v8942_v5 = vadd.f32 %v6299_v55, %v2248_v1 }
 0x391   : > { %v8952_v6 = vadd.f32 %v6326_v57, %v2870_v2 }
 0x393   : > { %2888 = vrot.lane.b32.xlu1 %v8916_v63, %s8199_s21  ;;  %2284 = vrot.lane.b32.xlu0 %v8914_v58, %s8200_s23 }
 0x397   : > { %2897 = vrot.lane.b32.xlu0 %v8916_v63, %s8198_s16  ;;  %2271 = vrot.lane.b32.xlu1 %v8926_v3, %s8198_s16 }
 0x39b   : > { %2884 = vrot.lane.b32.xlu1 %v8932_v4, %s8199_s21  ;;  %2262 = vrot.lane.b32.xlu0 %v8926_v3, %s8199_s21 }
 0x39f   : > { %2902 = vrot.lane.b32.xlu1 %v8932_v4, %s8200_s23  ;;  %2280 = vrot.lane.b32.xlu0 %v8926_v3, %s8200_s23 }
 0x3a3   : > { %2264 = vrot.lane.b32.xlu1 %v8942_v5, %s8199_s21  ;;  %2893 = vrot.lane.b32.xlu0 %v8932_v4, %s8198_s16 }
 0x3a7   : > { %2282 = vrot.lane.b32.xlu1 %v8942_v5, %s8200_s23  ;;  %2273 = vrot.lane.b32.xlu0 %v8942_v5, %s8198_s16 }
 0x3ab   : > { %2895 = vrot.lane.b32.xlu1 %v8952_v6, %s8198_s16  ;;  %2886 = vrot.lane.b32.xlu0 %v8952_v6, %s8199_s21 }
 0x3af   : > { %2906 = vrot.lane.b32.xlu1 %v8916_v63, %s8200_s23  ;;  %2904 = vrot.lane.b32.xlu0 %v8952_v6, %s8200_s23 }
 0x3e1   : > { %v1434_v14 = vpop.permute.xlu1 %1433  ;;  %v1428_v15 = vpop.permute.xlu0 %1427 }
 0x3e2   : > { %v1445_v18 = vcombine.low %v8881_v43, %v1434_v14  ;;  %v1446_v19 = vcombine.high %v8881_v43, %v1434_v14 }
 0x3e4   : > { %v1453_v25 = vrot.slane %v1445_v18, %v8962_v17  ;;  %v1460_v26 = vrot.slane %v1446_v19, %v8962_v17 }
 0x3e5   : > { %v1440_v20 = vpop.permute.xlu0 %1439  ;;  %v1436_v21 = vpop.permute.xlu1 %1435 }
 0x3e6   : > { %v1461_v22 = vcombine.low %v1428_v15, %v1440_v20  ;;  %v1462_v23 = vcombine.high %v1428_v15, %v1440_v20  ;;  %v1513_v39 = vcombine.low %v8887_v51, %v1436_v21  ;;  %v1514_v40 = vcombine.high %v8887_v51, %v1436_v21 }
 0x3e8   : > { %v1469_v27 = vrot.slane %v1461_v22, %v8962_v17  ;;  %v1476_v28 = vrot.slane %v1462_v23, %v8962_v17  ;;  %v8987_v51 = vrot.slane %v1513_v39, %v8962_v17  ;;  %v8990_v56 = vrot.slane %v1514_v40, %v8962_v17 }
 0x3e9   : > { %v1841_v29 = vpop.permute.xlu0 %1840  ;;  %v8972_v30 = vpop.permute.xlu1 %1441 }
 0x3ea   : > { %v1477_v31 = vcombine.low %v1453_v25, %v1469_v27  ;;  %v1478_v32 = vcombine.high %v1453_v25, %v1469_v27  ;;  %v1493_v33 = vcombine.low %v1460_v26, %v1476_v28  ;;  %v1494_v34 = vcombine.high %v1460_v26, %v1476_v28 }
 0x3ec   : > { %v1485_v35 = vrot.slane %v1477_v31, %v8966_v24  ;;  %v1492_v36 = vrot.slane %v1478_v32, %v8966_v24  ;;  %v1501_v37 = vrot.slane %v1493_v33, %v8966_v24  ;;  %v1508_v38 = vrot.slane %v1494_v34, %v8966_v24 }
 0x3ed   : > { %v1847_v41 = vpop.permute.xlu0 %1846  ;;  %v1843_v42 = vpop.permute.xlu1 %1842 }
 0x3ee   : > { %v1581_v43 = vcombine.low %v1485_v35, %v1492_v36  ;;  %v6282_v44 = vcombine.high %v1485_v35, %v1492_v36  ;;  %v1597_v45 = vcombine.low %v1501_v37, %v1508_v38  ;;  %v6283_v46 = vcombine.high %v1501_v37, %v1508_v38 }
 0x3ef   : > { %v1858_v47 = vcombine.low %v8893_v53, %v1847_v41  ;;  %v1859_v48 = vcombine.high %v8893_v53, %v1847_v41 }
 0x3f0   : > { %v1588_v49 = vrot.slane %v1581_v43, %v8962_v17  ;;  %v1596_v50 = vrot.slane %v6282_v44, %v8962_v17  ;;  %v1604_v52 = vrot.slane %v1597_v45, %v8962_v17  ;;  %v1612_v55 = vrot.slane %v6283_v46, %v8962_v17 }
 0x3f1   : > { %v1866_v57 = vrot.slane %v1858_v47, %v8962_v17  ;;  %v1873_v59 = vrot.slane %v1859_v48, %v8962_v17  ;;  %v1853_v60 = vpop.permute.xlu0 %1852  ;;  %v1849_v53 = vpop.permute.xlu1 %1848 }
 0x3f2   : > { %v1613_v61 = vcombine.low %v1588_v49, %v1596_v50  ;;  %v1614_v62 = vcombine.high %v1588_v49, %v1596_v50  ;;  %v1629_v0 = vcombine.low %v1604_v52, %v1612_v55  ;;  %v1630_v1 = vcombine.high %v1604_v52, %v1612_v55 }
 0x3f3   : > { %v1874_v2 = vcombine.low %v1841_v29, %v1853_v60  ;;  %v1875_v7 = vcombine.high %v1841_v29, %v1853_v60  ;;  %v1926_v8 = vcombine.low %v8899_v54, %v1849_v53  ;;  %v1927_v9 = vcombine.high %v8899_v54, %v1849_v53 }
 0x3f4   : > { %v8997_v10 = vrot.slane %v1613_v61, %v8966_v24  ;;  %v9000_v11 = vrot.slane %v1614_v62, %v8966_v24  ;;  %v9003_v12 = vrot.slane %v1629_v0, %v8966_v24  ;;  %v9006_v13 = vrot.slane %v1630_v1, %v8966_v24 }
 0x3f5   : > { %v1882_v14 = vrot.slane %v1874_v2, %v8962_v17  ;;  %v1889_v15 = vrot.slane %v1875_v7, %v8962_v17  ;;  %v1934_v16 = vrot.slane %v1926_v8, %v8962_v17  ;;  %v1941_v54 = vrot.slane %v1927_v9, %v8962_v17  ;;  %v1855_v18 = vpop.permute.xlu1 %1854  ;;  %v1430_v19 = vpop.permute.xlu0 %1429 }
 0x3f6   : > { %v1645_v20 = vcombine.low %v8997_v10, %v9003_v12  ;;  %v1646_v21 = vcombine.high %v8997_v10, %v9003_v12  ;;  %v1647_v22 = vcombine.low %v9000_v11, %v9006_v13  ;;  %v1648_v23 = vcombine.high %v9000_v11, %v9006_v13 }
 0x3f7   : > { %v1890_v25 = vcombine.low %v1866_v57, %v1882_v14  ;;  %v1891_v26 = vcombine.high %v1866_v57, %v1882_v14  ;;  %v1906_v27 = vcombine.low %v1873_v59, %v1889_v15  ;;  %v1907_v28 = vcombine.high %v1873_v59, %v1889_v15 }
 0x3f8   : > { %v1942_v29 = vcombine.low %v1843_v42, %v1855_v18  ;;  %v1943_v31 = vcombine.high %v1843_v42, %v1855_v18  ;;  %v1529_v32 = vcombine.low %v1430_v19, %v8972_v30  ;;  %v1530_v33 = vcombine.high %v1430_v19, %v8972_v30 }
 0x3f9   : > { %v1898_v34 = vrot.slane %v1890_v25, %v8966_v24  ;;  %v1905_v35 = vrot.slane %v1891_v26, %v8966_v24  ;;  %v1914_v36 = vrot.slane %v1906_v27, %v8966_v24  ;;  %v1921_v37 = vrot.slane %v1907_v28, %v8966_v24 }
 0x3fa   : > { %v1950_v38 = vrot.slane %v1942_v29, %v8962_v17  ;;  %v1957_v39 = vrot.slane %v1943_v31, %v8962_v17  ;;  %v1537_v40 = vrot.slane %v1529_v32, %v8962_v17  ;;  %v1544_v41 = vrot.slane %v1530_v33, %v8962_v17 }
 0x3fb   : > { %v1994_v42 = vcombine.low %v1898_v34, %v1905_v35  ;;  %v6295_v43 = vcombine.high %v1898_v34, %v1905_v35  ;;  %v2010_v44 = vcombine.low %v1914_v36, %v1921_v37  ;;  %v6296_v30 = vcombine.high %v1914_v36, %v1921_v37 }
 0x3fc   : > { %v1958_v45 = vcombine.low %v1934_v16, %v1950_v38  ;;  %v1959_v46 = vcombine.high %v1934_v16, %v1950_v38  ;;  %v1974_v47 = vcombine.low %v1941_v54, %v1957_v39  ;;  %v1975_v48 = vcombine.high %v1941_v54, %v1957_v39 }
 0x3fd   : > { %v2001_v49 = vrot.slane %v1994_v42, %v8962_v17  ;;  %v2009_v50 = vrot.slane %v6295_v43, %v8962_v17  ;;  %v2017_v52 = vrot.slane %v2010_v44, %v8962_v17  ;;  %v2025_v55 = vrot.slane %v6296_v30, %v8962_v17 }
 0x3fe   : > { %v1966_v57 = vrot.slane %v1958_v45, %v8966_v24  ;;  %v1973_v59 = vrot.slane %v1959_v46, %v8966_v24  ;;  %v1982_v60 = vrot.slane %v1974_v47, %v8966_v24  ;;  %v1989_v53 = vrot.slane %v1975_v48, %v8966_v24 }
 0x3ff   : > { %v2026_v61 = vcombine.low %v2001_v49, %v2009_v50  ;;  %v2027_v62 = vcombine.high %v2001_v49, %v2009_v50  ;;  %v2042_v0 = vcombine.low %v2017_v52, %v2025_v55  ;;  %v2043_v1 = vcombine.high %v2017_v52, %v2025_v55 }
 0x400   : > { %v2062_v2 = vcombine.low %v1966_v57, %v1973_v59  ;;  %v6297_v7 = vcombine.high %v1966_v57, %v1973_v59  ;;  %v2078_v8 = vcombine.low %v1982_v60, %v1989_v53  ;;  %v6298_v9 = vcombine.high %v1982_v60, %v1989_v53 }
 0x401   : > { %v2034_v14 = vrot.slane %v2026_v61, %v8966_v24  ;;  %v2041_v15 = vrot.slane %v2027_v62, %v8966_v24  ;;  %v2050_v16 = vrot.slane %v2042_v0, %v8966_v24  ;;  %v2057_v54 = vrot.slane %v2043_v1, %v8966_v24  ;;  %v2276_v18 = vpop.permute.xlu1 %2275  ;;  %v2267_v19 = vpop.permute.xlu0 %2266 }
 0x402   : > { %v2069_v25 = vrot.slane %v2062_v2, %v8962_v17  ;;  %v2077_v26 = vrot.slane %v6297_v7, %v8962_v17  ;;  %v2085_v27 = vrot.slane %v2078_v8, %v8962_v17  ;;  %v2093_v28 = vrot.slane %v6298_v9, %v8962_v17 }
 0x403   : > { %v2058_v29 = vcombine.low %v2034_v14, %v2050_v16  ;;  %v2059_v31 = vcombine.high %v2034_v14, %v2050_v16  ;;  %v2060_v32 = vcombine.low %v2041_v15, %v2057_v54  ;;  %v2061_v33 = vcombine.high %v2041_v15, %v2057_v54 }
 0x404   : > { %v2094_v34 = vcombine.low %v2069_v25, %v2077_v26  ;;  %v2095_v35 = vcombine.high %v2069_v25, %v2077_v26  ;;  %v2110_v36 = vcombine.low %v2085_v27, %v2093_v28  ;;  %v2111_v37 = vcombine.high %v2085_v27, %v2093_v28 }
 0x405   : > { %v1545_v38 = vcombine.low %v8987_v51, %v1537_v40  ;;  %v1546_v39 = vcombine.high %v8987_v51, %v1537_v40  ;;  %v1561_v42 = vcombine.low %v8990_v56, %v1544_v41  ;;  %v1562_v43 = vcombine.high %v8990_v56, %v1544_v41  ;;  %v9050_v44 = vpop.permute.xlu1 %2888  ;;  %v2285_v30 = vpop.permute.xlu0 %2284 }
 0x406   : > { %v2102_v45 = vrot.slane %v2094_v34, %v8966_v24  ;;  %v2109_v46 = vrot.slane %v2095_v35, %v8966_v24  ;;  %v2118_v47 = vrot.slane %v2110_v36, %v8966_v24  ;;  %v2125_v48 = vrot.slane %v2111_v37, %v8966_v24 }
 0x407   : > { %v1553_v49 = vrot.slane %v1545_v38, %v8966_v24  ;;  %v1560_v50 = vrot.slane %v1546_v39, %v8966_v24  ;;  %v1569_v51 = vrot.slane %v1561_v42, %v8966_v24  ;;  %v1576_v40 = vrot.slane %v1562_v43, %v8966_v24 }
 0x408   : > { %v2126_v56 = vcombine.low %v2102_v45, %v2118_v47  ;;  %v2127_v41 = vcombine.high %v2102_v45, %v2118_v47  ;;  %v2128_v52 = vcombine.low %v2109_v46, %v2125_v48  ;;  %v2129_v55 = vcombine.high %v2109_v46, %v2125_v48 }
 0x409   : > { %v1649_v57 = vcombine.low %v1553_v49, %v1560_v50  ;;  %v6284_v59 = vcombine.high %v1553_v49, %v1560_v50  ;;  %v1665_v60 = vcombine.low %v1569_v51, %v1576_v40  ;;  %v6285_v53 = vcombine.high %v1569_v51, %v1576_v40  ;;  %v9060_v61 = vpop.permute.xlu1 %2271  ;;  %v9062_v7 = vpop.permute.xlu0 %2897 }
 0x40a   : > { %v2130_v62 = vpack.c.bf16 %v2126_v56, %v2058_v29  ;;  %v2131_v0 = vpack.c.bf16 %v2127_v41, %v2059_v31  ;;  %v2132_v1 = vpack.c.bf16 %v2128_v52, %v2060_v32  ;;  %v2133_v2 = vpack.c.bf16 %v2129_v55, %v2061_v33 }
 0x40b   : > { %v1656_v8 = vrot.slane %v1649_v57, %v8962_v17  ;;  %v1664_v9 = vrot.slane %v6284_v59, %v8962_v17  ;;  %v1672_v14 = vrot.slane %v1665_v60, %v8962_v17  ;;  %v1680_v15 = vrot.slane %v6285_v53, %v8962_v17 }
 0x40c   : > { %2134 = vst.msk [vmem:[#allocation3] sm:$0xff] %vm1721_vm1, %v2130_v62  ;;  %2135 = vst.msk [vmem:[#allocation3 + $0x8] sm:$0xff] %vm1721_vm1, %v2131_v0  ;;  %v2425_v16 = vcombine.low %v8914_v58, %v2276_v18  ;;  %v2426_v54 = vcombine.high %v8914_v58, %v2276_v18  ;;  %v2441_v25 = vcombine.low %v2267_v19, %v2285_v30 }
 0x40d   : > { %2136 = vst.msk [vmem:[#allocation3 + $0x10] sm:$0xff] %vm1721_vm1, %v2132_v1  ;;  %2137 = vst.msk [vmem:[#allocation3 + $0x18] sm:$0xff] %vm1721_vm1, %v2133_v2  ;;  %v2442_v26 = vcombine.high %v2267_v19, %v2285_v30  ;;  %v1681_v27 = vcombine.low %v1656_v8, %v1664_v9  ;;  %v1682_v28 = vcombine.high %v1656_v8, %v1664_v9  ;;  %v9074_v32 = vpop.permute.xlu1 %2884  ;;  %v2263_v30 = vpop.permute.xlu0 %2262 }
 0x40e   : > { %v1697_v29 = vcombine.low %v1672_v14, %v1680_v15  ;;  %v1698_v31 = vcombine.high %v1672_v14, %v1680_v15  ;;  %v2433_v33 = vrot.slane %v2425_v16, %v8962_v17  ;;  %v2440_v34 = vrot.slane %v2426_v54, %v8962_v17 }
 0x40f   : > { %v2449_v35 = vrot.slane %v2441_v25, %v8962_v17  ;;  %v2456_v36 = vrot.slane %v2442_v26, %v8962_v17  ;;  %v1689_v37 = vrot.slane %v1681_v27, %v8966_v24  ;;  %v1696_v58 = vrot.slane %v1682_v28, %v8966_v24 }
 0x410   : > { %v1705_v18 = vrot.slane %v1697_v29, %v8966_v24  ;;  %v1712_v19 = vrot.slane %v1698_v31, %v8966_v24  ;;  %v3047_v10 = vcombine.low %v8916_v63, %v9062_v7  ;;  %v3048_v11 = vcombine.high %v8916_v63, %v9062_v7 }
 0x411   : > { %v2457_v38 = vcombine.low %v2433_v33, %v2449_v35  ;;  %v2458_v39 = vcombine.high %v2433_v33, %v2449_v35  ;;  %v2473_v42 = vcombine.low %v2440_v34, %v2456_v36  ;;  %v2474_v43 = vcombine.high %v2440_v34, %v2456_v36  ;;  %v2903_v49 = vpop.permute.xlu1 %2902  ;;  %v2281_v0 = vpop.permute.xlu0 %2280 }
 0x412   : > { %v1713_v45 = vcombine.low %v1689_v37, %v1705_v18  ;;  %v1714_v46 = vcombine.high %v1689_v37, %v1705_v18  ;;  %v1715_v47 = vcombine.low %v1696_v58, %v1712_v19  ;;  %v1716_v48 = vcombine.high %v1696_v58, %v1712_v19 }
 0x413   : > { %v2465_v50 = vrot.slane %v2457_v38, %v8966_v24  ;;  %v2472_v51 = vrot.slane %v2458_v39, %v8966_v24  ;;  %v2481_v40 = vrot.slane %v2473_v42, %v8966_v24  ;;  %v2488_v56 = vrot.slane %v2474_v43, %v8966_v24 }
 0x414   : > { %v1717_v41 = vpack.c.bf16 %v1713_v45, %v1645_v20  ;;  %v1718_v52 = vpack.c.bf16 %v1714_v46, %v1646_v21  ;;  %v1719_v55 = vpack.c.bf16 %v1715_v47, %v1647_v22  ;;  %v1720_v57 = vpack.c.bf16 %v1716_v48, %v1648_v23 }
 0x415   : > { %v2629_v59 = vcombine.low %v2465_v50, %v2472_v51  ;;  %v6312_v60 = vcombine.high %v2465_v50, %v2472_v51  ;;  %v2645_v53 = vcombine.low %v2481_v40, %v2488_v56  ;;  %v6313_v62 = vcombine.high %v2481_v40, %v2488_v56  ;;  %v2894_v42 = vpop.permute.xlu0 %2893 }
 0x416   : > { %1722 = vst.msk [vmem:[#allocation2] sm:$0xff] %vm1721_vm1, %v1717_v41  ;;  %1723 = vst.msk [vmem:[#allocation2 + $0x8] sm:$0xff] %vm1721_vm1, %v1718_v52  ;;  %v2289_v12 = vcombine.low %v8926_v3, %v9060_v61  ;;  %v2290_v13 = vcombine.high %v8926_v3, %v9060_v61  ;;  %v9117_v1 = vrot.slane %v3047_v10, %v8962_v17  ;;  %v2265_v3 = vpop.permute.xlu1 %2264 }
 0x417   : > { %1724 = vst.msk [vmem:[#allocation2 + $0x10] sm:$0xff] %vm1721_vm1, %v1719_v55  ;;  %1725 = vst.msk [vmem:[#allocation2 + $0x18] sm:$0xff] %vm1721_vm1, %v1720_v57  ;;  %v2636_v20 = vrot.slane %v2629_v59, %v8962_v17  ;;  %v2644_v21 = vrot.slane %v6312_v60, %v8962_v17  ;;  %v2652_v22 = vrot.slane %v2645_v53, %v8962_v17 }
 0x418   : > { %v2660_v23 = vrot.slane %v6313_v62, %v8962_v17  ;;  %v9120_v63 = vrot.slane %v3048_v11, %v8962_v17  ;;  %v2297_v2 = vrot.slane %v2289_v12, %v8962_v17  ;;  %v2304_v7 = vrot.slane %v2290_v13, %v8962_v17 }
 0x419   : > { %v2661_v61 = vcombine.low %v2636_v20, %v2644_v21  ;;  %v2662_v8 = vcombine.high %v2636_v20, %v2644_v21  ;;  %v2927_v15 = vcombine.low %v9074_v32, %v2903_v49  ;;  %v2928_v16 = vcombine.high %v9074_v32, %v2903_v49 }
 0x41a   : > { %v2677_v9 = vcombine.low %v2652_v22, %v2660_v23  ;;  %v2678_v14 = vcombine.high %v2652_v22, %v2660_v23  ;;  %v2305_v54 = vcombine.low %v2263_v30, %v2281_v0  ;;  %v2306_v25 = vcombine.high %v2263_v30, %v2281_v0  ;;  %v2283_v43 = vpop.permute.xlu1 %2282 }
 0x41b   : > { %v2669_v26 = vrot.slane %v2661_v61, %v8966_v24  ;;  %v2676_v27 = vrot.slane %v2662_v8, %v8966_v24  ;;  %v2935_v31 = vrot.slane %v2927_v15, %v8962_v17  ;;  %v2942_v33 = vrot.slane %v2928_v16, %v8962_v17  ;;  %v2274_v8 = vpop.permute.xlu0 %2273 }
 0x41c   : > { %v2685_v28 = vrot.slane %v2677_v9, %v8966_v24  ;;  %v2692_v29 = vrot.slane %v2678_v14, %v8966_v24  ;;  %v2313_v34 = vrot.slane %v2305_v54, %v8962_v17  ;;  %v2320_v35 = vrot.slane %v2306_v25, %v8962_v17 }
 0x41d   : > { %v2911_v40 = vcombine.low %v8932_v4, %v2894_v42  ;;  %v2912_v56 = vcombine.high %v8932_v4, %v2894_v42  ;;  %v2373_v41 = vcombine.low %v2265_v3, %v2283_v43  ;;  %v2374_v52 = vcombine.high %v2265_v3, %v2283_v43 }
 0x41e   : > { %v2693_v36 = vcombine.low %v2669_v26, %v2685_v28  ;;  %v2694_v32 = vcombine.high %v2669_v26, %v2685_v28  ;;  %v2695_v37 = vcombine.low %v2676_v27, %v2692_v29  ;;  %v2696_v58 = vcombine.high %v2676_v27, %v2692_v29 }
 0x41f   : > { %v2321_v18 = vcombine.low %v2297_v2, %v2313_v34  ;;  %v2322_v19 = vcombine.high %v2297_v2, %v2313_v34  ;;  %v2337_v38 = vcombine.low %v2304_v7, %v2320_v35  ;;  %v2338_v39 = vcombine.high %v2304_v7, %v2320_v35 }
 0x420   : > { %v6480_v30 = vpack.c.bf16 %v2693_v36, %v2693_v36  ;;  %v6483_v45 = vpack.c.bf16 %v2694_v32, %v2694_v32  ;;  %v6486_v46 = vpack.c.bf16 %v2695_v37, %v2695_v37  ;;  %v6489_v47 = vpack.c.bf16 %v2696_v58, %v2696_v58 }
 0x421   : > { %v2329_v48 = vrot.slane %v2321_v18, %v8966_v24  ;;  %v2336_v49 = vrot.slane %v2322_v19, %v8966_v24  ;;  %v2345_v50 = vrot.slane %v2337_v38, %v8966_v24  ;;  %v2352_v51 = vrot.slane %v2338_v39, %v8966_v24  ;;  %v2896_v38 = vpop.permute.xlu1 %2895 }
 0x422   : > { %2752 = vst.msk [vmem:[#allocation4 + $0x8] sm:$0xf] %vm2749_vm2, %v6480_v30  ;;  %2755 = vst.msk [vmem:[#allocation4 + $0x14] sm:$0xf] %vm2749_vm2, %v6483_v45  ;;  %v2919_v53 = vrot.slane %v2911_v40, %v8962_v17  ;;  %v2926_v62 = vrot.slane %v2912_v56, %v8962_v17  ;;  %v9147_v10 = vrot.slane %v2373_v41, %v8962_v17  ;;  %v2887_v45 = vpop.permute.xlu0 %2886 }
 0x423   : > { %2758 = vst.msk [vmem:[#allocation4 + $0x20] sm:$0xf] %vm2749_vm2, %v6486_v46  ;;  %2761 = vst.msk [vmem:[#allocation4 + $0x2c] sm:$0xf] %vm2749_vm2, %v6489_v47  ;;  %v2493_v55 = vcombine.low %v2329_v48, %v2336_v49  ;;  %v6308_v57 = vcombine.high %v2329_v48, %v2336_v49  ;;  %v2509_v59 = vcombine.low %v2345_v50, %v2352_v51 }
 0x424   : > { %v6309_v60 = vcombine.high %v2345_v50, %v2352_v51  ;;  %v9150_v11 = vrot.slane %v2374_v52, %v8962_v17  ;;  %v2943_v21 = vcombine.low %v2919_v53, %v2935_v31  ;;  %v2944_v22 = vcombine.high %v2919_v53, %v2935_v31 }
 0x425   : > { %v2500_v12 = vrot.slane %v2493_v55, %v8962_v17  ;;  %v2508_v4 = vrot.slane %v6308_v57, %v8962_v17  ;;  %v2516_v13 = vrot.slane %v2509_v59, %v8962_v17  ;;  %v2959_v23 = vcombine.low %v2926_v62, %v2942_v33 }
 0x426   : > { %v2524_v20 = vrot.slane %v6309_v60, %v8962_v17  ;;  %v2960_v0 = vcombine.high %v2926_v62, %v2942_v33  ;;  %v2951_v9 = vrot.slane %v2943_v21, %v8966_v24  ;;  %v2958_v14 = vrot.slane %v2944_v22, %v8966_v24 }
 0x427   : > { %v2525_v2 = vcombine.low %v2500_v12, %v2508_v4  ;;  %v2526_v7 = vcombine.high %v2500_v12, %v2508_v4  ;;  %v2967_v15 = vrot.slane %v2959_v23, %v8966_v24  ;;  %v2357_v50 = vcombine.low %v8942_v5, %v2274_v8  ;;  %v2907_v23 = vpop.permute.xlu1 %2906 }
 0x428   : > { %v2541_v3 = vcombine.low %v2516_v13, %v2524_v20  ;;  %v2542_v61 = vcombine.high %v2516_v13, %v2524_v20  ;;  %v2974_v16 = vrot.slane %v2960_v0, %v8966_v24  ;;  %v3115_v28 = vcombine.low %v2951_v9, %v2958_v14  ;;  %v2905_v0 = vpop.permute.xlu0 %2904 }
 0x429   : > { %v2533_v54 = vrot.slane %v2525_v2, %v8966_v24  ;;  %v2540_v25 = vrot.slane %v2526_v7, %v8966_v24  ;;  %v6335_v29 = vcombine.high %v2951_v9, %v2958_v14  ;;  %v2358_v51 = vcombine.high %v8942_v5, %v2274_v8 }
 0x42a   : > { %v2549_v26 = vrot.slane %v2541_v3, %v8966_v24  ;;  %v2556_v27 = vrot.slane %v2542_v61, %v8966_v24  ;;  %v3131_v31 = vcombine.low %v2967_v15, %v2974_v16  ;;  %v6336_v33 = vcombine.high %v2967_v15, %v2974_v16 }
 0x42b   : > { %v3122_v37 = vrot.slane %v3115_v28, %v8962_v17  ;;  %v3130_v58 = vrot.slane %v6335_v29, %v8962_v17  ;;  %v2979_v40 = vcombine.low %v8952_v6, %v2896_v38  ;;  %v2980_v56 = vcombine.high %v8952_v6, %v2896_v38 }
 0x42c   : > { %v2557_v34 = vcombine.low %v2533_v54, %v2549_v26  ;;  %v2558_v35 = vcombine.high %v2533_v54, %v2549_v26  ;;  %v2559_v36 = vcombine.low %v2540_v25, %v2556_v27  ;;  %v2560_v32 = vcombine.high %v2540_v25, %v2556_v27 }
 0x42d   : > { %v3138_v18 = vrot.slane %v3131_v31, %v8962_v17  ;;  %v3146_v19 = vrot.slane %v6336_v33, %v8962_v17  ;;  %v3147_v46 = vcombine.low %v3122_v37, %v3130_v58  ;;  %v3148_v47 = vcombine.high %v3122_v37, %v3130_v58 }
 0x42e   : > { %v6478_v39 = vpack.c.bf16 %v2557_v34, %v2557_v34  ;;  %v6481_v42 = vpack.c.bf16 %v2558_v35, %v2558_v35  ;;  %v6484_v43 = vpack.c.bf16 %v2559_v36, %v2559_v36  ;;  %v6487_v30 = vpack.c.bf16 %v2560_v32, %v2560_v32 }
 0x42f   : > { %v3163_v48 = vcombine.low %v3138_v18, %v3146_v19  ;;  %v3164_v49 = vcombine.high %v3138_v18, %v3146_v19  ;;  %v3155_v41 = vrot.slane %v3147_v46, %v8966_v24  ;;  %v3162_v52 = vrot.slane %v3148_v47, %v8966_v24 }
 0x430   : > { %2750 = vst.msk [vmem:[#allocation4] sm:$0xf] %vm2749_vm2, %v6478_v39  ;;  %2753 = vst.msk [vmem:[#allocation4 + $0xc] sm:$0xf] %vm2749_vm2, %v6481_v42  ;;  %v2365_v59 = vrot.slane %v2357_v50, %v8962_v17  ;;  %v2372_v60 = vrot.slane %v2358_v51, %v8962_v17  ;;  %v9183_v53 = vrot.slane %v2979_v40, %v8962_v17 }
 0x431   : > { %2756 = vst.msk [vmem:[#allocation4 + $0x18] sm:$0xf] %vm2749_vm2, %v6484_v43  ;;  %2759 = vst.msk [vmem:[#allocation4 + $0x24] sm:$0xf] %vm2749_vm2, %v6487_v30  ;;  %v3171_v55 = vrot.slane %v3163_v48, %v8966_v24  ;;  %v3178_v57 = vrot.slane %v3164_v49, %v8966_v24  ;;  %v9186_v5 = vrot.slane %v2980_v56, %v8962_v17 }
 0x432   : > { %v2389_v13 = vcombine.low %v2365_v59, %v9147_v10  ;;  %v2390_v20 = vcombine.high %v2365_v59, %v9147_v10  ;;  %v2405_v21 = vcombine.low %v2372_v60, %v9150_v11  ;;  %v2406_v22 = vcombine.high %v2372_v60, %v9150_v11 }
 0x433   : > { %v3179_v62 = vcombine.low %v3155_v41, %v3171_v55  ;;  %v3180_v6 = vcombine.high %v3155_v41, %v3171_v55  ;;  %v3181_v12 = vcombine.low %v3162_v52, %v3178_v57  ;;  %v3182_v4 = vcombine.high %v3162_v52, %v3178_v57 }
 0x434   : > { %v2397_v8 = vrot.slane %v2389_v13, %v8966_v24  ;;  %v2404_v9 = vrot.slane %v2390_v20, %v8966_v24  ;;  %v2413_v14 = vrot.slane %v2405_v21, %v8966_v24  ;;  %v2420_v15 = vrot.slane %v2406_v22, %v8966_v24 }
 0x435   : > { %v6490_v2 = vpack.c.bf16 %v3179_v62, %v3179_v62  ;;  %v6493_v7 = vpack.c.bf16 %v3180_v6, %v3180_v6  ;;  %v6496_v3 = vpack.c.bf16 %v3181_v12, %v3181_v12  ;;  %v6499_v61 = vpack.c.bf16 %v3182_v4, %v3182_v4 }
 0x436   : > { %v3063_v10 = vcombine.low %v9050_v44, %v2907_v23  ;;  %v3064_v11 = vcombine.high %v9050_v44, %v2907_v23  ;;  %v2995_v16 = vcombine.low %v2887_v45, %v2905_v0  ;;  %v2996_v54 = vcombine.high %v2887_v45, %v2905_v0 }
 0x437   : > { %3371 = vst.msk [vmem:[#allocation5] sm:$0xf] %vm2749_vm2, %v6490_v2  ;;  %3374 = vst.msk [vmem:[#allocation5 + $0xc] sm:$0xf] %vm2749_vm2, %v6493_v7  ;;  %v2561_v25 = vcombine.low %v2397_v8, %v2404_v9  ;;  %v6310_v26 = vcombine.high %v2397_v8, %v2404_v9  ;;  %v2577_v27 = vcombine.low %v2413_v14, %v2420_v15 }
 0x438   : > { %3377 = vst.msk [vmem:[#allocation5 + $0x18] sm:$0xf] %vm2749_vm2, %v6496_v3  ;;  %3380 = vst.msk [vmem:[#allocation5 + $0x24] sm:$0xf] %vm2749_vm2, %v6499_v61  ;;  %v6311_v28 = vcombine.high %v2413_v14, %v2420_v15  ;;  %v3071_v29 = vrot.slane %v3063_v10, %v8962_v17  ;;  %v3078_v31 = vrot.slane %v3064_v11, %v8962_v17 }
 0x439   : > { %v3003_v33 = vrot.slane %v2995_v16, %v8962_v17  ;;  %v3010_v34 = vrot.slane %v2996_v54, %v8962_v17  ;;  %v2568_v35 = vrot.slane %v2561_v25, %v8962_v17  ;;  %v2576_v36 = vrot.slane %v6310_v26, %v8962_v17 }
 0x43a   : > { %v2584_v44 = vrot.slane %v2577_v27, %v8962_v17  ;;  %v2592_v32 = vrot.slane %v6311_v28, %v8962_v17  ;;  %v3079_v37 = vcombine.low %v9117_v1, %v3071_v29  ;;  %v3080_v58 = vcombine.high %v9117_v1, %v3071_v29 }
 0x43b   : > { %v3095_v18 = vcombine.low %v9120_v63, %v3078_v31  ;;  %v3096_v19 = vcombine.high %v9120_v63, %v3078_v31  ;;  %v2593_v38 = vcombine.low %v2568_v35, %v2576_v36  ;;  %v2594_v39 = vcombine.high %v2568_v35, %v2576_v36 }
 0x43c   : > { %v2609_v42 = vcombine.low %v2584_v44, %v2592_v32  ;;  %v2610_v43 = vcombine.high %v2584_v44, %v2592_v32  ;;  %v3087_v30 = vrot.slane %v3079_v37, %v8966_v24  ;;  %v3094_v45 = vrot.slane %v3080_v58, %v8966_v24 }
 0x43d   : > { %v3103_v46 = vrot.slane %v3095_v18, %v8966_v24  ;;  %v3110_v47 = vrot.slane %v3096_v19, %v8966_v24  ;;  %v2601_v48 = vrot.slane %v2593_v38, %v8966_v24  ;;  %v2608_v1 = vrot.slane %v2594_v39, %v8966_v24 }
 0x43e   : > { %v2617_v49 = vrot.slane %v2609_v42, %v8966_v24  ;;  %v2624_v63 = vrot.slane %v2610_v43, %v8966_v24  ;;  %v3251_v50 = vcombine.low %v3087_v30, %v3094_v45  ;;  %v6339_v51 = vcombine.high %v3087_v30, %v3094_v45 }
 0x43f   : > { %v3267_v40 = vcombine.low %v3103_v46, %v3110_v47  ;;  %v6340_v56 = vcombine.high %v3103_v46, %v3110_v47  ;;  %v3011_v2 = vcombine.low %v9183_v53, %v3003_v33  ;;  %v3012_v7 = vcombine.high %v9183_v53, %v3003_v33 }
 0x440   : > { %v2625_v41 = vcombine.low %v2601_v48, %v2617_v49  ;;  %v2626_v52 = vcombine.high %v2601_v48, %v2617_v49  ;;  %v2627_v55 = vcombine.low %v2608_v1, %v2624_v63  ;;  %v2628_v57 = vcombine.high %v2608_v1, %v2624_v63 }
 0x441   : > { %v3258_v59 = vrot.slane %v3251_v50, %v8962_v17  ;;  %v3266_v60 = vrot.slane %v6339_v51, %v8962_v17  ;;  %v3274_v62 = vrot.slane %v3267_v40, %v8962_v17  ;;  %v3282_v6 = vrot.slane %v6340_v56, %v8962_v17 }
 0x442   : > { %v6479_v12 = vpack.c.bf16 %v2625_v41, %v2625_v41  ;;  %v6482_v4 = vpack.c.bf16 %v2626_v52, %v2626_v52  ;;  %v6485_v13 = vpack.c.bf16 %v2627_v55, %v2627_v55  ;;  %v6488_v20 = vpack.c.bf16 %v2628_v57, %v2628_v57 }
 0x443   : > { %v3283_v21 = vcombine.low %v3258_v59, %v3266_v60  ;;  %v3284_v22 = vcombine.high %v3258_v59, %v3266_v60  ;;  %v3299_v23 = vcombine.low %v3274_v62, %v3282_v6  ;;  %v3300_v0 = vcombine.high %v3274_v62, %v3282_v6 }
 0x444   : > { %2751 = vst.msk [vmem:[#allocation4 + $0x4] sm:$0xf] %vm2749_vm2, %v6479_v12  ;;  %2754 = vst.msk [vmem:[#allocation4 + $0x10] sm:$0xf] %vm2749_vm2, %v6482_v4  ;;  %v3027_v3 = vcombine.low %v9186_v5, %v3010_v34  ;;  %v3028_v61 = vcombine.high %v9186_v5, %v3010_v34  ;;  %v3019_v10 = vrot.slane %v3011_v2, %v8966_v24 }
 0x445   : > { %2757 = vst.msk [vmem:[#allocation4 + $0x1c] sm:$0xf] %vm2749_vm2, %v6485_v13  ;;  %2760 = vst.msk [vmem:[#allocation4 + $0x28] sm:$0xf] %vm2749_vm2, %v6488_v20  ;;  %v3291_v8 = vrot.slane %v3283_v21, %v8966_v24  ;;  %v3298_v9 = vrot.slane %v3284_v22, %v8966_v24  ;;  %v3307_v14 = vrot.slane %v3299_v23, %v8966_v24 }
 0x446   : > { %v3314_v15 = vrot.slane %v3300_v0, %v8966_v24  ;;  %v3026_v11 = vrot.slane %v3012_v7, %v8966_v24  ;;  %v3035_v16 = vrot.slane %v3027_v3, %v8966_v24  ;;  %v3042_v53 = vrot.slane %v3028_v61, %v8966_v24 }
 0x447   : > { %v3315_v54 = vcombine.low %v3291_v8, %v3307_v14  ;;  %v3316_v25 = vcombine.high %v3291_v8, %v3307_v14 }
 0x448   : > { %v3317_v26 = vcombine.low %v3298_v9, %v3314_v15  ;;  %v3318_v5 = vcombine.high %v3298_v9, %v3314_v15  ;;  %v3183_v27 = vcombine.low %v3019_v10, %v3026_v11  ;;  %v6337_v28 = vcombine.high %v3019_v10, %v3026_v11 }
 0x449   : > { %v3199_v29 = vcombine.low %v3035_v16, %v3042_v53  ;;  %v6338_v31 = vcombine.high %v3035_v16, %v3042_v53  ;;  %v6492_v33 = vpack.c.bf16 %v3315_v54, %v3315_v54  ;;  %v6495_v34 = vpack.c.bf16 %v3316_v25, %v3316_v25 }
 0x44a   : > { %v6498_v35 = vpack.c.bf16 %v3317_v26, %v3317_v26  ;;  %v6501_v36 = vpack.c.bf16 %v3318_v5, %v3318_v5  ;;  %v3190_v44 = vrot.slane %v3183_v27, %v8962_v17  ;;  %v3198_v32 = vrot.slane %v6337_v28, %v8962_v17 }
 0x44b   : > { %v3206_v37 = vrot.slane %v3199_v29, %v8962_v17  ;;  %v3214_v58 = vrot.slane %v6338_v31, %v8962_v17  ;;  %3373 = vst.msk [vmem:[#allocation5 + $0x8] sm:$0xf] %vm2749_vm2, %v6492_v33  ;;  %3376 = vst.msk [vmem:[#allocation5 + $0x14] sm:$0xf] %vm2749_vm2, %v6495_v34 }
 0x44c   : > { %3379 = vst.msk [vmem:[#allocation5 + $0x20] sm:$0xf] %vm2749_vm2, %v6498_v35  ;;  %3382 = vst.msk [vmem:[#allocation5 + $0x2c] sm:$0xf] %vm2749_vm2, %v6501_v36  ;;  %v3215_v18 = vcombine.low %v3190_v44, %v3198_v32  ;;  %v3216_v19 = vcombine.high %v3190_v44, %v3198_v32 }
 0x44d   : > { %v3231_v38 = vcombine.low %v3206_v37, %v3214_v58  ;;  %v3232_v39 = vcombine.high %v3206_v37, %v3214_v58 }
 0x44e   : > { %v3223_v42 = vrot.slane %v3215_v18, %v8966_v24  ;;  %v3230_v43 = vrot.slane %v3216_v19, %v8966_v24 }
 0x44f   : > { %v3239_v30 = vrot.slane %v3231_v38, %v8966_v24  ;;  %v3246_v17 = vrot.slane %v3232_v39, %v8966_v24 }
 0x451   : > { %v3247_v45 = vcombine.low %v3223_v42, %v3239_v30  ;;  %v3248_v46 = vcombine.high %v3223_v42, %v3239_v30  ;;  %v3249_v47 = vcombine.low %v3230_v43, %v3246_v17  ;;  %v3250_v48 = vcombine.high %v3230_v43, %v3246_v17 }
 0x453   : > { %v6491_v1 = vpack.c.bf16 %v3247_v45, %v3247_v45  ;;  %v6494_v49 = vpack.c.bf16 %v3248_v46, %v3248_v46  ;;  %v6497_v63 = vpack.c.bf16 %v3249_v47, %v3249_v47  ;;  %v6500_v50 = vpack.c.bf16 %v3250_v48, %v3250_v48 }
 0x455   : > { %3372 = vst.msk [vmem:[#allocation5 + $0x4] sm:$0xf] %vm2749_vm2, %v6491_v1  ;;  %3375 = vst.msk [vmem:[#allocation5 + $0x10] sm:$0xf] %vm2749_vm2, %v6494_v49 }
 0x456   : > { %3378 = vst.msk [vmem:[#allocation5 + $0x1c] sm:$0xf] %vm2749_vm2, %v6497_v63  ;;  %3381 = vst.msk [vmem:[#allocation5 + $0x28] sm:$0xf] %vm2749_vm2, %v6500_v50 }
 0x457 PF: > { %v7278_v51 = vld [vmem:[#allocation11] sm:$0xff]   ;;  %s9778_s2 = sld [smem:[#allocation84_spill]]  ;;  %v8203_v24 = vmov 0.0   ;;  %v7279_v40 = vld [vmem:[#allocation11 + $0x8] sm:$0xff]   ;;  %vm8204_vm3 = vmmov 0   ;;  %v7280_v56 = vld [vmem:[#allocation11 + $0x10] sm:$0xff]   ;;  %v3388_v0 = vlaneseq }
 0x458   : > { %6718 = vmatprep.subr.bf16.mxu0 %v8203_v24  ;;  %6738 = vmatprep.subr.bf16.mxu1 %v8203_v24  ;;  %v7281_v41 = vld [vmem:[#allocation11 + $0x18] sm:$0xff]   ;;  %v7282_v52 = vld [vmem:[#allocation11 + $0x20] sm:$0xff]   ;;  %v7283_v55 = vld [vmem:[#allocation11 + $0x28] sm:$0xff]   ;;  %s8206_s4 = smov 96   ;;  %vm3693_vm4 = vcmask 261120   ;;  %s8207_s16 = smov 64  }
 0x459   : > { %6719 = vmatpush3.bf16.msra.mxu0 %v7278_v51  ;;  %6734 = vmatprep.mubr.msk.bf16.mxu0 %vm8204_vm3, %v8203_v24  ;;  %v7284_v57 = vld [vmem:[#allocation11 + $0x30] sm:$0xff]   ;;  %v7285_v59 = vld [vmem:[#allocation11 + $0x38] sm:$0xff]   ;;  %v6354_v6 = vld [vmem:[#allocation12] ss:$0 sm:$0xff]  ;;  %v8208_v2 = vmov 1983009808  }
 0x45a   : > { %6720 = vmatprep.subr.bf16.mxu0 %v8203_v24  ;;  %6740 = vmatprep.mubr.msk.bf16.mxu1 %vm8204_vm3, %v8203_v24  ;;  %v3518_v22 = vld [vmem:[#allocation2] sm:$0xff]  ;;  %v3556_v7 = vunpack.c.l.s4 %v8208_v2  ;;  %v8209_v3 = vmov 1934713408   ;;  %v9288_v8 = vshrl.u32 %v3388_v0, 7  ;;  %v3519_v1 = vld [vmem:[#allocation2 + $0x8] sm:$0xff]  ;;  %v8210_v2 = vmov 0  }
 0x45b   : > { %v3698_v23 = vsel %vm3693_vm4, %v3518_v22, 0  ;;  %v3588_v61 = vunpack.c.l.s4 %v8209_v3  ;;  %v3744_v50 = vsel %vm3693_vm4, %v3519_v1, 0  ;;  %vm3878_vm9 = vcmask 130048   ;;  %s9781_s17 = sld [smem:[#allocation70_spill]]  ;;  %s9783_s19 = sld [smem:[#allocation72_spill]] }
 0x45c   : > { %6739 = vmatpush3.bf16.xpose.msra.mxu1 %v3698_v23  ;;  %v3557_v9 = vunpack.c.0.s8 %v3556_v7  ;;  %v9334_v22 = vsub.s32 0, %v9288_v8  ;;  %vm4248_vm10 = vcmask 523264   ;;  %vm4250_vm11 = vcmask 785408   ;;  %s9784_s23 = sld [smem:[#allocation73_spill]]  ;;  %p9789_p13 = scmp.ne.s32.totalorder %s9742_s9, 0 }
 0x45d   : > { %6721 = vmatpush3.bf16.msra.mxu0 %v7279_v40  ;;  %s6353_s13 = sshll.u32 %s9778_s2, 3  ;;  %6744 = vmatprep.subr.bf16.mxu1 %v8203_v24  ;;  %v3589_v10 = vunpack.c.0.s8 %v3588_v61  ;;  %v3393_v61 = vand.u32 127, %v3388_v0  ;;  %vm4921_vm15 = vcmask 195584   ;;  %vm4982_vm0 = vcmask 1043456  }
 0x45e   : > { %6722 = vmatprep.subr.bf16.mxu0 %v8203_v24  ;;  %s3384_s26 = scalar_lea.vmem %s8802_s14, %s6353_s13 [#allocation6]  ;;  %s8205_s14 = smov 32   ;;  %v9291_v11 = vsub.s32 %v3557_v9, %v9288_v8  ;;  %v3390_v23 = vstv %s6353_s13 }
 0x45f   : > { %v9274_v60 = vld [vmem:[%s3384_s26] sm:$0xff]  ;;  %v9294_v5 = vsub.s32 %v3589_v10, %v9288_v8  ;;  %v3391_v3 = vadd.s32 %v3390_v23, %v9288_v8  ;;  %v3524_v23 = vld [vmem:[#allocation3 + $0x10] sm:$0xff]  ;;  %s9785_s13 = sld [smem:[#allocation74_spill]]  ;;  %s9786_s26 = sld [smem:[#allocation76_spill]] }
 0x460   : > { %v3406_v62 = vpack.c.bf16 %v9274_v60, %v9274_v60 }
 0x461   : > { %6723 = vmatpush3.bf16.msra.mxu0 %v7280_v56  ;;  %vm3394_vm6 = vcmp.gt.s32.totalorder %v3393_v61, %v3391_v3 }
 0x462   : > { %6724 = vmatprep.subr.bf16.mxu0 %v8203_v24 }
 0x465   : > { %6725 = vmatpush3.bf16.msra.mxu0 %v7281_v41  ;;  %v3520_v41 = vld [vmem:[#allocation2 + $0x10] sm:$0xff] }
 0x466   : > { %6726 = vmatprep.subr.bf16.mxu0 %v8203_v24 }
 0x469   : > { %6727 = vmatpush3.bf16.msra.mxu0 %v7282_v52 }
 0x46a   : > { %6728 = vmatprep.subr.bf16.mxu0 %v8203_v24 }
 0x46d   : > { %6729 = vmatpush3.bf16.msra.mxu0 %v7283_v55  ;;  %v3790_v55 = vsel %vm3693_vm4, %v3520_v41, 0 }
 0x46e   : > { %6730 = vmatprep.subr.bf16.mxu0 %v8203_v24 }
 0x471   : > { %6731 = vmatpush3.bf16.msra.mxu0 %v7284_v57 }
 0x472   : > { %6732 = vmatprep.subr.bf16.mxu0 %v8203_v24 }
 0x475   : > { %6733 = vmatpush3.bf16.msra.mxu0 %v7285_v59 }
 0x476   : > { %6762 = vmatprep.subr.bf16.mxu0 %v8203_v24 }
 0x478   : > { %6735 = vmatmul.mubr.bf16.vlgmr.msra.gmra.mrb[0].mxu0 %v3406_v62 }
 0x479   : > { %6764 = vmatprep.mubr.msk.bf16.mxu0 %vm8204_vm3, %v8203_v24 }
 0x54b   : > { %v3512_v12 = vpop.f32.mrb[0].mxu0 }
 0x54c   : > { %v3513_v4 = vadd.f32 %v6354_v6, %v3512_v12  ;;  %v6736_v13 = vpop.f32.mrb[1].mxu0  ;;  %v3521_v6 = vld [vmem:[#allocation2 + $0x18] sm:$0xff] }
 0x54d   : > { %v3515_v20 = vpop.f32.mrb[2].mxu0 }
 0x54e   : > { %3550 = vrot.lane.b32.xlu1 %v3513_v4, %s8205_s14  ;;  %3544 = vrot.lane.b32.xlu0 %v3513_v4, %s8206_s4  ;;  %v6737_v21 = vpop.f32.mrb[3].mxu0 }
 0x54f   : > { %v3386_v21 = vld [vmem:[%s1298_s24] sm:$0x1] }
 0x550   : > { %vm3395_vm5 = vcmp.gt.f32.partialorder %v3386_v21, 0.5 }
 0x551   : > { %v3396_v7 = vsel %vm3395_vm5, 1, %v8210_v2 }
 0x552   : > { %3547 = vrot.lane.b32.xlu0 %v3513_v4, %s8207_s16  ;;  %v3400_v9 = vrot.slane %v3396_v7, %v9334_v22 }
 0x554   : > { %vm3401_vm7 = vcmp.eq.s32.totalorder %v3400_v9, 1 }
 0x555   : > { %vm3402_vm8 = vmor %vm3394_vm6, %vm3401_vm7 }
 0x5c0   : > { %v3551_v14 = vpop.permute.xlu1 %3550  ;;  %v3545_v15 = vpop.permute.xlu0 %3544 }
 0x5c1   : > { %v3569_v16 = vcombine.low %v3545_v15, %v3551_v14  ;;  %v3570_v53 = vcombine.high %v3545_v15, %v3551_v14  ;;  %v3403_v14 = vsel %vm3402_vm8, -1e+18, %v8203_v24 }
 0x5c3   : > { %v3577_v27 = vrot.slane %v3569_v16, %v9291_v11  ;;  %v3584_v28 = vrot.slane %v3570_v53, %v9291_v11 }
 0x5c4   : > { %v3548_v54 = vpop.permute.xlu0 %3547 }
 0x5c5   : > { %v3553_v25 = vcombine.low %v3513_v4, %v3548_v54  ;;  %v3554_v26 = vcombine.high %v3513_v4, %v3548_v54  ;;  %v3836_v4 = vsel %vm3693_vm4, %v3521_v6, 0  ;;  %v3523_v6 = vld [vmem:[#allocation3 + $0x8] sm:$0xff] }
 0x5c7   : > { %v3561_v29 = vrot.slane %v3553_v25, %v9291_v11  ;;  %v3568_v31 = vrot.slane %v3554_v26, %v9291_v11 }
 0x5c9   : > { %v3585_v33 = vcombine.low %v3561_v29, %v3577_v27  ;;  %v3586_v34 = vcombine.high %v3561_v29, %v3577_v27  ;;  %v3601_v35 = vcombine.low %v3568_v31, %v3584_v28  ;;  %v3602_v36 = vcombine.high %v3568_v31, %v3584_v28 }
 0x5cb   : > { %v3593_v44 = vrot.slane %v3585_v33, %v9294_v5  ;;  %v3600_v32 = vrot.slane %v3586_v34, %v9294_v5  ;;  %v3609_v37 = vrot.slane %v3601_v35, %v9294_v5  ;;  %v3616_v58 = vrot.slane %v3602_v36, %v9294_v5 }
 0x5cd   : > { %v3621_v18 = vcombine.low %v3593_v44, %v3600_v32  ;;  %v6363_v19 = vcombine.high %v3593_v44, %v3600_v32  ;;  %v3637_v38 = vcombine.low %v3609_v37, %v3616_v58  ;;  %v6364_v39 = vcombine.high %v3609_v37, %v3616_v58 }
 0x5cf   : > { %v3628_v42 = vrot.slane %v3621_v18, %v9291_v11  ;;  %v3636_v43 = vrot.slane %v6363_v19, %v9291_v11  ;;  %v3644_v30 = vrot.slane %v3637_v38, %v9291_v11  ;;  %v3652_v17 = vrot.slane %v6364_v39, %v9291_v11 }
 0x5d1   : > { %v3653_v45 = vcombine.low %v3628_v42, %v3636_v43  ;;  %v3669_v46 = vcombine.low %v3644_v30, %v3652_v17  ;;  %v3654_v51 = vcombine.high %v3628_v42, %v3636_v43  ;;  %v3670_v40 = vcombine.high %v3644_v30, %v3652_v17 }
 0x5d3   : > { %v3661_v47 = vrot.slane %v3653_v45, %v9294_v5  ;;  %v3677_v48 = vrot.slane %v3669_v46, %v9294_v5  ;;  %v3668_v57 = vrot.slane %v3654_v51, %v9294_v5  ;;  %v3684_v59 = vrot.slane %v3670_v40, %v9294_v5 }
 0x5d5   : > { %v3685_v49 = vcombine.low %v3661_v47, %v3677_v48  ;;  %v3686_v56 = vcombine.high %v3661_v47, %v3677_v48  ;;  %v3687_v62 = vcombine.low %v3668_v57, %v3684_v59  ;;  %v3688_v13 = vcombine.high %v3668_v57, %v3684_v59 }
 0x5d7   : > { %v3689_v63 = vpack.c.bf16 %v3685_v49, %v3685_v49  ;;  %v3690_v52 = vpack.c.bf16 %v3686_v56, %v3686_v56  ;;  %v3691_v12 = vpack.c.bf16 %v3687_v62, %v3687_v62  ;;  %v3692_v20 = vpack.c.bf16 %v3688_v13, %v3688_v13  ;;  %v3522_v62 = vld [vmem:[#allocation3] sm:$0xff] }
 0x5d8   : > { %6763 = vmatpush3.bf16.msra.mxu0 %v3522_v62 }
 0x5d9   : > { %6741 = vmatmul.mubr.msk.bf16.vlgmr.msra.gmra.mrb[0].mxu1 %vm3693_vm4, %v3689_v63  ;;  %6774 = vmatprep.subr.bf16.mxu0 %v8203_v24 }
 0x5da   : > { %6745 = vmatpush3.bf16.xpose.msra.mxu1 %v3744_v50  ;;  %6746 = vmatprep.mubr.msk.bf16.mxu1 %vm8204_vm3, %v8203_v24 }
 0x5db   : > { %6750 = vmatprep.subr.bf16.mxu1 %v8203_v24 }
 0x5e1   : > { %6747 = vmatmul.mubr.msk.bf16.vlgmr.msra.gmra.mrb[4].mxu1 %vm3693_vm4, %v3690_v52 }
 0x5e2   : > { %6751 = vmatpush3.bf16.xpose.msra.mxu1 %v3790_v55  ;;  %6752 = vmatprep.mubr.msk.bf16.mxu1 %vm8204_vm3, %v8203_v24 }
 0x5e3   : > { %6756 = vmatprep.subr.bf16.mxu1 %v8203_v24 }
 0x5e9   : > { %6753 = vmatmul.mubr.msk.bf16.vlgmr.msra.gmra.mrb[8].mxu1 %vm3693_vm4, %v3691_v12 }
 0x5ea   : > { %6757 = vmatpush3.bf16.xpose.msra.mxu1 %v3836_v4  ;;  %6758 = vmatprep.mubr.msk.bf16.mxu1 %vm8204_vm3, %v8203_v24 }
 0x5eb   : > { %6768 = vmatprep.subr.bf16.mxu1 %v8203_v24 }
 0x5f1   : > { %6759 = vmatmul.mubr.msk.bf16.vlgmr.msra.gmra.mrb[12].mxu1 %vm3693_vm4, %v3692_v20 }
 0x5f2   : > { %6770 = vmatprep.mubr.msk.bf16.mxu1 %vm8204_vm3, %v8203_v24  ;;  %6769 = vmatpush3.bf16.msra.mxu1 %v3523_v6 }
 0x5f3   : > { %6780 = vmatprep.subr.bf16.mxu1 %v8203_v24 }
 0x6ac   : > { %v3734_v15 = vpop.f32.mrb[0].mxu1 }
 0x6ad   : > { %v3735_v10 = vadd.f32 %v3734_v15, %v3403_v14  ;;  %v6742_v16 = vpop.f32.mrb[1].mxu1 }
 0x6ae   : > { %v3737_v53 = vpop.f32.mrb[2].mxu1 }
 0x6af   : > { %v6743_v54 = vpop.f32.mrb[3].mxu1  ;;  %v3879_v25 = vsel %vm3878_vm9, %v3735_v10, -inf }
 0x6b0   : > { %3880 = vmax.xlane.f32.xlu1 %v3879_v25 }
 0x6b4   : > { %v3780_v26 = vpop.f32.mrb[4].mxu1 }
 0x6b5   : > { %v3781_v27 = vadd.f32 %v3780_v26, %v3403_v14  ;;  %v6748_v28 = vpop.f32.mrb[5].mxu1 }
 0x6b6   : > { %v3783_v0 = vpop.f32.mrb[6].mxu1  ;;  %v7287_v28 = vld [vmem:[#allocation20 + $0x8] sm:$0xff]  }
 0x6b7   : > { %v6749_v29 = vpop.f32.mrb[7].mxu1  ;;  %v3882_v31 = vsel %vm3878_vm9, %v3781_v27, -inf  ;;  %v7288_v0 = vld [vmem:[#allocation20 + $0x10] sm:$0xff]  }
 0x6b8   : > { %3883 = vmax.xlane.f32.xlu0 %v3882_v31  ;;  %v7289_v29 = vld [vmem:[#allocation20 + $0x18] sm:$0xff]   ;;  %v7290_v31 = vld [vmem:[#allocation20 + $0x20] sm:$0xff]  }
 0x6bc   : > { %v3826_v33 = vpop.f32.mrb[8].mxu1 }
 0x6bd   : > { %v3827_v34 = vadd.f32 %v3826_v33, %v3403_v14  ;;  %v6754_v35 = vpop.f32.mrb[9].mxu1  ;;  %v7291_v33 = vld [vmem:[#allocation20 + $0x28] sm:$0xff]  }
 0x6be   : > { %v3829_v36 = vpop.f32.mrb[10].mxu1 }
 0x6bf   : > { %v6755_v44 = vpop.f32.mrb[11].mxu1  ;;  %v3885_v32 = vsel %vm3878_vm9, %v3827_v34, -inf }
 0x6c0   : > { %3886 = vmax.xlane.f32.xlu0 %v3885_v32 }
 0x6c4   : > { %v3872_v37 = vpop.f32.mrb[12].mxu1 }
 0x6c5   : > { %v3873_v58 = vadd.f32 %v3872_v37, %v3403_v14  ;;  %v6760_v18 = vpop.f32.mrb[13].mxu1  ;;  %v3525_v14 = vld [vmem:[#allocation3 + $0x18] sm:$0xff] }
 0x6c6   : > { %v3875_v19 = vpop.f32.mrb[14].mxu1 }
 0x6c7   : > { %v6761_v38 = vpop.f32.mrb[15].mxu1  ;;  %v3888_v39 = vsel %vm3878_vm9, %v3873_v58, -inf }
 0x6c8   : > { %3889 = vmax.xlane.f32.xlu1 %v3888_v39 }
 0x73d   : > { %v3881_v42 = vpop.xlane.xlu1 %3880 }
 0x73e   : > { %v3891_v43 = vsub.f32 %v3735_v10, %v3881_v42 }
 0x740   : > { %v3895_v30 = vmul.f32 1.442695, %v3891_v43 }
 0x742   : > { %7366 = vpow2.f32 %v3895_v30 }
 0x745   : > { %v3884_v17 = vpop.xlane.xlu0 %3883 }
 0x746   : > { %v3892_v45 = vsub.f32 %v3781_v27, %v3884_v17  ;;  %v7286_v27 = vld [vmem:[#allocation20] sm:$0xff]  }
 0x748   : > { %v3897_v46 = vmul.f32 1.442695, %v3892_v45 }
 0x74a   : > { %7368 = vpow2.f32 %v3897_v46 }
 0x74c   : > { %v7367_v47 = vpop.eup %7366 }
 0x74d   : > { %v3887_v48 = vpop.xlane.xlu0 %3886  ;;  %v3903_v1 = vsel %vm3878_vm9, %v7367_v47, 0.0 }
 0x74e   : > { %v3893_v49 = vsub.f32 %v3827_v34, %v3887_v48  ;;  %3904 = vadd.xlane.f32.xlu0 %v3903_v1 }
 0x750   : > { %v3899_v63 = vmul.f32 1.442695, %v3893_v49 }
 0x752   : > { %7370 = vpow2.f32 %v3899_v63 }
 0x754   : > { %v7369_v50 = vpop.eup %7368 }
 0x755   : > { %v3890_v51 = vpop.xlane.xlu1 %3889  ;;  %v3906_v40 = vsel %vm3878_vm9, %v7369_v50, 0.0 }
 0x756   : > { %v3894_v56 = vsub.f32 %v3873_v58, %v3890_v51  ;;  %3907 = vadd.xlane.f32.xlu1 %v3906_v40  ;;  %v7292_v40 = vld [vmem:[#allocation20 + $0x30] sm:$0xff]  }
 0x758   : > { %v3901_v41 = vmul.f32 1.442695, %v3894_v56 }
 0x75a   : > { %7372 = vpow2.f32 %v3901_v41 }
 0x75c   : > { %v7371_v52 = vpop.eup %7370 }
 0x75d   : > { %v3909_v55 = vsel %vm3878_vm9, %v7371_v52, 0.0 }
 0x75e   : > { %3910 = vadd.xlane.f32.xlu0 %v3909_v55 }
 0x764   : > { %v7373_v57 = vpop.eup %7372 }
 0x765   : > { %v3912_v59 = vsel %vm3878_vm9, %v7373_v57, 0.0 }
 0x766   : > { %3913 = vadd.xlane.f32.xlu1 %v3912_v59 }
 0x7db   : > { %v3905_v12 = vpop.xlane.xlu0 %3904 }
 0x7dc   : > { %7374 = vrcp.f32 %v3905_v12  ;;  %v7293_v12 = vld [vmem:[#allocation20 + $0x38] sm:$0xff]  }
 0x7e3   : > { %v3908_v4 = vpop.xlane.xlu1 %3907 }
 0x7e4   : > { %7376 = vrcp.f32 %v3908_v4 }
 0x7e6   : > { %v7375_v13 = vpop.eup %7374 }
 0x7e7   : > { %v3919_v20 = vmul.f32 %v7375_v13, %v7367_v47 }
 0x7e9   : > { %v3923_v21 = vpack.c.bf16 %v3919_v20, %v3919_v20 }
 0x7eb   : > { %6765 = vmatmul.mubr.msk.bf16.vlgmr.msra.gmra.mrb[4].mxu0 %vm3878_vm9, %v3923_v21  ;;  %v3911_v7 = vpop.xlane.xlu0 %3910 }
 0x7ec   : > { %7378 = vrcp.f32 %v3911_v7  ;;  %6775 = vmatpush3.bf16.msra.mxu0 %v3524_v23  ;;  %6776 = vmatprep.mubr.msk.bf16.mxu0 %vm8204_vm3, %v8203_v24 }
 0x7ed   : > { %6786 = vmatprep.subr.bf16.mxu0 %v8203_v24 }
 0x7ee   : > { %v7377_v3 = vpop.eup %7376 }
 0x7ef   : > { %v3920_v61 = vmul.f32 %v7377_v3, %v7369_v50 }
 0x7f1   : > { %v3924_v9 = vpack.c.bf16 %v3920_v61, %v3920_v61 }
 0x7f3   : > { %6771 = vmatmul.mubr.msk.bf16.vlgmr.msra.gmra.mrb[16].mxu1 %vm3878_vm9, %v3924_v9  ;;  %v3914_v15 = vpop.xlane.xlu1 %3913 }
 0x7f4   : > { %7380 = vrcp.f32 %v3914_v15  ;;  %6781 = vmatpush3.bf16.msra.mxu1 %v3525_v14  ;;  %6782 = vmatprep.mubr.msk.bf16.mxu1 %vm8204_vm3, %v8203_v24 }
 0x7f5   : > { %6806 = vmatprep.subr.bf16.mxu1 %v8203_v24 }
 0x7f6   : > { %v7379_v10 = vpop.eup %7378 }
 0x7f7   : > { %v3921_v16 = vmul.f32 %v7379_v10, %v7371_v52 }
 0x7f9   : > { %v3925_v53 = vpack.c.bf16 %v3921_v16, %v3921_v16 }
 0x7fb   : > { %6777 = vmatmul.mubr.msk.bf16.vlgmr.msra.gmra.mrb[8].mxu0 %vm3878_vm9, %v3925_v53 }
 0x7fc   : > { %6802 = vmatprep.mubr.msk.bf16.mxu0 %vm8204_vm3, %v8203_v24  ;;  %6787 = vmatpush3.bf16.msra.mxu0 %v7286_v27 }
 0x7fd   : > { %6788 = vmatprep.subr.bf16.mxu0 %v8203_v24 }
 0x7fe   : > { %v7381_v54 = vpop.eup %7380 }
 0x7ff   : > { %v3922_v25 = vmul.f32 %v7381_v54, %v7373_v57 }
 0x800   : > { %6789 = vmatpush3.bf16.msra.mxu0 %v7287_v28 }
 0x801   : > { %v3926_v26 = vpack.c.bf16 %v3922_v25, %v3922_v25  ;;  %6790 = vmatprep.subr.bf16.mxu0 %v8203_v24 }
 0x803   : > { %6783 = vmatmul.mubr.msk.bf16.vlgmr.msra.gmra.mrb[20].mxu1 %vm3878_vm9, %v3926_v26 }
 0x804   : > { %6822 = vmatprep.mubr.msk.bf16.mxu1 %vm8204_vm3, %v8203_v24  ;;  %6791 = vmatpush3.bf16.msra.mxu0 %v7288_v0 }
 0x805   : > { %6792 = vmatprep.subr.bf16.mxu0 %v8203_v24 }
 0x808   : > { %6793 = vmatpush3.bf16.msra.mxu0 %v7289_v29 }
 0x809   : > { %6794 = vmatprep.subr.bf16.mxu0 %v8203_v24 }
 0x80c   : > { %6795 = vmatpush3.bf16.msra.mxu0 %v7290_v31 }
 0x80d   : > { %6796 = vmatprep.subr.bf16.mxu0 %v8203_v24 }
 0x810   : > { %6797 = vmatpush3.bf16.msra.mxu0 %v7291_v33 }
 0x811   : > { %6798 = vmatprep.subr.bf16.mxu0 %v8203_v24 }
 0x814   : > { %6799 = vmatpush3.bf16.msra.mxu0 %v7292_v40 }
 0x815   : > { %6800 = vmatprep.subr.bf16.mxu0 %v8203_v24 }
 0x818   : > { %6801 = vmatpush3.bf16.msra.mxu0 %v7293_v12  ;;  %v6385_v12 = vld [vmem:[#allocation24] ss:$0 sm:$0xff] }
 0x819   : > { %6842 = vmatprep.subr.bf16.mxu0 %v8203_v24 }
 0x8be   : > { %v3964_v34 = vpop.f32.mrb[4].mxu0 }
 0x8bf   : > { %v6766_v35 = vpop.f32.mrb[5].mxu0 }
 0x8c0   : > { %v3967_v36 = vpop.f32.mrb[6].mxu0 }
 0x8c1   : > { %v6767_v44 = vpop.f32.mrb[7].mxu0 }
 0x8c6   : > { %v4007_v32 = vpop.f32.mrb[16].mxu1 }
 0x8c7   : > { %v6772_v37 = vpop.f32.mrb[17].mxu1 }
 0x8c8   : > { %v4010_v58 = vpop.f32.mrb[18].mxu1 }
 0x8c9   : > { %v6773_v18 = vpop.f32.mrb[19].mxu1 }
 0x8ce   : > { %v4050_v19 = vpop.f32.mrb[8].mxu0 }
 0x8cf   : > { %v4099_v38 = vcombine.low %v3964_v34, %v4050_v19  ;;  %v4100_v39 = vcombine.high %v3964_v34, %v4050_v19  ;;  %v6778_v42 = vpop.f32.mrb[9].mxu0 }
 0x8d0   : > { %v4053_v43 = vpop.f32.mrb[10].mxu0 }
 0x8d1   : > { %v6779_v30 = vpop.f32.mrb[11].mxu0  ;;  %v4107_v1 = vrot.slane %v4099_v38, %v9291_v11  ;;  %v4114_v49 = vrot.slane %v4100_v39, %v9291_v11 }
 0x8d6   : > { %v4093_v17 = vpop.f32.mrb[20].mxu1 }
 0x8d7   : > { %v4115_v45 = vcombine.low %v4007_v32, %v4093_v17  ;;  %v4116_v46 = vcombine.high %v4007_v32, %v4093_v17  ;;  %v6784_v47 = vpop.f32.mrb[21].mxu1  ;;  %v6375_v32 = vld [vmem:[#allocation21] ss:$0 sm:$0xff] }
 0x8d8   : > { %v4096_v48 = vpop.f32.mrb[22].mxu1  ;;  %v7296_v47 = vld [vmem:[#allocation26 + $0x10] sm:$0xff]  }
 0x8d9   : > { %v4123_v63 = vrot.slane %v4115_v45, %v9291_v11  ;;  %v4130_v50 = vrot.slane %v4116_v46, %v9291_v11  ;;  %v6785_v51 = vpop.f32.mrb[23].mxu1  ;;  %v7294_v45 = vld [vmem:[#allocation26] sm:$0xff]   ;;  %v7295_v46 = vld [vmem:[#allocation26 + $0x8] sm:$0xff]   ;;  %v7297_v48 = vld [vmem:[#allocation26 + $0x18] sm:$0xff]  }
 0x8da   : > { %6807 = vmatpush3.bf16.msra.mxu1 %v7294_v45 }
 0x8db   : > { %v4131_v56 = vcombine.low %v4107_v1, %v4123_v63  ;;  %v4132_v41 = vcombine.high %v4107_v1, %v4123_v63  ;;  %v4147_v52 = vcombine.low %v4114_v49, %v4130_v50  ;;  %v4148_v55 = vcombine.high %v4114_v49, %v4130_v50  ;;  %6808 = vmatprep.subr.bf16.mxu1 %v8203_v24  ;;  %v7299_v1 = vld [vmem:[#allocation26 + $0x28] sm:$0xff]   ;;  %v7300_v49 = vld [vmem:[#allocation26 + $0x30] sm:$0xff]   ;;  %v7301_v63 = vld [vmem:[#allocation26 + $0x38] sm:$0xff]  }
 0x8dd   : > { %v4139_v57 = vrot.slane %v4131_v56, %v9294_v5  ;;  %v4146_v59 = vrot.slane %v4132_v41, %v9294_v5  ;;  %v4155_v62 = vrot.slane %v4147_v52, %v9294_v5  ;;  %v4162_v6 = vrot.slane %v4148_v55, %v9294_v5 }
 0x8de   : > { %6809 = vmatpush3.bf16.msra.mxu1 %v7295_v46 }
 0x8df   : > { %v4167_v4 = vcombine.low %v4139_v57, %v4146_v59  ;;  %v6373_v13 = vcombine.high %v4139_v57, %v4146_v59  ;;  %v4183_v20 = vcombine.low %v4155_v62, %v4162_v6  ;;  %v6374_v21 = vcombine.high %v4155_v62, %v4162_v6  ;;  %6810 = vmatprep.subr.bf16.mxu1 %v8203_v24  ;;  %v6384_v59 = vld [vmem:[#allocation23] ss:$0 sm:$0xff] }
 0x8e1   : > { %v4174_v23 = vrot.slane %v4167_v4, %v9291_v11  ;;  %v4182_v7 = vrot.slane %v6373_v13, %v9291_v11  ;;  %v4190_v3 = vrot.slane %v4183_v20, %v9291_v11  ;;  %v4198_v61 = vrot.slane %v6374_v21, %v9291_v11  ;;  %v7302_v21 = vld [vmem:[#allocation4] sm:$0xff]  }
 0x8e2   : > { %6811 = vmatpush3.bf16.msra.mxu1 %v7296_v47 }
 0x8e3   : > { %v4200_v9 = vcombine.high %v4174_v23, %v4182_v7  ;;  %v4216_v14 = vcombine.high %v4190_v3, %v4198_v61  ;;  %v4199_v15 = vcombine.low %v4174_v23, %v4182_v7  ;;  %v4215_v10 = vcombine.low %v4190_v3, %v4198_v61  ;;  %6812 = vmatprep.subr.bf16.mxu1 %v8203_v24  ;;  %v7303_v23 = vld [vmem:[#allocation4 + $0x18] sm:$0xff]  }
 0x8e4   : > { %v4705_v7 = vsel %vm3693_vm4, %v7302_v21, 0  ;;  %v6386_v3 = vld [vmem:[#allocation27] ss:$0 sm:$0xff]  ;;  %v4819_v61 = vsel %vm3693_vm4, %v7303_v23, 0  ;;  %v7308_v23 = vld [vmem:[#allocation4 + $0x24] sm:$0xff]  }
 0x8e5   : > { %v4214_v16 = vrot.slane %v4200_v9, %v9294_v5  ;;  %v4230_v53 = vrot.slane %v4216_v14, %v9294_v5  ;;  %v4207_v54 = vrot.slane %v4199_v15, %v9294_v5  ;;  %v4223_v25 = vrot.slane %v4215_v10, %v9294_v5 }
 0x8e6   : > { %6813 = vmatpush3.bf16.msra.mxu1 %v7297_v48 }
 0x8e7   : > { %v4233_v26 = vcombine.low %v4214_v16, %v4230_v53  ;;  %v4232_v27 = vcombine.high %v4207_v54, %v4223_v25  ;;  %v4234_v28 = vcombine.high %v4214_v16, %v4230_v53  ;;  %v4231_v0 = vcombine.low %v4207_v54, %v4223_v25  ;;  %6814 = vmatprep.subr.bf16.mxu1 %v8203_v24  ;;  %v7304_v53 = vld [vmem:[#allocation4 + $0x8] ss:$0 sps:$4 sm:$0xff]   ;;  %v7305_v54 = vld [vmem:[#allocation4 + $0x20] ss:$0 sps:$4 sm:$0xff]  }
 0x8e8   : > { %v4708_v25 = vsel %vm3693_vm4, %v7304_v53, 0 }
 0x8e9   : > { %4240 = vrot.lane.b32.xlu1 %v4233_v26, %s8207_s16  ;;  %4236 = vrot.lane.b32.xlu0 %v4232_v27, %s8205_s14  ;;  %v4822_v26 = vsel %vm3693_vm4, %v7305_v54, 0 }
 0x8ed   : > { %4244 = vrot.lane.b32.xlu1 %v4234_v28, %s8206_s4 }
 0x95b   : > { %v4241_v29 = vpop.permute.xlu1 %4240  ;;  %v4237_v31 = vpop.permute.xlu0 %4236 }
 0x95c   : > { %v4247_v33 = vsel %vm3693_vm4, %v4231_v0, %v4237_v31 }
 0x95d   : > { %v4249_v35 = vsel %vm4248_vm10, %v4247_v33, %v4241_v29 }
 0x95f   : > { %v4245_v34 = vpop.permute.xlu1 %4244 }
 0x960   : > { %v4251_v36 = vsel %vm4250_vm11, %v4249_v35, %v4245_v34 }
 0x961   : > { %v4252_v44 = vpack.c.bf16 %v4251_v36, %v4251_v36 }
 0x963   : > { %6803 = vmatmul.mubr.bf16.vlgmr.msra.gmra.mrb[12].mxu0 %v4252_v44 }
 0x964   : > { %6846 = vmatprep.mubr.msk.bf16.mxu0 %vm8204_vm3, %v8203_v24  ;;  %6843 = vmatpush3.bf16.xpose.msra.mxu0 %v4819_v61  ;;  %v7309_v61 = vld [vmem:[#allocation4 + $0x2c] ss:$0 sps:$4 sm:$0xff]  }
 0x965   : > { %6844 = vmatprep.subr.bf16.mxu0 %v8203_v24 }
 0x96c   : > { %6845 = vmatpush3.bf16.xpose.msra.mxu0 %v4822_v26 }
 0x96d   : > { %6858 = vmatprep.subr.bf16.mxu0 %v8203_v24 }
 0xa36   : > { %v4341_v37 = vpop.f32.mrb[12].mxu0 }
 0xa37   : > { %v4342_v58 = vadd.f32 %v6375_v32, %v4341_v37  ;;  %v6804_v18 = vpop.f32.mrb[13].mxu0 }
 0xa38   : > { %v4344_v19 = vpop.f32.mrb[14].mxu0 }
 0xa39   : > { %v6805_v38 = vpop.f32.mrb[15].mxu0  ;;  %v4347_v39 = vadd.f32 %v4342_v58, %v9274_v60  ;;  %v7298_v60 = vld [vmem:[#allocation26 + $0x20] sm:$0xff]  }
 0xa3a   : > { %6815 = vmatpush3.bf16.msra.mxu1 %v7298_v60 }
 0xa3b   : > { %4350 = vadd.xlane.f32.xlu0 %v4347_v39  ;;  %6816 = vmatprep.subr.bf16.mxu1 %v8203_v24 }
 0xa3e   : > { %6817 = vmatpush3.bf16.msra.mxu1 %v7299_v1 }
 0xa3f   : > { %6818 = vmatprep.subr.bf16.mxu1 %v8203_v24 }
 0xa42   : > { %6819 = vmatpush3.bf16.msra.mxu1 %v7300_v49 }
 0xa43   : > { %6820 = vmatprep.subr.bf16.mxu1 %v8203_v24 }
 0xa46   : > { %6821 = vmatpush3.bf16.msra.mxu1 %v7301_v63 }
 0xa47   : > { %6826 = vmatprep.subr.bf16.mxu1 %v8203_v24 }
 0xac8   : > { %v4351_v42 = vpop.xlane.xlu0 %4350 }
 0xac9   : > { %v4353_v43 = vmul.f32 0.0078125, %v4351_v42 }
 0xacb   : > { %v4354_v30 = vsub.f32 %v4347_v39, %v4353_v43 }
 0xacd   : > { %v4355_v17 = vmul.f32 %v4354_v30, %v4354_v30  ;;  %v4375_v62 = vmul.f32 %v6384_v59, %v4354_v30 }
 0xacf   : > { %4356 = vadd.xlane.f32.xlu1 %v4355_v17 }
 0xb5c   : > { %v4357_v50 = vpop.xlane.xlu1 %4356 }
 0xb5d   : > { %v4359_v51 = vmul.f32 0.007874016, %v4357_v50 }
 0xb5f   : > { %7382 = vrsqrt.f32 %v4359_v51  ;;  %vm4362_vm12 = vcmp.eq.f32.partialorder %v4359_v51, inf  ;;  %v4365_v41 = vand.u32 2147483648, %v4359_v51  ;;  %vm4364_vm13 = vcmp.eq.f32.partialorder %v4359_v51, 0.0 }
 0xb69   : > { %v7383_v40 = vpop.eup %7382 }
 0xb6a   : > { %v4361_v56 = vmul.f32 %v7383_v40, %v4359_v51 }
 0xb6c   : > { %v4363_v52 = vsel %vm4362_vm12, %v4359_v51, %v4361_v56 }
 0xb6d   : > { %v4366_v55 = vsel %vm4364_vm13, %v4365_v41, %v4363_v52  ;;  %v7306_v41 = vld [vmem:[#allocation4 + $0xc] sm:$0xff]  }
 0xb6e   : > { %v4367_v57 = vadd.f32 1e-06, %v4366_v55 }
 0xb70   : > { %7384 = vrcp.f32 %v4367_v57 }
 0xb7a   : > { %v7385_v6 = vpop.eup %7384 }
 0xb7b   : > { %v4376_v4 = vmul.f32 %v7385_v6, %v4375_v62  ;;  %v4762_v6 = vsel %vm3693_vm4, %v7306_v41, 0 }
 0xb7d   : > { %v9408_v13 = vadd.f32 %v6385_v12, %v4376_v4  ;;  %v7307_v4 = vld [vmem:[#allocation4 + $0x14] ss:$0 sps:$4 sm:$0xff]  }
 0xb7f   : > { %v4384_v20 = vpack.c.bf16 %v9408_v13, %v9408_v13 }
 0xb81   : > { %6823 = vmatmul.mubr.bf16.vlgmr.msra.gmra.mrb[24].mxu1 %v4384_v20  ;;  %v4765_v20 = vsel %vm3693_vm4, %v7307_v4, 0 }
 0xb82   : > { %6830 = vmatprep.mubr.msk.bf16.mxu1 %vm8204_vm3, %v8203_v24  ;;  %6827 = vmatpush3.bf16.xpose.msra.mxu1 %v4705_v7 }
 0xb83   : > { %6828 = vmatprep.subr.bf16.mxu1 %v8203_v24 }
 0xb8a   : > { %6829 = vmatpush3.bf16.xpose.msra.mxu1 %v4708_v25 }
 0xb8b   : > { %6834 = vmatprep.subr.bf16.mxu1 %v8203_v24 }
 0xc54   : > { %v4490_v9 = vpop.f32.mrb[24].mxu1 }
 0xc55   : > { %v4491_v14 = vadd.f32 %v6386_v3, %v4490_v9  ;;  %v6824_v15 = vpop.f32.mrb[25].mxu1  ;;  %v4876_v3 = vsel %vm3693_vm4, %v7308_v23, 0  ;;  %v4879_v9 = vsel %vm3693_vm4, %v7309_v61, 0  ;;  %v7312_v23 = vld [vmem:[#allocation5 + $0xc] sm:$0xff]  }
 0xc56   : > { %v4493_v10 = vpop.f32.mrb[26].mxu1 }
 0xc57   : > { %4541 = vrot.lane.b32.xlu1 %v4491_v14, %s8207_s16  ;;  %4538 = vrot.lane.b32.xlu0 %v4491_v14, %s8206_s4  ;;  %v6825_v16 = vpop.f32.mrb[27].mxu1  ;;  %v3387_v10 = vld [vmem:[%s1301_s7] sm:$0x1]  ;;  %s9782_s7 = sld [smem:[#allocation71_spill]] }
 0xc58   : > { %vm3404_vm14 = vcmp.gt.f32.partialorder %v3387_v10, 0.5 }
 0xc59   : > { %v3405_v16 = vsel %vm3404_vm14, -1e+18, %v8203_v24 }
 0xc5a   : > { %v4691_v53 = vrot.slane %v3405_v16, %v9334_v22  ;;  %v7315_v16 = vld [vmem:[#allocation5 + $0x20] ss:$0 sps:$4 sm:$0xff]  }
 0xc5b   : > { %4544 = vrot.lane.b32.xlu0 %v4491_v14, %s8205_s14 }
 0xcc9   : > { %v4542_v27 = vpop.permute.xlu1 %4541  ;;  %v4539_v28 = vpop.permute.xlu0 %4538 }
 0xcca   : > { %v4547_v0 = vcombine.low %v4491_v14, %v4542_v27  ;;  %v4548_v29 = vcombine.high %v4491_v14, %v4542_v27 }
 0xccc   : > { %v4555_v35 = vrot.slane %v4547_v0, %v9291_v11  ;;  %v4562_v36 = vrot.slane %v4548_v29, %v9291_v11 }
 0xccd   : > { %v4545_v31 = vpop.permute.xlu0 %4544 }
 0xcce   : > { %v4563_v33 = vcombine.low %v4539_v28, %v4545_v31  ;;  %v4564_v34 = vcombine.high %v4539_v28, %v4545_v31 }
 0xcd0   : > { %v4571_v44 = vrot.slane %v4563_v33, %v9291_v11  ;;  %v4578_v32 = vrot.slane %v4564_v34, %v9291_v11 }
 0xcd2   : > { %v4579_v37 = vcombine.low %v4555_v35, %v4571_v44  ;;  %v4580_v58 = vcombine.high %v4555_v35, %v4571_v44  ;;  %v4595_v18 = vcombine.low %v4562_v36, %v4578_v32  ;;  %v4596_v19 = vcombine.high %v4562_v36, %v4578_v32 }
 0xcd4   : > { %v4587_v38 = vrot.slane %v4579_v37, %v9294_v5  ;;  %v4594_v39 = vrot.slane %v4580_v58, %v9294_v5  ;;  %v4603_v42 = vrot.slane %v4595_v18, %v9294_v5  ;;  %v4610_v43 = vrot.slane %v4596_v19, %v9294_v5 }
 0xcd6   : > { %v4615_v30 = vcombine.low %v4587_v38, %v4594_v39  ;;  %v6395_v17 = vcombine.high %v4587_v38, %v4594_v39  ;;  %v4631_v45 = vcombine.low %v4603_v42, %v4610_v43  ;;  %v6396_v46 = vcombine.high %v4603_v42, %v4610_v43 }
 0xcd8   : > { %v4622_v47 = vrot.slane %v4615_v30, %v9291_v11  ;;  %v4630_v48 = vrot.slane %v6395_v17, %v9291_v11  ;;  %v4638_v60 = vrot.slane %v4631_v45, %v9291_v11  ;;  %v4646_v1 = vrot.slane %v6396_v46, %v9291_v11 }
 0xcda   : > { %v4647_v49 = vcombine.low %v4622_v47, %v4630_v48  ;;  %v4648_v63 = vcombine.high %v4622_v47, %v4630_v48  ;;  %v4663_v50 = vcombine.low %v4638_v60, %v4646_v1  ;;  %v4664_v51 = vcombine.high %v4638_v60, %v4646_v1 }
 0xcdc   : > { %v4655_v40 = vrot.slane %v4647_v49, %v9294_v5  ;;  %v4671_v56 = vrot.slane %v4663_v50, %v9294_v5  ;;  %v4662_v52 = vrot.slane %v4648_v63, %v9294_v5  ;;  %v4678_v55 = vrot.slane %v4664_v51, %v9294_v5 }
 0xcde   : > { %v4679_v57 = vcombine.low %v4655_v40, %v4671_v56  ;;  %v4681_v59 = vcombine.low %v4662_v52, %v4678_v55  ;;  %v4680_v21 = vcombine.high %v4655_v40, %v4671_v56  ;;  %v4682_v14 = vcombine.high %v4662_v52, %v4678_v55 }
 0xce0   : > { %v4683_v62 = vpack.c.bf16 %v4679_v57, %v4679_v57  ;;  %v4685_v12 = vpack.c.bf16 %v4681_v59, %v4681_v59  ;;  %v4684_v7 = vpack.c.bf16 %v4680_v21, %v4680_v21  ;;  %v4686_v15 = vpack.c.bf16 %v4682_v14, %v4682_v14 }
 0xce2   : > { %6831 = vmatmul.mubr.msk.bf16.vlgmr.msra.gmra.mrb[28].mxu1 %vm3693_vm4, %v4683_v62  ;;  %6847 = vmatmul.mubr.msk.bf16.vlgmr.msra.gmra.mrb[16].mxu0 %vm3693_vm4, %v4685_v12  ;;  %v7311_v12 = vld [vmem:[#allocation5 + $0x8] ss:$0 sps:$4 sm:$0xff]  }
 0xce3   : > { %6835 = vmatpush3.bf16.xpose.msra.mxu1 %v4762_v6  ;;  %6838 = vmatprep.mubr.msk.bf16.mxu1 %vm8204_vm3, %v8203_v24  ;;  %v7310_v6 = vld [vmem:[#allocation5] sm:$0xff]   ;;  %v4984_v4 = vsel %vm4982_vm0, %v7311_v12, 0 }
 0xce4   : > { %6836 = vmatprep.subr.bf16.mxu1 %v8203_v24  ;;  %6862 = vmatprep.mubr.msk.bf16.mxu0 %vm8204_vm3, %v8203_v24 }
 0xce5   : > { %6859 = vmatpush3.bf16.msra.mxu0 %v7310_v6 }
 0xce6   : > { %6860 = vmatprep.subr.bf16.mxu0 %v8203_v24 }
 0xce9   : > { %6861 = vmatpush3.bf16.msra.mxu0 %v4984_v4  ;;  %v7324_v4 = vld [vmem:[#allocation32 + $0x30] sm:$0xff]  }
 0xcea   : > { %6874 = vmatprep.subr.bf16.mxu0 %v8203_v24 }
 0xceb   : > { %6837 = vmatpush3.bf16.xpose.msra.mxu1 %v4765_v20 }
 0xcec   : > { %6850 = vmatprep.subr.bf16.mxu1 %v8203_v24 }
 0xcf2   : > { %6839 = vmatmul.mubr.msk.bf16.vlgmr.msra.gmra.mrb[32].mxu1 %vm3693_vm4, %v4684_v7  ;;  %v7313_v7 = vld [vmem:[#allocation5 + $0x14] ss:$0 sps:$4 sm:$0xff]  }
 0xcf3   : > { %6851 = vmatpush3.bf16.xpose.msra.mxu1 %v4876_v3  ;;  %6854 = vmatprep.mubr.msk.bf16.mxu1 %vm8204_vm3, %v8203_v24  ;;  %v5039_v3 = vsel %vm4982_vm0, %v7313_v7, 0 }
 0xcf4   : > { %6852 = vmatprep.subr.bf16.mxu1 %v8203_v24 }
 0xcfb   : > { %6853 = vmatpush3.bf16.xpose.msra.mxu1 %v4879_v9 }
 0xcfc   : > { %6866 = vmatprep.subr.bf16.mxu1 %v8203_v24 }
 0xd02   : > { %6855 = vmatmul.mubr.msk.bf16.vlgmr.msra.gmra.mrb[36].mxu1 %vm3693_vm4, %v4686_v15  ;;  %v7314_v15 = vld [vmem:[#allocation5 + $0x18] sm:$0xff]  }
 0xd03   : > { %6870 = vmatprep.mubr.msk.bf16.mxu1 %vm8204_vm3, %v8203_v24  ;;  %6867 = vmatpush3.bf16.msra.mxu1 %v7312_v23 }
 0xd04   : > { %6868 = vmatprep.subr.bf16.mxu1 %v8203_v24 }
 0xd07   : > { %6869 = vmatpush3.bf16.msra.mxu1 %v5039_v3 }
 0xd08   : > { %6882 = vmatprep.subr.bf16.mxu1 %v8203_v24 }
 0xdb5   : > { %v4744_v54 = vpop.f32.mrb[28].mxu1  ;;  %v4858_v25 = vpop.f32.mrb[16].mxu0 }
 0xdb6   : > { %v4745_v26 = vadd.f32 %v4744_v54, %v4691_v53  ;;  %v6832_v27 = vpop.f32.mrb[29].mxu1  ;;  %v6848_v28 = vpop.f32.mrb[17].mxu0  ;;  %v4859_v37 = vadd.f32 %v4858_v25, %v4691_v53  ;;  %v5094_v54 = vsel %vm4982_vm0, %v7315_v16, 0 }
 0xdb7   : > { %v4747_v0 = vpop.f32.mrb[30].mxu1  ;;  %v4861_v29 = vpop.f32.mrb[18].mxu0  ;;  %v7316_v28 = vld [vmem:[#allocation5 + $0x24] sm:$0xff]  }
 0xdb8   : > { %v6833_v31 = vpop.f32.mrb[31].mxu1  ;;  %v6849_v33 = vpop.f32.mrb[19].mxu0  ;;  %v4922_v34 = vsel %vm4921_vm15, %v4745_v26, -inf  ;;  %v4928_v19 = vsel %vm4921_vm15, %v4859_v37, -inf  ;;  %v7317_v29 = vld [vmem:[#allocation5 + $0x2c] ss:$0 sps:$4 sm:$0xff]  }
 0xdb9   : > { %4923 = vmax.xlane.f32.xlu1 %v4922_v34 }
 0xdc5   : > { %v4801_v35 = vpop.f32.mrb[32].mxu1 }
 0xdc6   : > { %v4802_v36 = vadd.f32 %v4801_v35, %v4691_v53  ;;  %v6840_v44 = vpop.f32.mrb[33].mxu1 }
 0xdc7   : > { %v4804_v32 = vpop.f32.mrb[34].mxu1 }
 0xdc8   : > { %v6841_v58 = vpop.f32.mrb[35].mxu1  ;;  %v4925_v18 = vsel %vm4921_vm15, %v4802_v36, -inf }
 0xdc9   : > { %4926 = vmax.xlane.f32.xlu0 %v4925_v18  ;;  %v7318_v58 = vld [vmem:[#allocation32] sm:$0xff]   ;;  %v7319_v18 = vld [vmem:[#allocation32 + $0x8] sm:$0xff]  }
 0xdcd   : > { %4929 = vmax.xlane.f32.xlu0 %v4928_v19  ;;  %v7320_v19 = vld [vmem:[#allocation32 + $0x10] sm:$0xff]  }
 0xdd5   : > { %v4915_v38 = vpop.f32.mrb[36].mxu1 }
 0xdd6   : > { %v4916_v39 = vadd.f32 %v4915_v38, %v4691_v53  ;;  %v6856_v42 = vpop.f32.mrb[37].mxu1  ;;  %v7321_v38 = vld [vmem:[#allocation32 + $0x18] sm:$0xff]  }
 0xdd7   : > { %v4918_v43 = vpop.f32.mrb[38].mxu1  ;;  %v7323_v42 = vld [vmem:[#allocation32 + $0x28] sm:$0xff]  }
 0xdd8   : > { %v6857_v30 = vpop.f32.mrb[39].mxu1  ;;  %v4931_v17 = vsel %vm4921_vm15, %v4916_v39, -inf }
 0xdd9   : > { %4932 = vmax.xlane.f32.xlu1 %v4931_v17 }
 0xe46   : > { %v4924_v45 = vpop.xlane.xlu1 %4923 }
 0xe47   : > { %v4934_v46 = vsub.f32 %v4745_v26, %v4924_v45 }
 0xe49   : > { %v4938_v47 = vmul.f32 1.442695, %v4934_v46 }
 0xe4b   : > { %7386 = vpow2.f32 %v4938_v47 }
 0xe55   : > { %v7387_v48 = vpop.eup %7386 }
 0xe56   : > { %v4927_v60 = vpop.xlane.xlu0 %4926  ;;  %v4946_v1 = vsel %vm4921_vm15, %v7387_v48, 0.0 }
 0xe57   : > { %v4935_v49 = vsub.f32 %v4802_v36, %v4927_v60  ;;  %4947 = vadd.xlane.f32.xlu0 %v4946_v1  ;;  %v5149_v36 = vsel %vm4982_vm0, %v7317_v29, 0 }
 0xe59   : > { %v4940_v63 = vmul.f32 1.442695, %v4935_v49 }
 0xe5a   : > { %v4930_v50 = vpop.xlane.xlu0 %4929 }
 0xe5b   : > { %7388 = vpow2.f32 %v4940_v63  ;;  %v4936_v51 = vsub.f32 %v4859_v37, %v4930_v50 }
 0xe5d   : > { %v4942_v40 = vmul.f32 1.442695, %v4936_v51 }
 0xe5f   : > { %7390 = vpow2.f32 %v4942_v40 }
 0xe65   : > { %v7389_v56 = vpop.eup %7388 }
 0xe66   : > { %v4933_v41 = vpop.xlane.xlu1 %4932  ;;  %v4949_v52 = vsel %vm4921_vm15, %v7389_v56, 0.0 }
 0xe67   : > { %v4937_v55 = vsub.f32 %v4916_v39, %v4933_v41  ;;  %4950 = vadd.xlane.f32.xlu1 %v4949_v52  ;;  %v7322_v39 = vld [vmem:[#allocation32 + $0x20] sm:$0xff]  }
 0xe69   : > { %v7391_v57 = vpop.eup %7390  ;;  %v4944_v59 = vmul.f32 1.442695, %v4937_v55 }
 0xe6a   : > { %v4952_v62 = vsel %vm4921_vm15, %v7391_v57, 0.0 }
 0xe6b   : > { %7392 = vpow2.f32 %v4944_v59  ;;  %4953 = vadd.xlane.f32.xlu0 %v4952_v62 }
 0xe75   : > { %v7393_v20 = vpop.eup %7392 }
 0xe76   : > { %v4955_v21 = vsel %vm4921_vm15, %v7393_v20, 0.0 }
 0xe77   : > { %4956 = vadd.xlane.f32.xlu1 %v4955_v21 }
 0xee4   : > { %v4948_v61 = vpop.xlane.xlu0 %4947 }
 0xee5   : > { %7394 = vrcp.f32 %v4948_v61 }
 0xeef   : > { %v7395_v9 = vpop.eup %7394 }
 0xef0   : > { %v4962_v14 = vmul.f32 %v7395_v9, %v7387_v48 }
 0xef2   : > { %5837 = vst.msk [vmem:[%s8865_s3] sm:$0xff] %vm4921_vm15, %v4962_v14  ;;  %v4966_v10 = vpack.c.bf16 %v4962_v14, %v4962_v14 }
 0xef4   : > { %v4951_v53 = vpop.xlane.xlu1 %4950  ;;  %6863 = vmatmul.mubr.msk.bf16.vlgmr.msra.gmra.mrb[20].mxu0 %vm4921_vm15, %v4966_v10 }
 0xef5   : > { %7396 = vrcp.f32 %v4951_v53  ;;  %6875 = vmatpush3.bf16.msra.mxu0 %v7314_v15  ;;  %6878 = vmatprep.mubr.msk.bf16.mxu0 %vm8204_vm3, %v8203_v24  ;;  %v7325_v15 = vld [vmem:[#allocation32 + $0x38] sm:$0xff]  }
 0xef6   : > { %6876 = vmatprep.subr.bf16.mxu0 %v8203_v24 }
 0xef8   : > { %v4954_v25 = vpop.xlane.xlu0 %4953 }
 0xef9   : > { %7398 = vrcp.f32 %v4954_v25  ;;  %6877 = vmatpush3.bf16.msra.mxu0 %v5094_v54 }
 0xefa   : > { %6890 = vmatprep.subr.bf16.mxu0 %v8203_v24 }
 0xeff   : > { %v7397_v26 = vpop.eup %7396 }
 0xf00   : > { %v4963_v27 = vmul.f32 %v7397_v26, %v7389_v56 }
 0xf02   : > { %v4967_v0 = vpack.c.bf16 %v4963_v27, %v4963_v27 }
 0xf03   : > { %v7399_v31 = vpop.eup %7398 }
 0xf04   : > { %v4964_v33 = vmul.f32 %v7399_v31, %v7391_v57  ;;  %6871 = vmatmul.mubr.msk.bf16.vlgmr.msra.gmra.mrb[40].mxu1 %vm4921_vm15, %v4967_v0  ;;  %v4957_v34 = vpop.xlane.xlu1 %4956 }
 0xf05   : > { %7400 = vrcp.f32 %v4957_v34  ;;  %6883 = vmatpush3.bf16.msra.mxu1 %v7316_v28  ;;  %6886 = vmatprep.mubr.msk.bf16.mxu1 %vm8204_vm3, %v8203_v24 }
 0xf06   : > { %v4968_v35 = vpack.c.bf16 %v4964_v33, %v4964_v33  ;;  %6884 = vmatprep.subr.bf16.mxu1 %v8203_v24 }
 0xf08   : > { %6879 = vmatmul.mubr.msk.bf16.vlgmr.msra.gmra.mrb[24].mxu0 %vm4921_vm15, %v4968_v35 }
 0xf09   : > { %6885 = vmatpush3.bf16.msra.mxu1 %v5149_v36  ;;  %6906 = vmatprep.mubr.msk.bf16.mxu0 %vm8204_vm3, %v8203_v24 }
 0xf0a   : > { %6891 = vmatpush3.bf16.msra.mxu0 %v7318_v58 }
 0xf0b   : > { %6892 = vmatprep.subr.bf16.mxu0 %v8203_v24 }
 0xf0e   : > { %6893 = vmatpush3.bf16.msra.mxu0 %v7319_v18 }
 0xf0f   : > { %v7401_v44 = vpop.eup %7400  ;;  %6894 = vmatprep.subr.bf16.mxu0 %v8203_v24 }
 0xf10   : > { %v4965_v32 = vmul.f32 %v7401_v44, %v7393_v20 }
 0xf12   : > { %v4969_v37 = vpack.c.bf16 %v4965_v32, %v4965_v32  ;;  %6895 = vmatpush3.bf16.msra.mxu0 %v7320_v19 }
 0xf13   : > { %6896 = vmatprep.subr.bf16.mxu0 %v8203_v24 }
 0xf14   : > { %6887 = vmatmul.mubr.msk.bf16.vlgmr.msra.gmra.mrb[44].mxu1 %vm4921_vm15, %v4969_v37 }
 0xf15   : > { %5647 = vmatprep.mubr.bf16.mxu1 %v8210_v2 }
 0xf16   : > { %6897 = vmatpush3.bf16.msra.mxu0 %v7321_v38 }
 0xf17   : > { %6898 = vmatprep.subr.bf16.mxu0 %v8203_v24 }
 0xf1a   : > { %6899 = vmatpush3.bf16.msra.mxu0 %v7322_v39 }
 0xf1b   : > { %6900 = vmatprep.subr.bf16.mxu0 %v8203_v24 }
 0xf1e   : > { %6901 = vmatpush3.bf16.msra.mxu0 %v7323_v42 }
 0xf1f   : > { %6902 = vmatprep.subr.bf16.mxu0 %v8203_v24 }
 0xf22   : > { %6903 = vmatpush3.bf16.msra.mxu0 %v7324_v4 }
 0xf23   : > { %6904 = vmatprep.subr.bf16.mxu0 %v8203_v24 }
 0xf26   : > { %6905 = vmatpush3.bf16.msra.mxu0 %v7325_v15  ;;  %v7332_v15 = vld [vmem:[#allocation33 + $0x20] ss:$8 sps:$4 sm:$0xff]  }
 0xfc7   : > { %v5020_v2 = vpop.f32.mrb[20].mxu0 }
 0xfc8   : > { %v6864_v43 = vpop.f32.mrb[21].mxu0 }
 0xfc9   : > { %v5023_v30 = vpop.f32.mrb[22].mxu0 }
 0xfca   : > { %v6865_v17 = vpop.f32.mrb[23].mxu0 }
 0xfd7   : > { %v5075_v45 = vpop.f32.mrb[40].mxu1 }
 0xfd8   : > { %v6872_v46 = vpop.f32.mrb[41].mxu1 }
 0xfd9   : > { %v5078_v47 = vpop.f32.mrb[42].mxu1 }
 0xfda   : > { %v6873_v48 = vpop.f32.mrb[43].mxu1 }
 0xfdb   : > { %v5130_v60 = vpop.f32.mrb[24].mxu0 }
 0xfdc   : > { %v5191_v1 = vcombine.low %v5020_v2, %v5130_v60  ;;  %v5192_v49 = vcombine.high %v5020_v2, %v5130_v60  ;;  %v6880_v63 = vpop.f32.mrb[25].mxu0  ;;  %v6423_v2 = vld [vmem:[%s9781_s17] ss:$0 sm:$0xff] }
 0xfdd   : > { %v5133_v50 = vpop.f32.mrb[26].mxu0 }
 0xfde   : > { %v6881_v51 = vpop.f32.mrb[27].mxu0  ;;  %v5199_v57 = vrot.slane %v5191_v1, %v9291_v11  ;;  %v5206_v59 = vrot.slane %v5192_v49, %v9291_v11 }
 0xfe7   : > { %v5185_v40 = vpop.f32.mrb[44].mxu1 }
 0xfe8   : > { %v5207_v56 = vcombine.low %v5075_v45, %v5185_v40  ;;  %v5208_v41 = vcombine.high %v5075_v45, %v5185_v40  ;;  %v6888_v52 = vpop.f32.mrb[45].mxu1 }
 0xfe9   : > { %v5188_v55 = vpop.f32.mrb[46].mxu1 }
 0xfea   : > { %v5215_v62 = vrot.slane %v5207_v56, %v9291_v11  ;;  %v5222_v6 = vrot.slane %v5208_v41, %v9291_v11  ;;  %v6889_v12 = vpop.f32.mrb[47].mxu1 }
 0xfec   : > { %v5223_v20 = vcombine.low %v5199_v57, %v5215_v62  ;;  %v5224_v21 = vcombine.high %v5199_v57, %v5215_v62  ;;  %v5239_v23 = vcombine.low %v5206_v59, %v5222_v6  ;;  %v5240_v7 = vcombine.high %v5206_v59, %v5222_v6  ;;  %v6433_v62 = vld [vmem:[%s9783_s19] ss:$0 sm:$0xff]  ;;  %s5844_s19 = scalar_lea.sflag [#allocation38], %s8852_s6 }
 0xfee   : > { %v5231_v3 = vrot.slane %v5223_v20, %v9294_v5  ;;  %v5238_v61 = vrot.slane %v5224_v21, %v9294_v5  ;;  %v5247_v9 = vrot.slane %v5239_v23, %v9294_v5  ;;  %v5254_v14 = vrot.slane %v5240_v7, %v9294_v5  ;;  %v7328_v7 = vld [vmem:[#allocation33 + $0x4] ss:$8 sps:$4 sm:$0xff]  }
 0xfef   : > { %5615 = vmatprep.subr.bf16.mxu1 %v7328_v7 }
 0xff0   : > { %v5259_v10 = vcombine.low %v5231_v3, %v5238_v61  ;;  %v6421_v16 = vcombine.high %v5231_v3, %v5238_v61  ;;  %v5275_v53 = vcombine.low %v5247_v9, %v5254_v14  ;;  %v6422_v54 = vcombine.high %v5247_v9, %v5254_v14  ;;  %v7326_v3 = vld [vmem:[#allocation33] ss:$8 sps:$4 sm:$0xff]   ;;  %v7331_v61 = vld [vmem:[#allocation33 + $0x14] ss:$8 sps:$4 sm:$0xff]   ;;  %v7329_v9 = vld [vmem:[#allocation33 + $0x10] ss:$8 sps:$4 sm:$0xff]  }
 0xff1   : > { %5616 = vmatpush1.bf16.msra.mxu1 %v7326_v3  ;;  %v7334_v14 = vld [vmem:[#allocation33 + $0x24] ss:$8 sps:$4 sm:$0xff]  }
 0xff2   : > { %v5266_v25 = vrot.slane %v5259_v10, %v9291_v11  ;;  %v5274_v26 = vrot.slane %v6421_v16, %v9291_v11  ;;  %v5282_v27 = vrot.slane %v5275_v53, %v9291_v11  ;;  %v5290_v28 = vrot.slane %v6422_v54, %v9291_v11  ;;  %5617 = vmatprep.subr.bf16.mxu1 %v7331_v61  ;;  %v7337_v10 = vld [vmem:[#allocation33 + $0x34] ss:$8 sps:$4 sm:$0xff]   ;;  %v7335_v16 = vld [vmem:[#allocation33 + $0x30] ss:$8 sps:$4 sm:$0xff]   ;;  %v7340_v53 = vld [vmem:[#allocation33 + $0x44] ss:$8 sps:$4 sm:$0xff]  }
 0xff3   : > { %v7338_v54 = vld [vmem:[#allocation33 + $0x40] ss:$8 sps:$4 sm:$0xff]  }
 0xff4   : > { %v5292_v0 = vcombine.high %v5266_v25, %v5274_v26  ;;  %v5308_v29 = vcombine.high %v5282_v27, %v5290_v28  ;;  %v5291_v31 = vcombine.low %v5266_v25, %v5274_v26  ;;  %v5307_v33 = vcombine.low %v5282_v27, %v5290_v28  ;;  %v7343_v25 = vld [vmem:[#allocation33 + $0x54] ss:$8 sps:$4 sm:$0xff]   ;;  %v7341_v26 = vld [vmem:[#allocation33 + $0x50] ss:$8 sps:$4 sm:$0xff]   ;;  %v7346_v27 = vld [vmem:[#allocation33 + $0x64] ss:$8 sps:$4 sm:$0xff]  }
 0xff5   : > { %5618 = vmatpush1.bf16.msra.mxu1 %v7329_v9  ;;  %v7344_v28 = vld [vmem:[#allocation33 + $0x60] ss:$8 sps:$4 sm:$0xff]  }
 0xff6   : > { %v5306_v24 = vrot.slane %v5292_v0, %v9294_v5  ;;  %v5322_v34 = vrot.slane %v5308_v29, %v9294_v5  ;;  %v5299_v35 = vrot.slane %v5291_v31, %v9294_v5  ;;  %v5315_v36 = vrot.slane %v5307_v33, %v9294_v5  ;;  %5619 = vmatprep.subr.bf16.mxu1 %v7334_v14  ;;  %v7349_v0 = vld [vmem:[#allocation33 + $0x74] ss:$8 sps:$4 sm:$0xff]   ;;  %v7347_v29 = vld [vmem:[#allocation33 + $0x70] ss:$8 sps:$4 sm:$0xff]   ;;  %v7350_v31 = vld [vmem:[#allocation35 + $0x40] sm:$0xff]  }
 0xff7   : > { %v7351_v33 = vld [vmem:[#allocation35] sm:$0xff]   ;;  %6616 = vmatprep.subr.bf16.mxu0 %v7350_v31 }
 0xff8   : > { %v5325_v44 = vcombine.low %v5306_v24, %v5322_v34  ;;  %v5324_v32 = vcombine.high %v5299_v35, %v5315_v36  ;;  %v5326_v37 = vcombine.high %v5306_v24, %v5322_v34  ;;  %v5323_v58 = vcombine.low %v5299_v35, %v5315_v36  ;;  %v7352_v24 = vld [vmem:[#allocation35 + $0x48] sm:$0xff]   ;;  %v7354_v35 = vld [vmem:[#allocation35 + $0x50] sm:$0xff]  }
 0xff9   : > { %5620 = vmatpush1.bf16.msra.mxu1 %v7332_v15  ;;  %v7353_v34 = vld [vmem:[#allocation35 + $0x8] sm:$0xff]   ;;  %v7355_v36 = vld [vmem:[#allocation35 + $0x10] sm:$0xff]  }
 0xffa   : > { %5332 = vrot.lane.b32.xlu1 %v5325_v44, %s8207_s16  ;;  %5328 = vrot.lane.b32.xlu0 %v5324_v32, %s8205_s14  ;;  %v7356_v44 = vld [vmem:[#allocation35 + $0x58] sm:$0xff]   ;;  %s9787_s14 = sld [smem:[#allocation85_spill]] }
 0xffb   : > { %5621 = vmatprep.subr.bf16.mxu1 %v7337_v10  ;;  %v7357_v32 = vld [vmem:[#allocation35 + $0x18] sm:$0xff]  }
 0xffd   : > { %5622 = vmatpush1.bf16.msra.mxu1 %v7335_v16 }
 0xffe   : > { %5336 = vrot.lane.b32.xlu1 %v5326_v37, %s8206_s4  ;;  %5623 = vmatprep.subr.bf16.mxu1 %v7340_v53  ;;  %v7358_v37 = vld [vmem:[#allocation35 + $0x60] sm:$0xff]   ;;  %s9788_s4 = sld [smem:[#allocation80_spill]] }
0x1000   : > { %s6471_s16 = sshll.u32 %s9787_s14, 1 }
0x1001   : > { %5624 = vmatpush1.bf16.msra.mxu1 %v7338_v54  ;;  %s9547_s21 = sadd.s32 %s9778_s2, %s6471_s16 }
0x1002   : > { %5625 = vmatprep.subr.bf16.mxu1 %v7343_v25  ;;  %s6472_s24 = sshll.u32 %s9547_s21, 7 }
0x1004   : > { %s9553_s17 = scalar_lea.hbm %s9788_s4, %s6472_s24 }
0x1005   : > { %5626 = vmatpush1.bf16.msra.mxu1 %v7341_v26 }
0x1006   : > { %5627 = vmatprep.subr.bf16.mxu1 %v7346_v27 }
0x1009   : > { %5628 = vmatpush1.bf16.msra.mxu1 %v7344_v28 }
0x100a   : > { %5629 = vmatprep.subr.bf16.mxu1 %v7349_v0 }
0x100d   : > { %5630 = vmatpush1.bf16.msra.mxu1 %v7347_v29 }
0x106c   : > { %v5333_v11 = vpop.permute.xlu1 %5332  ;;  %v5329_v18 = vpop.permute.xlu0 %5328 }
0x106d   : > { %v5339_v19 = vsel %vm3693_vm4, %v5323_v58, %v5329_v18  ;;  %v7359_v58 = vld [vmem:[#allocation35 + $0x20] sm:$0xff]   ;;  %v7361_v18 = vld [vmem:[#allocation35 + $0x28] sm:$0xff]  }
0x106e   : > { %v5340_v39 = vsel %vm4248_vm10, %v5339_v19, %v5333_v11  ;;  %v7360_v11 = vld [vmem:[#allocation35 + $0x68] sm:$0xff]  }
0x1070   : > { %v5337_v38 = vpop.permute.xlu1 %5336 }
0x1071   : > { %v5341_v5 = vsel %vm4250_vm11, %v5340_v39, %v5337_v38 }
0x1072   : > { %v5342_v42 = vpack.c.bf16 %v5341_v5, %v5341_v5 }
0x1074   : > { %6907 = vmatmul.mubr.bf16.vlgmr.msra.gmra.mrb[28].mxu0 %v5342_v42 }
0x1075   : > { %6617 = vmatpush3.bf16.msra.mxu0 %v7351_v33 }
0x1076   : > { %6618 = vmatprep.subr.bf16.mxu0 %v7352_v24 }
0x1079   : > { %6619 = vmatpush3.bf16.msra.mxu0 %v7353_v34 }
0x107a   : > { %6620 = vmatprep.subr.bf16.mxu0 %v7354_v35 }
0x107d   : > { %6621 = vmatpush3.bf16.msra.mxu0 %v7355_v36 }
0x107e   : > { %6622 = vmatprep.subr.bf16.mxu0 %v7356_v44 }
0x1081   : > { %6623 = vmatpush3.bf16.msra.mxu0 %v7357_v32 }
0x1082   : > { %6624 = vmatprep.subr.bf16.mxu0 %v7358_v37 }
0x1085   : > { %6625 = vmatpush3.bf16.msra.mxu0 %v7359_v58 }
0x1086   : > { %6626 = vmatprep.subr.bf16.mxu0 %v7360_v11 }
0x1089   : > { %6627 = vmatpush3.bf16.msra.mxu0 %v7361_v18 }
0x1147   : > { %v5431_v43 = vpop.f32.mrb[28].mxu0 }
0x1148   : > { %v5432_v30 = vadd.f32 %v6423_v2, %v5431_v43  ;;  %v6908_v17 = vpop.f32.mrb[29].mxu0 }
0x1149   : > { %v5434_v45 = vpop.f32.mrb[30].mxu0  ;;  %v6434_v17 = vld [vmem:[%s9784_s23] ss:$0 sm:$0xff] }
0x114a   : > { %v6909_v46 = vpop.f32.mrb[31].mxu0  ;;  %v5437_v47 = vadd.f32 %v5432_v30, %v9408_v13  ;;  %v6432_v13 = vld [vmem:[%s9782_s7] ss:$0 sm:$0xff]  ;;  %s5874_s7 = sshll.u32 %s8865_s3, 4  ;;  %s5875_s7 = int_to_ptr.vmem [resolvable:$true] %s5874_s7 }
0x114b   : > { %s7946_s23 = scalar_lea.vmem %s5875_s7, 128 }
0x114c   : > { %5440 = vadd.xlane.f32.xlu0 %v5437_v47  ;;  %p7947_p1 = scmp.ne.s32.totalorder %s5875_s7, %s7946_s23 }
0x114e   : > { %p7948_p10 = pnand %p7947_p1, %p9789_p13 }
0x1150   : > { %p7949_p4 = pneg %p7948_p10 }
0x11d9   : > { %v5441_v48 = vpop.xlane.xlu0 %5440 }
0x11da   : > { %v5442_v60 = vmul.f32 0.0078125, %v5441_v48 }
0x11dc   : > { %v5443_v1 = vsub.f32 %v5437_v47, %v5442_v60  ;;  %v6435_v47 = vld [vmem:[%s9785_s13] ss:$0 sm:$0xff]  ;;  %s8211_s13 = smov [#allocation37]  }
0x11de   : > { %v5444_v49 = vmul.f32 %v5443_v1, %v5443_v1  ;;  %v5463_v57 = vmul.f32 %v6432_v13, %v5443_v1 }
0x11e0   : > { %5445 = vadd.xlane.f32.xlu1 %v5444_v49  ;;  %v7362_v49 = vld [vmem:[#allocation35 + $0x70] sm:$0xff]  }
0x11e1   : > { %6628 = vmatprep.subr.bf16.mxu0 %v7362_v49 }
0x126d   : > { %v5446_v63 = vpop.xlane.xlu1 %5445 }
0x126e   : > { %v5447_v50 = vmul.f32 0.007874016, %v5446_v63  ;;  %v7363_v63 = vld [vmem:[#allocation35 + $0x30] sm:$0xff]  }
0x126f   : > { %6629 = vmatpush3.bf16.msra.mxu0 %v7363_v63 }
0x1270   : > { %7402 = vrsqrt.f32 %v5447_v50  ;;  %vm5450_vm1 = vcmp.eq.f32.partialorder %v5447_v50, inf  ;;  %v5453_v56 = vand.u32 2147483648, %v5447_v50  ;;  %vm5452_vm2 = vcmp.eq.f32.partialorder %v5447_v50, 0.0 }
0x127a   : > { %v7403_v51 = vpop.eup %7402 }
0x127b   : > { %v5449_v40 = vmul.f32 %v7403_v51, %v5447_v50  ;;  %v7365_v51 = vld [vmem:[#allocation35 + $0x38] sm:$0xff]  }
0x127d   : > { %v5451_v41 = vsel %vm5450_vm1, %v5447_v50, %v5449_v40  ;;  %v7364_v50 = vld [vmem:[#allocation35 + $0x78] sm:$0xff]   ;;  %v5523_v40 = vld [vmem:[%s9786_s26] sm:$0x3]  ;;  %s7950_s26 = sshll.u32 %s8211_s13, 4  ;;  %s7951_s26 = int_to_ptr.vmem [resolvable:$false] %s7950_s26 }
0x127e   : > { %v5454_v52 = vsel %vm5452_vm2, %v5453_v56, %v5451_v41  ;;  %6630 = vmatprep.subr.bf16.mxu0 %v7364_v50  ;;  %v5531_v56 = vsub.s32 1, %v9288_v8  ;;  %v5528_v41 = vrot.slane %v5523_v40, %v9334_v22  ;;  %s7952_s14 = scalar_lea.vmem %s7951_s26, 256  ;;  %p7953_p12 = scmp.lt.s32.totalorder %s5875_s7, %s7951_s26 }
0x127f   : > { %v5455_v55 = vadd.f32 1e-06, %v5454_v52  ;;  %6631 = vmatpush3.bf16.msra.mxu0 %v7365_v51  ;;  %p7954_p0 = scmp.lt.s32.totalorder %s7952_s14, %s7946_s23 }
0x1280   : > { %v5532_v52 = vrot.slane %v5523_v40, %v5531_v56 }
0x1281   : > { %7404 = vrcp.f32 %v5455_v55  ;;  %p7955_p9 = por %p7954_p0, %p7953_p12 }
0x1283   : > { %p7956_p8 = pnand %p7955_p9, %p7949_p4 }
0x128b   : > { %v7405_v59 = vpop.eup %7404 }
0x128c   : > { %v5464_v6 = vmul.f32 %v7405_v59, %v5463_v57 }
0x128e   : > { %v9531_v12 = vadd.f32 %v6433_v62, %v5464_v6 }
0x1290   : > { %5474 = vadd.xlane.f32.xlu0 %v9531_v12 }
0x131d   : > { %v5475_v4 = vpop.xlane.xlu0 %5474 }
0x131e   : > { %v5476_v20 = vmul.f32 0.0078125, %v5475_v4 }
0x1320   : > { %v9535_v21 = vsub.f32 %v9531_v12, %v5476_v20 }
0x1322   : > { %v5478_v23 = vmul.f32 %v9535_v21, %v9535_v21  ;;  %v5497_v45 = vmul.f32 %v6434_v17, %v9535_v21 }
0x1324   : > { %5479 = vadd.xlane.f32.xlu0 %v5478_v23 }
0x13b1   : > { %v5480_v19 = vpop.xlane.xlu0 %5479 }
0x13b2   : > { %v5481_v38 = vmul.f32 0.007874016, %v5480_v19 }
0x13b4   : > { %7406 = vrsqrt.f32 %v5481_v38  ;;  %vm5484_vm3 = vcmp.eq.f32.partialorder %v5481_v38, inf  ;;  %v5487_v42 = vand.u32 2147483648, %v5481_v38  ;;  %vm5486_vm4 = vcmp.eq.f32.partialorder %v5481_v38, 0.0 }
0x13be   : > { %v7407_v39 = vpop.eup %7406 }
0x13bf   : > { %v5483_v5 = vmul.f32 %v7407_v39, %v5481_v38 }
0x13c1   : > { %v5485_v2 = vsel %vm5484_vm3, %v5481_v38, %v5483_v5 }
0x13c2   : > { %v5488_v43 = vsel %vm5486_vm4, %v5487_v42, %v5485_v2 }
0x13c3   : > { %v5489_v30 = vadd.f32 1e-06, %v5488_v43 }
0x13c5   : > { %7408 = vrcp.f32 %v5489_v30 }
0x13cf   : > { %v7409_v46 = vpop.eup %7408 }
0x13d0   : > { %v5498_v48 = vmul.f32 %v7409_v46, %v5497_v45 }
0x13d2   : > { %v5505_v60 = vadd.f32 %v6435_v47, %v5498_v48 }
0x13d4   : > { %v5506_v1 = vpack.c.bf16 %v5505_v60, %v5505_v60 }
0x13d6   : > { %5648 = vmatmul.mubr.bf16.vlgmr.msra.gmra.mrb[48].mxu1 %v5506_v1 }
0x14a9   : > { %v5649_v55 = vpop.f32.mrb[48].mxu1 }
0x14aa   : > { %v5650_v13 = vadd.f32 %v5649_v55, %v5528_v41  ;;  %v5651_v57 = vpop.f32.mrb[49].mxu1 }
0x14ab   : > { %v5652_v59 = vadd.f32 %v5651_v57, %v5532_v52  ;;  %v5653_v62 = vpop.f32.mrb[50].mxu1 }
0x14ac   : > { %v5656_v6 = vmax.f32 %v5650_v13, 0.0  ;;  %v5654_v4 = vpop.f32.mrb[51].mxu1 }
0x14ad   : > { %v5657_v20 = vmax.f32 %v5652_v59, 0.0 }
0x14ae   : > { %v5658_v23 = vpack.c.bf16 %v5656_v6, %v5656_v6 }
0x14af   : > { %v5659_v21 = vpack.c.bf16 %v5657_v20, %v5657_v20 }
0x14b1   : > { %5827 = vmatprep.mubr.bf16.mxu0 %v5659_v21 }
0x14b2   : > { %5828 = vmatmul.mubr.bf16.vlgmr.msra.gmra.mrb[32].mxu0 %v5658_v23 }
0x14b3   : > { %7959 = shalt.err (!%p7956_p8)
}
0x14b4   : > { %s7960_s3 = scalar_lea.hbm %s9553_s17, 128  ;;  %s7964_s2 = scalar_lea.hbm %s9788_s4, 512 }
0x14b5   : > { %p7961_p5 = scmp.ne.s32.totalorder %s9553_s17, %s7960_s3  ;;  %p7965_p6 = scmp.lt.u32.totalorder %s9553_s17, %s9788_s4 }
0x14b6   : > { %p7966_p3 = scmp.lt.u32.totalorder %s7964_s2, %s7960_s3  ;;  %p7968_p1 = scmp.lt.u32.totalorder %s7960_s3, %s9553_s17 }
0x14b7   : > { %p7962_p2 = pnand %p7961_p5, %p9789_p13 }
0x14b8   : > { %p7967_p11 = por %p7966_p3, %p7965_p6 }
0x14b9   : > { %p7963_p7 = pneg %p7962_p2 }
0x14ba   : > { %p7969_p10 = por %p7968_p1, %p7967_p11 }
0x14bc   : > { %p7970_p4 = pnand %p7969_p10, %p7963_p7 }
0x14be   : > { %7973 = shalt.err (!%p7970_p4)
}
0x14bf   : > { %s9790_s16 = sld [smem:[#allocation78_spill]]  ;;  %s9791_s23 = sld [smem:[#allocation79_spill]] }
0x14c0   : > { %6986 = dma.vmem_to_hbm [thread:$0]  (%p9789_p13), %s5875_s7, 128, %s9553_s17, %s5844_s19  }
0x14c1   : > { %s5859_s26 = sshll.u32 %s8863_s27, 4  ;;  %s5839_s17 = scalar_lea.sflag [#allocation8], %s8852_s6  ;;  %s9578_s26 = int_to_ptr.vmem [resolvable:$true] %s5859_s26 }
0x14c2   : > { %s7974_s7 = scalar_lea.vmem %s9578_s26, 128  ;;  %s8212_s19 = smov [#allocation36]  }
0x14c3   : > { %p7975_p12 = scmp.ne.s32.totalorder %s9578_s26, %s7974_s7  ;;  %s7978_s3 = sshll.u32 %s8212_s19, 4  ;;  %s7979_s3 = int_to_ptr.vmem [resolvable:$false] %s7978_s3 }
0x14c4   : > { %s7980_s2 = scalar_lea.vmem %s7979_s3, 256  ;;  %p7981_p8 = scmp.lt.s32.totalorder %s9578_s26, %s7979_s3 }
0x14c5   : > { %s9792_s13 = smov %s9791_s23  ;;  %v6452_v22 = vld [vmem:[%s9790_s16] ss:$0 sm:$0xff]  ;;  %s9576_s14 = scalar_lea.hbm %s9791_s23, %s6472_s24 }
0x14c6   : > { %p7976_p0 = pnand %p7975_p12, %p9789_p13  ;;  %p7982_p5 = scmp.lt.s32.totalorder %s7980_s2, %s7974_s7 }
0x14c8   : > { %p7977_p9 = pneg %p7976_p0  ;;  %p7983_p2 = por %p7982_p5, %p7981_p8 }
0x14ca   : > { %p7984_p7 = pnand %p7983_p2, %p7977_p9 }
0x1585   : > { %v6632_v8 = vpop.f32.mrb[32].mxu0 }
0x1586   : > { %v6633_v7 = vpop.f32.mrb[33].mxu0 }
0x1587   : > { %v6634_v3 = vadd.f32 %v6633_v7, %v6632_v8  ;;  %v6635_v61 = vpop.f32.mrb[34].mxu0 }
0x1588   : > { %v6636_v9 = vpop.f32.mrb[35].mxu0 }
0x1589   : > { %v5830_v14 = vadd.f32 %v6634_v3, %v6452_v22 }
0x158b   : > { %v5835_v15 = vadd.f32 %v5830_v14, %v9531_v12 }
0x158d   : > { %5836 = vst [vmem:[%s8863_s27] sm:$0xff] %v5835_v15 }
0x158e   : > { %7987 = shalt.err (!%p7984_p7)
}
0x158f   : > { %s7988_s6 = scalar_lea.hbm %s9576_s14, 128  ;;  %s7992_s27 = scalar_lea.hbm %s9792_s13, 512 }
0x1590   : > { %p7989_p6 = scmp.ne.s32.totalorder %s9576_s14, %s7988_s6  ;;  %p7993_p1 = scmp.lt.u32.totalorder %s9576_s14, %s9792_s13 }
0x1591   : > { %p7994_p10 = scmp.lt.u32.totalorder %s7992_s27, %s7988_s6  ;;  %p7996_p12 = scmp.lt.u32.totalorder %s7988_s6, %s9576_s14 }
0x1592   : > { %p7990_p3 = pnand %p7989_p6, %p9789_p13 }
0x1593   : > { %p7995_p4 = por %p7994_p10, %p7993_p1 }
0x1594   : > { %p7991_p11 = pneg %p7990_p3 }
0x1595   : > { %p7997_p0 = por %p7996_p12, %p7995_p4 }
0x1597   : > { %p7998_p9 = pnand %p7997_p0, %p7991_p11 }
0x1599   : > { %8001 = shalt.err (!%p7998_p9)
}
0x159a   : > { %6985 = dma.vmem_to_hbm [thread:$0]  (%p9789_p13), %s9578_s26, 128, %s9576_s14, %s5839_s17  }
0x159b PF: > { %s9793_s21 = sld [smem:[#allocation81_spill]]  ;;  %p7090_p8 = scmp.ge.s32.totalorder %s8140_s15, 2 }
0x159c   : > { %p9794_p5 = scmp.ne.s32.totalorder %s9743_s8, 0 }
0x159e   : > { %p7049_p2 = pnand %p7090_p8, %p9794_p5 }
0x15a1   : > { %s5886_s24 = sand.u32 1, %s9793_s21  }
0x15a2   : > { %s5887_s16 = scalar_lea.sflag [#allocation8], %s5886_s24 }
0x15a3   : > { %8091 = dma.done.wait (!%p7049_p2), %s5887_s16, 128  }
0x15a4   : > { %8093 = vsyncadd (!%p7049_p2), %s5887_s16, 4294967168  ;;  %s5896_s23 = scalar_lea.sflag [#allocation38], %s5886_s24 }
0x15a5   : > { %8095 = dma.done.wait (!%p7049_p2), %s5896_s23, 128  }
0x15a6   : > { %8097 = vsyncadd (!%p7049_p2), %s5896_s23, 4294967168  ;;  %s94_s15 = sadd.s32 1, %s8140_s15   ;;  %s9795_s9 = sld [smem:[#allocation82_spill]] }
0x15a7   : > { %p91_p7 = scmp.ge.s32.totalorder %s94_s15, 6   ;;  %s9796_s7 = sld [smem:[#allocation83_spill]] }
0x15a8   : > { %s9797_s26 = smov %s9816_s0  ;;  %s9798_s8 = smov %s9814_s22 }
0x15a9   : > { %s9801_s23 = smov %s9797_s26  ;;  %s9802_s26 = smov %s8116_s28 }
0x15aa   : > { %s9803_s28 = smov %s8120_s1  ;;  %s9804_s1 = smov %s8711_s12 }
0x15ab   : > { %s9805_s2 = smov %s8132_s10  ;;  %s9807_s10 = smov %s9810_s18 }
0x15ac   : > { %s9799_s22 = smov %s9795_s9  ;;  %93 = sbr.rel (!%p91_p7) target bundleno = 93 (0x5d), region = 325 }
0x15ad   : > { %s9800_s0 = smov %s9796_s7  ;;  %s9806_s7 = smov %s8136_s11 }
0x15ae   : > { %s9808_s11 = smov %s9798_s8 }
0x15b3   :  { %5901 = vsyncpa [#allocation7], 1 }
0x15b4   :  { %5903 = vsyncpa [#allocation7 + $0x1], 1 }
0x15b5   :  { %5904 = vsyncpa [#allocation10], 1 }
0x15b6   :  { %5906 = vsyncpa [#allocation10 + $0x1], 1 }
0x15b7   :  { %5907 = vsyncpa [#allocation13], 1 }
0x15b8   :  { %5908 = vsyncpa [#allocation16], 1 }
0x15b9   :  { %5909 = vsyncpa [#allocation19], 1 }
0x15ba   :  { %5910 = vsyncpa [#allocation22], 1 }
0x15bb   :  { %5911 = vsyncpa [#allocation25], 1 }
0x15bc   :  { %5912 = vsyncpa [#allocation28], 1 }
0x15bd   :  { %5913 = vsyncpa [#allocation31], 1 }
0x15be   :  { %5914 = vsyncpa [#allocation34], 1 }
0x15bf   :  { %5915 = vsyncpa [#allocation8], 1 }
0x15c0   :  { %5917 = vsyncpa [#allocation8 + $0x1], 1 }
0x15c1   :  { %5918 = vsyncpa [#allocation38], 1 }
0x15c2   :  { %5920 = vsyncpa [#allocation38 + $0x1], 1 }

</bundles_post_ra>
